<compile_context>
chip_gen: v5e
topology: v5e:2x2
jax: 0.10.0
libtpu: 0.0.40
codegen_flags: <defaults>
</compile_context>

<pallas_src>
import jax
import jax.numpy as jnp
from jax.experimental import pallas as pl
from jax.experimental.pallas import tpu as pltpu


def _round_up(x, m):
    return ((x + m - 1) // m) * m


def _cdiv(a, b):
    return -(-a // b)


def _choose_tile(B, block_b):
    """Pick (bb, Bp): per-step batch tile and padded batch size.

    Small batches (B <= 128) use a single grid step with a sublane-aligned tile (the
    (1, bb) output block then equals the full array, so no %128 lane constraint).
    Larger batches use bb % 128 == 0 with >= 2 grid steps (so the 'parallel' batch axis
    splits across both v7x TensorCores), choosing the candidate with minimal padding
    and tie-breaking toward bigger tiles to amortize per-step pipeline overhead.
    """
    if B <= 128:
        bb = _round_up(B, 8)
        return bb, bb
    cap = min(block_b, _round_up(_cdiv(B, 2), 128))
    best = None
    for bb in range(128, cap + 1, 128):
        Bp = _round_up(B, bb)
        cand = (Bp - B, -bb, bb, Bp)
        if best is None or cand < best:
            best = cand
    if best is None:
        # Degenerate block_b; fall back to one full-batch step.
        bb = _round_up(B, 8)
        return bb, bb
    return best[2], best[3]


def _vmem_bytes_estimate(bb, E, H=1024):
    weights = (E * H + H * H + H) * 2 + 2 * H * 4   # bf16 W1/W2/w3 (1 buffer) + f32 b1/b2
    x_tiles = 2 * 2 * bb * E * 4                    # x1/x2 tiles, double-buffered
    out_tile = 2 * bb * 4                           # (1, bb) f32 output, double-buffered
    acts = bb * H * (2 + 4) + bb * H * 4            # h1 (bf16), h2 (f32) + slack
    return weights + x_tiles + out_tile + acts


def siamese_kernel(x1_ref, x2_ref, w1_ref, b1_ref, w2_ref, b2_ref, w3_ref, b3_ref, o_ref):
    # (x1 - x2)**2, then cast to f32 (matches `.to(torch.float32)` after the square).
    diff = x1_ref[...] - x2_ref[...]
    sq = (diff * diff).astype(jnp.float32)

    # Linear(E,1024) + ReLU: bf16 operands on the MXU with f32 accumulation.  The bias
    # add + ReLU epilogue runs in bf16 so no separate (bb,1024) f32->bf16 cast pass is
    # needed before the second matmul.
    h1 = jnp.dot(sq.astype(jnp.bfloat16), w1_ref[...],
                 preferred_element_type=jnp.float32)
    h1 = jnp.maximum(h1.astype(jnp.bfloat16) + b1_ref[...].astype(jnp.bfloat16), 0.0)

    # Linear(1024,1024) + ReLU (f32; h2 feeds the f32 VPU reduce below).
    h2 = jnp.dot(h1, w2_ref[...], preferred_element_type=jnp.float32) + b2_ref[...]
    h2 = jnp.maximum(h2, 0.0)

    # Dropout(p=0.3): identity in eval mode.
    # TODO(synk): training-mode dropout (pltpu.prng_seed + stateful_bernoulli) not emitted here.

    # Linear(1024,1): w3 is a (1,1024) row vector -> VPU multiply + lane reduction
    # instead of a padded N=1 MXU matmul.
    logits = jnp.sum(h2 * w3_ref[...].astype(jnp.float32), axis=-1, keepdims=True)  # (bb, 1)

    # Transpose to lane-dense (1, bb) *before* the sigmoid: the writeback becomes
    # full-lane stores and the EUP/VPU sigmoid touches ceil(bb/128) vregs, not bb/8.
    logits = jnp.transpose(logits) + b3_ref[0, 0]                                    # (1, bb)

    # Numerically-stable sigmoid; exp and the approx reciprocal both land on the EUP.
    z = jnp.exp(-jnp.abs(logits))
    inv = pl.reciprocal(1.0 + z, approx=True)
    o_ref[...] = jnp.where(logits >= 0.0, inv, z * inv)


def siamese_forward(x1, x2, params, *, block_b=512):
    w1, b1, w2, b2, w3, b3 = params
    B, E = x1.shape

    bb, Bp = _choose_tile(B, block_b)
    if Bp != B:
        x1 = jnp.pad(x1, ((0, Bp - B), (0, 0)))
        x2 = jnp.pad(x2, ((0, Bp - B), (0, 0)))

    def resident(arr):
        # Full-array block, constant index_map, single pipeline buffer: DMA'd once,
        # stays VMEM-resident across grid steps, no dead second buffer.
        return pl.BlockSpec(arr.shape, lambda i: (0, 0), pipeline_mode=pl.Buffered(1))

    compiler_kwargs = dict(dimension_semantics=("parallel",))
    est = _vmem_bytes_estimate(bb, E)
    if est > 12 * 1024 * 1024:
        # Only needed if a very large tile would exceed v5e's 16 MiB scoped-VMEM default.
        compiler_kwargs["vmem_limit_bytes"] = min(int(est * 3 // 2), 48 * 1024 * 1024)

    out = pl.pallas_call(
        siamese_kernel,
        out_shape=jax.ShapeDtypeStruct((1, Bp), jnp.float32),
        grid=(Bp // bb,),
        in_specs=[
            pl.BlockSpec((bb, E), lambda i: (i, 0)),            # x1 batch tile
            pl.BlockSpec((bb, E), lambda i: (i, 0)),            # x2 batch tile
            resident(w1), resident(b1),                         # (E,1024) bf16 / (1,1024) f32
            resident(w2), resident(b2),                         # (1024,1024) bf16 / (1,1024) f32
            resident(w3),                                       # (1,1024) bf16
            pl.BlockSpec(memory_space=pltpu.MemorySpace.SMEM),  # b3 (1,1) scalar
        ],
        out_specs=pl.BlockSpec((1, bb), lambda i: (0, i)),      # lane-dense output row
        compiler_params=pltpu.CompilerParams(**compiler_kwargs),
    )(x1, x2, w1, b1, w2, b2, w3, b3)
    return out[0, :B].reshape(B, 1)


def init_params(key, embedding_size, hidden=1024):
    # Deterministic synthetic init (roughly PyTorch's U(-1/sqrt(fan_in), 1/sqrt(fan_in))).
    # Weights are stored (in_features, out_features) in bf16; w3 is a (1, hidden) row vector.
    k1, k2, k3, k4, k5, k6 = jax.random.split(key, 6)

    def uniform(k, shape, fan_in, dtype):
        bound = 1.0 / jnp.sqrt(jnp.float32(fan_in))
        return jax.random.uniform(k, shape, jnp.float32, -bound, bound).astype(dtype)

    w1 = uniform(k1, (embedding_size, hidden), embedding_size, jnp.bfloat16)
    b1 = uniform(k2, (1, hidden), embedding_size, jnp.float32)
    w2 = uniform(k3, (hidden, hidden), hidden, jnp.bfloat16)
    b2 = uniform(k4, (1, hidden), hidden, jnp.float32)
    w3 = uniform(k5, (1, hidden), hidden, jnp.bfloat16)
    b3 = uniform(k6, (1, 1), hidden, jnp.float32)
    return (w1, b1, w2, b2, w3, b3)


def reference_forward(x1, x2, params):
    w1, b1, w2, b2, w3, b3 = params
    sq = ((x1 - x2) ** 2).astype(jnp.float32)
    h1 = jnp.maximum(sq @ w1.astype(jnp.float32) + b1, 0.0)
    h2 = jnp.maximum(h1 @ w2.astype(jnp.float32) + b2, 0.0)
    logits = h2 @ w3.astype(jnp.float32).T + b3
    return jax.nn.sigmoid(logits)


if __name__ == "__main__":
    B = 8
    EMBEDDING_SIZE = 32

    key = jax.random.PRNGKey(0)
    kx1, kx2, kp = jax.random.split(key, 3)

    x1 = jax.random.normal(kx1, (B, EMBEDDING_SIZE), jnp.float32)
    x2 = jax.random.normal(kx2, (B, EMBEDDING_SIZE), jnp.float32)
    params = init_params(kp, EMBEDDING_SIZE)

    out = jax.block_until_ready(siamese_forward(x1, x2, params))
    ref = reference_forward(x1, x2, params)

    assert out.shape == (B, 1)
    # Tolerance accounts for bf16 weight storage / bf16 activation casts and the
    # approx EUP reciprocal in the sigmoid.
    assert jnp.allclose(out, ref, atol=2e-2, rtol=2e-2), (out, ref)

    print("KERNEL_OK")
</pallas_src>

<mosaic_0001>
module attributes {stable_mosaic.version = 11 : i64} {
  func.func @siamese_kernel(%arg0: i32, %arg1: memref<8x32xf32, #tpu.memory_space<vmem>>, %arg2: memref<8x32xf32, #tpu.memory_space<vmem>>, %arg3: memref<32x1024xbf16, #tpu.memory_space<vmem>>, %arg4: memref<1x1024xf32, #tpu.memory_space<vmem>>, %arg5: memref<1024x1024xbf16, #tpu.memory_space<vmem>>, %arg6: memref<1x1024xf32, #tpu.memory_space<vmem>>, %arg7: memref<1x1024xbf16, #tpu.memory_space<vmem>>, %arg8: memref<1x1xf32, #tpu.memory_space<smem>>, %arg9: memref<1x8xf32, #tpu.memory_space<vmem>>) attributes {dimension_semantics = [#tpu.dimension_semantics<parallel>], iteration_bounds = array<i64: 1>, scalar_prefetch = 0 : i64, scratch_operands = 0 : i64, tpu.core_type = #tpu.core_type<tc>, window_params = [{transform_indices = @transform_0, window_bounds = array<i64: 8, 32>}, {transform_indices = @transform_1, window_bounds = array<i64: 8, 32>}, {pipeline_mode = #tpu.pipeline_mode<synchronous>, transform_indices = @transform_2, window_bounds = array<i64: 32, 1024>}, {pipeline_mode = #tpu.pipeline_mode<synchronous>, transform_indices = @transform_3, window_bounds = array<i64: 1, 1024>}, {pipeline_mode = #tpu.pipeline_mode<synchronous>, transform_indices = @transform_4, window_bounds = array<i64: 1024, 1024>}, {pipeline_mode = #tpu.pipeline_mode<synchronous>, transform_indices = @transform_5, window_bounds = array<i64: 1, 1024>}, {pipeline_mode = #tpu.pipeline_mode<synchronous>, transform_indices = @transform_6, window_bounds = array<i64: 1, 1024>}, {transform_indices = @transform_7, window_bounds = array<i64: 1, 1>}, {transform_indices = @transform_8, window_bounds = array<i64: 1, 8>}]} {
    %c0 = arith.constant 0 : index
    %c0_0 = arith.constant 0 : index
    %0 = vector.load %arg1[%c0, %c0_0] : memref<8x32xf32, #tpu.memory_space<vmem>>, vector<8x32xf32>
    %c0_1 = arith.constant 0 : index
    %c0_2 = arith.constant 0 : index
    %1 = vector.load %arg2[%c0_1, %c0_2] : memref<8x32xf32, #tpu.memory_space<vmem>>, vector<8x32xf32>
    %2 = arith.subf %0, %1 : vector<8x32xf32>
    %3 = arith.mulf %2, %2 : vector<8x32xf32>
    %4 = arith.truncf %3 : vector<8x32xf32> to vector<8x32xbf16>
    %c0_3 = arith.constant 0 : index
    %c0_4 = arith.constant 0 : index
    %5 = vector.load %arg3[%c0_3, %c0_4] : memref<32x1024xbf16, #tpu.memory_space<vmem>>, vector<32x1024xbf16>
    %cst = arith.constant dense<0.000000e+00> : vector<8x1024xf32>
    %6 = tpu.matmul %4, %5, %cst {dimension_numbers = #tpu.dot_dimension_numbers<[1], [0], [0], [1], [0, 0, 1, 1], [], []>} : vector<8x32xbf16>, vector<32x1024xbf16>, vector<8x1024xf32> -> vector<8x1024xf32>
    %7 = arith.truncf %6 : vector<8x1024xf32> to vector<8x1024xbf16>
    %c0_5 = arith.constant 0 : index
    %c0_6 = arith.constant 0 : index
    %8 = vector.load %arg4[%c0_5, %c0_6] : memref<1x1024xf32, #tpu.memory_space<vmem>>, vector<1x1024xf32>
    %9 = arith.truncf %8 : vector<1x1024xf32> to vector<1x1024xbf16>
    %10 = vector.broadcast %9 : vector<1x1024xbf16> to vector<8x1024xbf16>
    %11 = arith.addf %7, %10 : vector<8x1024xbf16>
    %cst_7 = arith.constant 0.000000e+00 : bf16
    %12 = vector.broadcast %cst_7 : bf16 to vector<8x1024xbf16>
    %13 = arith.maximumf %11, %12 : vector<8x1024xbf16>
    %c0_8 = arith.constant 0 : index
    %c0_9 = arith.constant 0 : index
    %14 = vector.load %arg5[%c0_8, %c0_9] : memref<1024x1024xbf16, #tpu.memory_space<vmem>>, vector<1024x1024xbf16>
    %cst_10 = arith.constant dense<0.000000e+00> : vector<8x1024xf32>
    %15 = tpu.matmul %13, %14, %cst_10 {dimension_numbers = #tpu.dot_dimension_numbers<[1], [0], [0], [1], [0, 0, 1, 1], [], []>} : vector<8x1024xbf16>, vector<1024x1024xbf16>, vector<8x1024xf32> -> vector<8x1024xf32>
    %c0_11 = arith.constant 0 : index
    %c0_12 = arith.constant 0 : index
    %16 = vector.load %arg6[%c0_11, %c0_12] : memref<1x1024xf32, #tpu.memory_space<vmem>>, vector<1x1024xf32>
    %17 = vector.broadcast %16 : vector<1x1024xf32> to vector<8x1024xf32>
    %18 = arith.addf %15, %17 : vector<8x1024xf32>
    %cst_13 = arith.constant 0.000000e+00 : f32
    %19 = vector.broadcast %cst_13 : f32 to vector<8x1024xf32>
    %20 = arith.maximumf %18, %19 : vector<8x1024xf32>
    %c0_14 = arith.constant 0 : index
    %c0_15 = arith.constant 0 : index
    %21 = vector.load %arg7[%c0_14, %c0_15] : memref<1x1024xbf16, #tpu.memory_space<vmem>>, vector<1x1024xbf16>
    %22 = arith.extf %21 : vector<1x1024xbf16> to vector<1x1024xf32>
    %23 = vector.broadcast %22 : vector<1x1024xf32> to vector<8x1024xf32>
    %24 = arith.mulf %20, %23 : vector<8x1024xf32>
    %cst_16 = arith.constant dense<0.000000e+00> : vector<8xf32>
    %25 = vector.multi_reduction <add>, %24, %cst_16 [1] : vector<8x1024xf32> to vector<8xf32>
    %26 = vector.shape_cast %25 : vector<8xf32> to vector<8x1xf32>
    %27 = tpu.transpose %26, [1, 0] : vector<8x1xf32> -> vector<1x8xf32>
    %c0_17 = arith.constant 0 : index
    %c0_18 = arith.constant 0 : index
    %28 = memref.load %arg8[%c0_17, %c0_18] : memref<1x1xf32, #tpu.memory_space<smem>>
    %29 = vector.broadcast %28 : f32 to vector<1x8xf32>
    %30 = arith.addf %27, %29 : vector<1x8xf32>
    %31 = math.absf %30 : vector<1x8xf32>
    %cst_19 = arith.constant 0.000000e+00 : f32
    %32 = vector.broadcast %cst_19 : f32 to vector<1x8xf32>
    %33 = arith.subf %32, %31 : vector<1x8xf32>
    %34 = math.exp %33 : vector<1x8xf32>
    %cst_20 = arith.constant 1.000000e+00 : f32
    %35 = vector.broadcast %cst_20 : f32 to vector<1x8xf32>
    %36 = arith.addf %35, %34 : vector<1x8xf32>
    %37 = tpu.reciprocal %36 {approx = true} : vector<1x8xf32> -> vector<1x8xf32>
    %cst_21 = arith.constant 0.000000e+00 : f32
    %38 = vector.broadcast %cst_21 : f32 to vector<1x8xf32>
    %39 = arith.cmpf oge, %30, %38 : vector<1x8xf32>
    %40 = arith.mulf %34, %37 : vector<1x8xf32>
    %41 = arith.select %39, %37, %40 : vector<1x8xi1>, vector<1x8xf32>
    %c0_22 = arith.constant 0 : index
    %c0_23 = arith.constant 0 : index
    %42 = vector.load %arg9[%c0_22, %c0_23] : memref<1x8xf32, #tpu.memory_space<vmem>>, vector<1x8xf32>
    tpu.vector_store %arg9[%c0_22, %c0_23], %41 {strides = array<i32>} : memref<1x8xf32, #tpu.memory_space<vmem>>, vector<1x8xf32>,
    return
  }
  func.func @transform_0(%arg0: i32) -> (i32, i32) {
    %c0_i32 = arith.constant 0 : i32
    %c0_i32_0 = arith.constant 0 : i32
    return %arg0, %c0_i32 : i32, i32
  }
  func.func @transform_1(%arg0: i32) -> (i32, i32) {
    %c0_i32 = arith.constant 0 : i32
    %c0_i32_0 = arith.constant 0 : i32
    return %arg0, %c0_i32 : i32, i32
  }
  func.func @transform_2(%arg0: i32) -> (i32, i32) {
    %c0_i32 = arith.constant 0 : i32
    %c0_i32_0 = arith.constant 0 : i32
    %c0_i32_1 = arith.constant 0 : i32
    return %c0_i32, %c0_i32_0 : i32, i32
  }
  func.func @transform_3(%arg0: i32) -> (i32, i32) {
    %c0_i32 = arith.constant 0 : i32
    %c0_i32_0 = arith.constant 0 : i32
    %c0_i32_1 = arith.constant 0 : i32
    return %c0_i32, %c0_i32_0 : i32, i32
  }
  func.func @transform_4(%arg0: i32) -> (i32, i32) {
    %c0_i32 = arith.constant 0 : i32
    %c0_i32_0 = arith.constant 0 : i32
    %c0_i32_1 = arith.constant 0 : i32
    return %c0_i32, %c0_i32_0 : i32, i32
  }
  func.func @transform_5(%arg0: i32) -> (i32, i32) {
    %c0_i32 = arith.constant 0 : i32
    %c0_i32_0 = arith.constant 0 : i32
    %c0_i32_1 = arith.constant 0 : i32
    return %c0_i32, %c0_i32_0 : i32, i32
  }
  func.func @transform_6(%arg0: i32) -> (i32, i32) {
    %c0_i32 = arith.constant 0 : i32
    %c0_i32_0 = arith.constant 0 : i32
    %c0_i32_1 = arith.constant 0 : i32
    return %c0_i32, %c0_i32_0 : i32, i32
  }
  func.func @transform_7(%arg0: i32) -> (i32, i32) {
    %c0_i32 = arith.constant 0 : i32
    %c0_i32_0 = arith.constant 0 : i32
    %c0_i32_1 = arith.constant 0 : i32
    return %c0_i32, %c0_i32_0 : i32, i32
  }
  func.func @transform_8(%arg0: i32) -> (i32, i32) {
    %c0_i32 = arith.constant 0 : i32
    %c0_i32_0 = arith.constant 0 : i32
    return %c0_i32, %arg0 : i32, i32
  }
}

</mosaic_0001>

<bundles_post_ra>
// kernel: tpu_custom_call.1
= control target key start
LH: loop header
LB: loop body
LE: loop exit
PB: predicated region body
PF: predicated region fallthrough
CT: control target
= control target key end

     0   :  { %14 = vsyncpa [#allocation4], 0  ;;  %s7623_s0 = inlined_call_operand.hbm [shape: f32[8,32], index: 0, kind: input, shape index: {}]   ;;  %s7624_s1 = inlined_call_operand.hbm [shape: f32[8,32], index: 1, kind: input, shape index: {}]   ;;  %s7625_s2 = inlined_call_operand.hbm [shape: bf16[32,1024], index: 2, kind: input, shape index: {}]   ;;  %s7626_s3 = inlined_call_operand.hbm [shape: f32[1,1024], index: 3, kind: input, shape index: {}]   ;;  %s7627_s4 = inlined_call_operand.hbm [shape: bf16[1024,1024], index: 4, kind: input, shape index: {}]   ;;  %s7628_s5 = inlined_call_operand.hbm [shape: f32[1,1024], index: 5, kind: input, shape index: {}]   ;;  %s7629_s6 = inlined_call_operand.hbm [shape: bf16[1,1024], index: 6, kind: input, shape index: {}]   ;;  %s7630_s7 = inlined_call_operand.<no memory space> [shape: f32[1,1], index: 7, kind: input, shape index: {}]   ;;  %s7631_s8 = inlined_call_operand.hbm [shape: f32[1,8], index: 8, kind: output, shape index: {}]  }
   0x1   :  { %15 = vsyncpa [#allocation7], 0 }
   0x2   :  { %16 = vsyncpa [#allocation10], 0 }
   0x3   :  { %17 = vsyncpa [#allocation13], 0  ;;  %s35_s29 = sshll.u32 %s7624_s1, 4  ;;  %s36_s29 = int_to_ptr.hbm [resolvable:$true] %s35_s29 }
   0x4   :  { %18 = vsyncpa [#allocation5], 0  ;;  %s7380_s30 = smov [#allocation6]   ;;  %s59_s12 = sshll.u32 %s7626_s3, 4  ;;  %s60_s12 = int_to_ptr.hbm [resolvable:$true] %s59_s12 }
   0x5   :  { %s37_s9 = sshll.u32 %s7380_s30, 4  ;;  %s7381_s13 = smov [#allocation9]   ;;  %s38_s9 = int_to_ptr.vmem [resolvable:$true] %s37_s9 }
   0x6   :  { %40 = dma.hbm_to_vmem [thread:$0]  %s36_s29, 128, %s38_s9, [#allocation7]  }
   0x7   :  { %s61_s14 = sshll.u32 %s7381_s13, 4  ;;  %s83_s17 = sshll.u32 %s7628_s5, 4  ;;  %s62_s14 = int_to_ptr.vmem [resolvable:$true] %s61_s14  ;;  %s84_s17 = int_to_ptr.hbm [resolvable:$true] %s83_s17 }
   0x8   :  { %64 = dma.hbm_to_vmem [thread:$0]  %s60_s12, 128, %s62_s14, [#allocation10]  }
   0x9   :  { %s24_s19 = sshll.u32 %s7623_s0, 4  ;;  %s7382_s20 = smov [#allocation12]   ;;  %s25_s19 = int_to_ptr.hbm [resolvable:$true] %s24_s19 }
   0xa   :  { %s85_s21 = sshll.u32 %s7382_s20, 4  ;;  %s7383_s3 = smov [#allocation3]   ;;  %s86_s21 = int_to_ptr.vmem [resolvable:$true] %s85_s21 }
   0xb   :  { %88 = dma.hbm_to_vmem [thread:$0]  %s84_s17, 128, %s86_s21, [#allocation13]  }
   0xc   :  { %s26_s22 = sshll.u32 %s7383_s3, 4  ;;  %s45_s25 = sshll.u32 %s7625_s2, 4  ;;  %s27_s22 = int_to_ptr.vmem [resolvable:$true] %s26_s22  ;;  %s46_s25 = int_to_ptr.hbm [resolvable:$true] %s45_s25 }
   0xd   :  { %29 = dma.hbm_to_vmem [thread:$0]  %s25_s19, 128, %s27_s22, [#allocation4]  }
   0xe   :  { %s7384_s5 = smov [#allocation8]   ;;  %s69_s0 = sshll.u32 %s7627_s4, 4  ;;  %s70_s0 = int_to_ptr.hbm [resolvable:$true] %s69_s0 }
   0xf   :  { %s47_s26 = sshll.u32 %s7384_s5, 4  ;;  %s7385_s29 = smov 512   ;;  %s48_s26 = int_to_ptr.vmem [resolvable:$true] %s47_s26 }
  0x10   :  { %s7386_s30 = smov 32   ;;  %s7387_s9 = smov [#allocation11]  }
  0x11   :  { %53 = dma.hbm_to_vmem [thread:$0]  %s46_s25, 2048, %s48_s26, [#allocation7], %s7385_s29, %s7385_s29, %s7386_s30  }
  0x12   :  { %s71_s10 = sshll.u32 %s7387_s9, 4  ;;  %s94_s2 = sshll.u32 %s7629_s6, 4  ;;  %s72_s10 = int_to_ptr.vmem [resolvable:$true] %s71_s10  ;;  %s95_s2 = int_to_ptr.hbm [resolvable:$true] %s94_s2 }
  0x13   :  { %77 = dma.hbm_to_vmem [thread:$0]  %s70_s0, 65536, %s72_s10, [#allocation10], %s7385_s29, %s7385_s29, %s7386_s30  }
  0x14   :  { %s7388_s13 = smov [#allocation14]  }
  0x15   :  { %s96_s14 = sshll.u32 %s7388_s13, 4  ;;  %s97_s14 = int_to_ptr.vmem [resolvable:$true] %s96_s14 }
  0x16   :  { %99 = dma.hbm_to_vmem [thread:$0]  %s95_s2, 128, %s97_s14, [#allocation13]  }
  0x17   :  { %7370 = dma.done.wait [#allocation4], 128  }
  0x18   :  { %7371 = vsyncadd [#allocation4], 4294967168 }
  0x19   :  { %7372 = dma.done.wait [#allocation7], 2176  }
  0x1a   :  { %7373 = vsyncadd [#allocation7], 4294965120 }
  0x1b   :  { %7374 = dma.done.wait [#allocation10], 65664  }
  0x1c   :  { %7375 = vsyncadd [#allocation10], 4294901632 }
  0x1d   :  { %7376 = dma.done.wait [#allocation13], 256  }
  0x1e   :  { %7377 = vsyncadd [#allocation13], 4294967040  ;;  %v4546_v0 = vld [vmem:[#allocation8 + $0x40] sm:$0xf]  ;;  %v6640_v2 = vld [vmem:[#allocation8 + $0x44] sm:$0xf] }
  0x1f   :  { %v6644_v1 = vld [vmem:[#allocation8 + $0x5c] sm:$0xf0]  ;;  %v4548_v4 = vld [vmem:[#allocation8 + $0x60] sm:$0xf0]  ;;  %v4554_v5 = vld [vmem:[#allocation8 + $0x48] sm:$0xf] }
  0x20   :  { %v4547_v3 = vor.u32 %v6644_v1, %v4546_v0  ;;  %v6645_v6 = vld [vmem:[#allocation8 + $0x64] sm:$0xf0]  ;;  %v4551_v7 = vor.u32 %v6640_v2, %v4548_v4  ;;  %v6641_v9 = vld [vmem:[#allocation8 + $0x4c] sm:$0xf]  ;;  %v4514_v11 = vld [vmem:[#allocation8] sm:$0xf] }
  0x21   :  { %v4555_v8 = vor.u32 %v6645_v6, %v4554_v5  ;;  %v4556_v10 = vld [vmem:[#allocation8 + $0x68] sm:$0xf0]  ;;  %v6636_v13 = vld [vmem:[#allocation8 + $0x1c] sm:$0xf0]  ;;  %v6632_v14 = vld [vmem:[#allocation8 + $0x4] sm:$0xf] }
  0x22   :  { %242 = vmatpush.bf16.msra.mxu0 %v4547_v3  ;;  %v4559_v12 = vor.u32 %v6641_v9, %v4556_v10  ;;  %v4516_v15 = vld [vmem:[#allocation8 + $0x20] sm:$0xf0]  ;;  %255 = vmatpush.bf16.msra.mxu1 %v4551_v7  ;;  %v4515_v16 = vor.u32 %v6636_v13, %v4514_v11  ;;  %v4522_v18 = vld [vmem:[#allocation8 + $0x8] sm:$0xf]  ;;  %v6633_v20 = vld [vmem:[#allocation8 + $0xc] sm:$0xf] }
  0x23   :  { %268 = vmatpush.bf16.msra.mxu2 %v4555_v8  ;;  %v4519_v17 = vor.u32 %v6632_v14, %v4516_v15  ;;  %v6637_v19 = vld [vmem:[#allocation8 + $0x24] sm:$0xf0]  ;;  %v4524_v22 = vld [vmem:[#allocation8 + $0x28] sm:$0xf0]  ;;  %v131_v23 = vld [vmem:[#allocation3] sm:$0xff]  ;;  %vm232_vm0 = vcmask 261120  }
  0x24   :  { %281 = vmatpush.bf16.msra.mxu3 %v4559_v12  ;;  %v4523_v21 = vor.u32 %v6637_v19, %v4522_v18  ;;  %v132_v24 = vld [vmem:[#allocation6] sm:$0xff]  ;;  %v4527_v25 = vor.u32 %v6633_v20, %v4524_v22  ;;  %v4562_v27 = vld [vmem:[#allocation8 + $0x50] sm:$0xf]  ;;  %v6642_v29 = vld [vmem:[#allocation8 + $0x54] sm:$0xf]  ;;  %s7389_s15 = smov [#allocation15]  }
  0x25   :  { %v133_v26 = vsub.f32 %v131_v23, %v132_v24  ;;  %v6646_v28 = vld [vmem:[#allocation8 + $0x6c] sm:$0xf0]  ;;  %v4564_v31 = vld [vmem:[#allocation8 + $0x70] sm:$0xf0]  ;;  %v4570_v32 = vld [vmem:[#allocation8 + $0x58] sm:$0xf] }
  0x26   :  { %243 = vmatpush.bf16.msra.mxu0 %v4515_v16  ;;  %v4563_v30 = vor.u32 %v6646_v28, %v4562_v27  ;;  %v6647_v33 = vld [vmem:[#allocation8 + $0x74] sm:$0xf0]  ;;  %256 = vmatpush.bf16.msra.mxu1 %v4519_v17  ;;  %v4567_v35 = vor.u32 %v6642_v29, %v4564_v31  ;;  %v6643_v37 = vld [vmem:[#allocation8 + $0x5c] sm:$0xf]  ;;  %v4530_v39 = vld [vmem:[#allocation8 + $0x10] sm:$0xf] }
  0x27   :  { %269 = vmatpush.bf16.msra.mxu2 %v4523_v21  ;;  %v134_v34 = vmul.f32 %v133_v26, %v133_v26  ;;  %v4571_v36 = vor.u32 %v6647_v33, %v4570_v32  ;;  %v4572_v38 = vld [vmem:[#allocation8 + $0x78] sm:$0xf0]  ;;  %v6638_v41 = vld [vmem:[#allocation8 + $0x2c] sm:$0xf0]  ;;  %v6634_v42 = vld [vmem:[#allocation8 + $0x14] sm:$0xf] }
  0x28   :  { %282 = vmatpush.bf16.msra.mxu3 %v4527_v25  ;;  %v4575_v40 = vor.u32 %v6643_v37, %v4572_v38  ;;  %v4532_v43 = vld [vmem:[#allocation8 + $0x30] sm:$0xf0]  ;;  %v4531_v45 = vor.u32 %v6638_v41, %v4530_v39  ;;  %v4538_v47 = vld [vmem:[#allocation8 + $0x18] sm:$0xf]  ;;  %v6635_v49 = vld [vmem:[#allocation8 + $0x1c] sm:$0xf] }
  0x29   :  { %v7456_v44 = vpack.c.bf16 %v134_v34, %v134_v34  ;;  %v4535_v46 = vor.u32 %v6634_v42, %v4532_v43  ;;  %v6639_v48 = vld [vmem:[#allocation8 + $0x34] sm:$0xf0]  ;;  %v4540_v51 = vld [vmem:[#allocation8 + $0x38] sm:$0xf0]  ;;  %v4810_v52 = vld [vmem:[#allocation11 + $0x1c0] sm:$0xf] }
  0x2a   :  { %294 = vmatpush.bf16.msrb.mxu0 %v4563_v30  ;;  %307 = vmatpush.bf16.msrb.mxu1 %v4567_v35  ;;  %v4539_v50 = vor.u32 %v6639_v48, %v4538_v47  ;;  %v6708_v53 = vld [vmem:[#allocation11 + $0x1dc] sm:$0xf0]  ;;  %v4543_v54 = vor.u32 %v6635_v49, %v4540_v51  ;;  %s4497_s16 = sshll.u32 %s7389_s15, 4  ;;  %s4499_s18 = sshll.u32 %s7631_s8, 4  ;;  %vm4490_vm1 = vcmask 57344   ;;  %s4498_s16 = int_to_ptr.vmem [resolvable:$true] %s4497_s16  ;;  %s4500_s18 = int_to_ptr.hbm [resolvable:$true] %s4499_s18 }
  0x2b   :  { %320 = vmatpush.bf16.msrb.mxu2 %v4571_v36  ;;  %4576 = vmatmul.msk.bf16.vlgmr.msra.gmra.mxu0 %vm232_vm0, %v7456_v44  ;;  %v4811_v55 = vor.u32 %v6708_v53, %v4810_v52  ;;  %v5066_v56 = vld [vmem:[#allocation11 + $0x3c0] sm:$0xf] }
  0x2c   :  { %333 = vmatpush.bf16.msrb.mxu3 %v4575_v40  ;;  %4577 = vmatmul.msk.bf16.vlgmr.msra.gmra.mxu1 %vm232_vm0, %v7456_v44  ;;  %v6772_v57 = vld [vmem:[#allocation11 + $0x3dc] sm:$0xf0] }
  0x2d   :  { %v4778_v58 = vld [vmem:[#allocation11 + $0x180] sm:$0xf]  ;;  %4578 = vmatmul.msk.bf16.vlgmr.msra.gmra.mxu2 %vm232_vm0, %v7456_v44  ;;  %4579 = vmatmul.msk.bf16.vlgmr.msra.gmra.mxu3 %vm232_vm0, %v7456_v44  ;;  %v5067_v59 = vor.u32 %v6772_v57, %v5066_v56 }
  0x2e   :  { %v6700_v60 = vld [vmem:[#allocation11 + $0x19c] sm:$0xf0]  ;;  %295 = vmatpush.bf16.msrb.mxu0 %v4531_v45  ;;  %308 = vmatpush.bf16.msrb.mxu1 %v4535_v46 }
  0x2f   :  { %v5034_v61 = vld [vmem:[#allocation11 + $0x380] sm:$0xf]  ;;  %321 = vmatpush.bf16.msrb.mxu2 %v4539_v50  ;;  %v4779_v6 = vor.u32 %v6700_v60, %v4778_v58 }
  0x30   :  { %v6764_v62 = vld [vmem:[#allocation11 + $0x39c] sm:$0xf0]  ;;  %334 = vmatpush.bf16.msrb.mxu3 %v4543_v54 }
  0x31   :  { %v5322_v63 = vld [vmem:[#allocation11 + $0x5c0] sm:$0xf]  ;;  %v5035_v7 = vor.u32 %v6764_v62, %v5034_v61 }
  0x32   :  { %v6836_v0 = vld [vmem:[#allocation11 + $0x5dc] sm:$0xf0]  ;;  %3560 = vmatpush.bf16.msra.mxu0 %v4811_v55  ;;  %3573 = vmatpush.bf16.msra.mxu1 %v5067_v59 }
  0x33   :  { %v5578_v1 = vld [vmem:[#allocation11 + $0x7c0] sm:$0xf]  ;;  %v5323_v2 = vor.u32 %v6836_v0, %v5322_v63 }
  0x34   :  { %v6900_v3 = vld [vmem:[#allocation11 + $0x7dc] sm:$0xf0] }
  0x35   :  { %v4746_v4 = vld [vmem:[#allocation11 + $0x140] sm:$0xf]  ;;  %v5579_v8 = vor.u32 %v6900_v3, %v5578_v1  ;;  %3586 = vmatpush.bf16.msra.mxu2 %v5323_v2 }
  0x36   :  { %v6692_v5 = vld [vmem:[#allocation11 + $0x15c] sm:$0xf0]  ;;  %3561 = vmatpush.bf16.msra.mxu0 %v4779_v6  ;;  %3574 = vmatpush.bf16.msra.mxu1 %v5035_v7 }
  0x37   :  { %v5002_v9 = vld [vmem:[#allocation11 + $0x340] sm:$0xf]  ;;  %3599 = vmatpush.bf16.msra.mxu3 %v5579_v8  ;;  %v4747_v19 = vor.u32 %v6692_v5, %v4746_v4 }
  0x38   :  { %v6756_v10 = vld [vmem:[#allocation11 + $0x35c] sm:$0xf0] }
  0x39   :  { %v5290_v11 = vld [vmem:[#allocation11 + $0x580] sm:$0xf]  ;;  %v5003_v20 = vor.u32 %v6756_v10, %v5002_v9 }
  0x3a   :  { %v6828_v12 = vld [vmem:[#allocation11 + $0x59c] sm:$0xf0]  ;;  %3562 = vmatpush.bf16.msra.mxu0 %v4747_v19 }
  0x3b   :  { %v5546_v13 = vld [vmem:[#allocation11 + $0x780] sm:$0xf]  ;;  %v5291_v15 = vor.u32 %v6828_v12, %v5290_v11  ;;  %3575 = vmatpush.bf16.msra.mxu1 %v5003_v20  ;;  %4580 = vmatmul.msk.bf16.vlgmr.msrb.gmra.mxu0 %vm232_vm0, %v7456_v44 }
  0x3c   :  { %v6892_v14 = vld [vmem:[#allocation11 + $0x79c] sm:$0xf0]  ;;  %4581 = vmatmul.msk.bf16.vlgmr.msrb.gmra.mxu1 %vm232_vm0, %v7456_v44 }
  0x3d   :  { %v5547_v16 = vor.u32 %v6892_v14, %v5546_v13  ;;  %v5258_v17 = vld [vmem:[#allocation11 + $0x540] sm:$0xf]  ;;  %3587 = vmatpush.bf16.msra.mxu2 %v5291_v15  ;;  %4583 = vmatmul.msk.bf16.vlgmr.msrb.gmra.mxu3 %vm232_vm0, %v7456_v44 }
  0x3e   :  { %v6820_v18 = vld [vmem:[#allocation11 + $0x55c] sm:$0xf0]  ;;  %4582 = vmatmul.msk.bf16.vlgmr.msrb.gmra.mxu2 %vm232_vm0, %v7456_v44 }
  0x3f   :  { %v5514_v21 = vld [vmem:[#allocation11 + $0x740] sm:$0xf]  ;;  %v5259_v23 = vor.u32 %v6820_v18, %v5258_v17  ;;  %3600 = vmatpush.bf16.msra.mxu3 %v5547_v16 }
  0x40   :  { %v6884_v22 = vld [vmem:[#allocation11 + $0x75c] sm:$0xf0] }
  0x41   :  { %v4714_v24 = vld [vmem:[#allocation11 + $0x100] sm:$0xf]  ;;  %v5515_v26 = vor.u32 %v6884_v22, %v5514_v21  ;;  %3588 = vmatpush.bf16.msra.mxu2 %v5259_v23 }
  0x42   :  { %v6684_v25 = vld [vmem:[#allocation11 + $0x11c] sm:$0xf0] }
  0x43   :  { %v4970_v27 = vld [vmem:[#allocation11 + $0x300] sm:$0xf]  ;;  %v4715_v33 = vor.u32 %v6684_v25, %v4714_v24  ;;  %3601 = vmatpush.bf16.msra.mxu3 %v5515_v26 }
  0x44   :  { %v6748_v28 = vld [vmem:[#allocation11 + $0x31c] sm:$0xf0] }
  0x45   :  { %v5226_v29 = vld [vmem:[#allocation11 + $0x500] sm:$0xf]  ;;  %v4971_v34 = vor.u32 %v6748_v28, %v4970_v27  ;;  %3563 = vmatpush.bf16.msra.mxu0 %v4715_v33 }
  0x46   :  { %v6812_v30 = vld [vmem:[#allocation11 + $0x51c] sm:$0xf0] }
  0x47   :  { %v5482_v31 = vld [vmem:[#allocation11 + $0x700] sm:$0xf]  ;;  %v5227_v39 = vor.u32 %v6812_v30, %v5226_v29  ;;  %3576 = vmatpush.bf16.msra.mxu1 %v4971_v34 }
  0x48   :  { %v6876_v32 = vld [vmem:[#allocation11 + $0x71c] sm:$0xf0] }
  0x49   :  { %v4682_v35 = vld [vmem:[#allocation11 + $0xc0] sm:$0xf]  ;;  %v5483_v40 = vor.u32 %v6876_v32, %v5482_v31  ;;  %3589 = vmatpush.bf16.msra.mxu2 %v5227_v39 }
  0x4a   :  { %v6676_v36 = vld [vmem:[#allocation11 + $0xdc] sm:$0xf0] }
  0x4b   :  { %v4938_v37 = vld [vmem:[#allocation11 + $0x2c0] sm:$0xf]  ;;  %v4683_v46 = vor.u32 %v6676_v36, %v4682_v35  ;;  %3602 = vmatpush.bf16.msra.mxu3 %v5483_v40 }
  0x4c   :  { %v6740_v38 = vld [vmem:[#allocation11 + $0x2dc] sm:$0xf0] }
  0x4d   :  { %v5194_v41 = vld [vmem:[#allocation11 + $0x4c0] sm:$0xf]  ;;  %v4939_v47 = vor.u32 %v6740_v38, %v4938_v37  ;;  %3564 = vmatpush.bf16.msra.mxu0 %v4683_v46 }
  0x4e   :  { %v6804_v42 = vld [vmem:[#allocation11 + $0x4dc] sm:$0xf0] }
  0x4f   :  { %v5450_v43 = vld [vmem:[#allocation11 + $0x6c0] sm:$0xf]  ;;  %v5195_v52 = vor.u32 %v6804_v42, %v5194_v41  ;;  %3577 = vmatpush.bf16.msra.mxu1 %v4939_v47 }
  0x50   :  { %v6868_v45 = vld [vmem:[#allocation11 + $0x6dc] sm:$0xf0] }
  0x51   :  { %v4650_v48 = vld [vmem:[#allocation11 + $0x80] sm:$0xf]  ;;  %v5451_v53 = vor.u32 %v6868_v45, %v5450_v43  ;;  %3590 = vmatpush.bf16.msra.mxu2 %v5195_v52 }
  0x52   :  { %v6668_v49 = vld [vmem:[#allocation11 + $0x9c] sm:$0xf0] }
  0x53   :  { %v4906_v50 = vld [vmem:[#allocation11 + $0x280] sm:$0xf]  ;;  %v4651_v58 = vor.u32 %v6668_v49, %v4650_v48  ;;  %3603 = vmatpush.bf16.msra.mxu3 %v5451_v53 }
  0x54   :  { %v6732_v51 = vld [vmem:[#allocation11 + $0x29c] sm:$0xf0] }
  0x55   :  { %v5162_v54 = vld [vmem:[#allocation11 + $0x480] sm:$0xf]  ;;  %v4907_v44 = vor.u32 %v6732_v51, %v4906_v50  ;;  %3565 = vmatpush.bf16.msra.mxu0 %v4651_v58 }
  0x56   :  { %v6796_v55 = vld [vmem:[#allocation11 + $0x49c] sm:$0xf0] }
  0x57   :  { %v5418_v56 = vld [vmem:[#allocation11 + $0x680] sm:$0xf]  ;;  %v5163_v63 = vor.u32 %v6796_v55, %v5162_v54  ;;  %3578 = vmatpush.bf16.msra.mxu1 %v4907_v44 }
  0x58   :  { %v6860_v57 = vld [vmem:[#allocation11 + $0x69c] sm:$0xf0] }
  0x59   :  { %v4618_v59 = vld [vmem:[#allocation11 + $0x40] sm:$0xf]  ;;  %v5419_v0 = vor.u32 %v6860_v57, %v5418_v56  ;;  %3591 = vmatpush.bf16.msra.mxu2 %v5163_v63 }
  0x5a   :  { %v6660_v60 = vld [vmem:[#allocation11 + $0x5c] sm:$0xf0] }
  0x5b   :  { %v4874_v61 = vld [vmem:[#allocation11 + $0x240] sm:$0xf]  ;;  %v4619_v6 = vor.u32 %v6660_v60, %v4618_v59  ;;  %3604 = vmatpush.bf16.msra.mxu3 %v5419_v0 }
  0x5c   :  { %v6724_v62 = vld [vmem:[#allocation11 + $0x25c] sm:$0xf0] }
  0x5d   :  { %v5130_v1 = vld [vmem:[#allocation11 + $0x440] sm:$0xf]  ;;  %v4875_v7 = vor.u32 %v6724_v62, %v4874_v61  ;;  %3566 = vmatpush.bf16.msra.mxu0 %v4619_v6 }
  0x5e   :  { %v6788_v2 = vld [vmem:[#allocation11 + $0x45c] sm:$0xf0] }
  0x5f   :  { %v5386_v3 = vld [vmem:[#allocation11 + $0x640] sm:$0xf]  ;;  %v5131_v14 = vor.u32 %v6788_v2, %v5130_v1  ;;  %3579 = vmatpush.bf16.msra.mxu1 %v4875_v7 }
  0x60   :  { %v6852_v4 = vld [vmem:[#allocation11 + $0x65c] sm:$0xf0] }
  0x61   :  { %v4586_v5 = vld [vmem:[#allocation11] sm:$0xf]  ;;  %v5387_v15 = vor.u32 %v6852_v4, %v5386_v3  ;;  %3592 = vmatpush.bf16.msra.mxu2 %v5131_v14 }
  0x62   :  { %v6652_v8 = vld [vmem:[#allocation11 + $0x1c] sm:$0xf0] }
  0x63   :  { %v4842_v9 = vld [vmem:[#allocation11 + $0x200] sm:$0xf]  ;;  %v4587_v22 = vor.u32 %v6652_v8, %v4586_v5  ;;  %3605 = vmatpush.bf16.msra.mxu3 %v5387_v15 }
  0x64   :  { %v6716_v10 = vld [vmem:[#allocation11 + $0x21c] sm:$0xf0] }
  0x65   :  { %v5834_v11 = vld [vmem:[#allocation11 + $0x9c0] sm:$0xf]  ;;  %v4843_v23 = vor.u32 %v6716_v10, %v4842_v9  ;;  %3567 = vmatpush.bf16.msra.mxu0 %v4587_v22 }
  0x66   :  { %v6964_v12 = vld [vmem:[#allocation11 + $0x9dc] sm:$0xf0] }
  0x67   :  { %v6090_v13 = vld [vmem:[#allocation11 + $0xbc0] sm:$0xf]  ;;  %v5835_v27 = vor.u32 %v6964_v12, %v5834_v11  ;;  %3580 = vmatpush.bf16.msra.mxu1 %v4843_v23 }
  0x68   :  { %v7028_v16 = vld [vmem:[#allocation11 + $0xbdc] sm:$0xf0] }
  0x69   :  { %v5098_v17 = vld [vmem:[#allocation11 + $0x400] sm:$0xf]  ;;  %v6091_v28 = vor.u32 %v7028_v16, %v6090_v13  ;;  %3612 = vmatpush.bf16.msrb.mxu0 %v5835_v27 }
  0x6a   :  { %v6780_v18 = vld [vmem:[#allocation11 + $0x41c] sm:$0xf0] }
  0x6b   :  { %v5354_v19 = vld [vmem:[#allocation11 + $0x600] sm:$0xf]  ;;  %v5099_v33 = vor.u32 %v6780_v18, %v5098_v17  ;;  %3625 = vmatpush.bf16.msrb.mxu1 %v6091_v28 }
  0x6c   :  { %v6844_v20 = vld [vmem:[#allocation11 + $0x61c] sm:$0xf0] }
  0x6d   :  { %v6346_v21 = vld [vmem:[#allocation11 + $0xdc0] sm:$0xf]  ;;  %v5355_v34 = vor.u32 %v6844_v20, %v5354_v19  ;;  %3593 = vmatpush.bf16.msra.mxu2 %v5099_v33  ;;  %v7474_v19 = vld [vmem:[#allocation9] sm:$0xff] }
  0x6e   :  { %v7092_v24 = vld [vmem:[#allocation11 + $0xddc] sm:$0xf0]  ;;  %v346_v33 = vperm.slane %v7474_v19, 0 }
  0x6f   :  { %v6602_v25 = vld [vmem:[#allocation11 + $0xfc0] sm:$0xf]  ;;  %v6347_v35 = vor.u32 %v7092_v24, %v6346_v21  ;;  %3606 = vmatpush.bf16.msra.mxu3 %v5355_v34  ;;  %v347_v34 = vperm.slane %v7474_v19, 1 }
  0x70   :  { %v7156_v26 = vld [vmem:[#allocation11 + $0xfdc] sm:$0xf0] }
  0x71   :  { %v5802_v29 = vld [vmem:[#allocation11 + $0x980] sm:$0xf]  ;;  %v6603_v36 = vor.u32 %v7156_v26, %v6602_v25  ;;  %3638 = vmatpush.bf16.msrb.mxu2 %v6347_v35 }
  0x72   :  { %v6956_v30 = vld [vmem:[#allocation11 + $0x99c] sm:$0xf0] }
  0x73   :  { %v6058_v31 = vld [vmem:[#allocation11 + $0xb80] sm:$0xf]  ;;  %v5803_v41 = vor.u32 %v6956_v30, %v5802_v29  ;;  %3651 = vmatpush.bf16.msrb.mxu3 %v6603_v36 }
  0x74   :  { %v7020_v32 = vld [vmem:[#allocation11 + $0xb9c] sm:$0xf0] }
  0x75   :  { %v6314_v37 = vld [vmem:[#allocation11 + $0xd80] sm:$0xf]  ;;  %v6059_v42 = vor.u32 %v7020_v32, %v6058_v31  ;;  %3613 = vmatpush.bf16.msrb.mxu0 %v5803_v41 }
  0x76   :  { %v7084_v38 = vld [vmem:[#allocation11 + $0xd9c] sm:$0xf0] }
  0x77   :  { %v6570_v39 = vld [vmem:[#allocation11 + $0xf80] sm:$0xf]  ;;  %v6315_v48 = vor.u32 %v7084_v38, %v6314_v37  ;;  %3626 = vmatpush.bf16.msrb.mxu1 %v6059_v42 }
  0x78   :  { %v7148_v40 = vld [vmem:[#allocation11 + $0xf9c] sm:$0xf0] }
  0x79   :  { %v5770_v43 = vld [vmem:[#allocation11 + $0x940] sm:$0xf]  ;;  %v6571_v49 = vor.u32 %v7148_v40, %v6570_v39  ;;  %3639 = vmatpush.bf16.msrb.mxu2 %v6315_v48  ;;  %v362_v48 = vpack.c.bf16 %v347_v34, %v346_v33  ;;  %v5068_v33 = vld [vmem:[#allocation11 + $0x3e0] sm:$0xf0] }
  0x7a   :  { %v6948_v45 = vld [vmem:[#allocation11 + $0x95c] sm:$0xf0] }
  0x7b   :  { %v6026_v46 = vld [vmem:[#allocation11 + $0xb40] sm:$0xf]  ;;  %v5771_v54 = vor.u32 %v6948_v45, %v5770_v43  ;;  %3652 = vmatpush.bf16.msrb.mxu3 %v6571_v49 }
  0x7c   :  { %v7012_v47 = vld [vmem:[#allocation11 + $0xb5c] sm:$0xf0] }
  0x7d   :  { %v6282_v50 = vld [vmem:[#allocation11 + $0xd40] sm:$0xf]  ;;  %v6027_v55 = vor.u32 %v7012_v47, %v6026_v46  ;;  %3614 = vmatpush.bf16.msrb.mxu0 %v5771_v54 }
  0x7e   :  { %v7076_v51 = vld [vmem:[#allocation11 + $0xd5c] sm:$0xf0] }
  0x7f   :  { %v6538_v52 = vld [vmem:[#allocation11 + $0xf40] sm:$0xf]  ;;  %v6283_v59 = vor.u32 %v7076_v51, %v6282_v50  ;;  %3627 = vmatpush.bf16.msrb.mxu1 %v6027_v55 }
  0x80   :  { %v7140_v53 = vld [vmem:[#allocation11 + $0xf5c] sm:$0xf0] }
  0x81   :  { %v5738_v56 = vld [vmem:[#allocation11 + $0x900] sm:$0xf]  ;;  %v6539_v60 = vor.u32 %v7140_v53, %v6538_v52  ;;  %3640 = vmatpush.bf16.msrb.mxu2 %v6283_v59  ;;  %v348_v52 = vperm.slane %v7474_v19, 2  ;;  %v349_v53 = vperm.slane %v7474_v19, 3 }
  0x82   :  { %v6940_v57 = vld [vmem:[#allocation11 + $0x91c] sm:$0xf0] }
  0x83   :  { %v5994_v58 = vld [vmem:[#allocation11 + $0xb00] sm:$0xf]  ;;  %v5739_v61 = vor.u32 %v6940_v57, %v5738_v56  ;;  %3653 = vmatpush.bf16.msrb.mxu3 %v6539_v60  ;;  %v371_v60 = vunpack.c.h.b16 %v362_v48 }
  0x84   :  { %v7004_v44 = vld [vmem:[#allocation11 + $0xb1c] sm:$0xf0] }
  0x85   :  { %v5995_v62 = vor.u32 %v7004_v44, %v5994_v58  ;;  %v5706_v63 = vld [vmem:[#allocation11 + $0x8c0] sm:$0xf]  ;;  %3615 = vmatpush.bf16.msrb.mxu0 %v5739_v61  ;;  %v370_v44 = vunpack.c.l.b16 %v362_v48  ;;  %v363_v61 = vpack.c.bf16 %v349_v53, %v348_v52 }
  0x86   :  { %v6932_v0 = vld [vmem:[#allocation11 + $0x8dc] sm:$0xf0] }
  0x87   :  { %v5962_v1 = vld [vmem:[#allocation11 + $0xac0] sm:$0xf]  ;;  %3628 = vmatpush.bf16.msrb.mxu1 %v5995_v62  ;;  %v5707_v3 = vor.u32 %v6932_v0, %v5706_v63  ;;  %v378_v62 = vpack.c.b16 %v370_v44, %v370_v44  ;;  %v379_v63 = vpack.c.b16 %v371_v60, %v371_v60  ;;  %v372_v0 = vunpack.c.l.b16 %v363_v61  ;;  %v6832_v44 = vld [vmem:[#allocation11 + $0x5c4] sm:$0xf] }
  0x88   :  { %v6996_v2 = vld [vmem:[#allocation11 + $0xadc] sm:$0xf0] }
  0x89   :  { %v5963_v4 = vor.u32 %v6996_v2, %v5962_v1  ;;  %3616 = vmatpush.bf16.msrb.mxu0 %v5707_v3  ;;  %v6250_v5 = vld [vmem:[#allocation11 + $0xd00] sm:$0xf]  ;;  %v373_v1 = vunpack.c.h.b16 %v363_v61  ;;  %v387_v2 = vpack.i.b16 %v378_v62, %v378_v62  ;;  %v391_v3 = vpack.i.b16 %v379_v63, %v379_v63  ;;  %v6896_v62 = vld [vmem:[#allocation11 + $0x7c4] sm:$0xf] }
  0x8a   :  { %v7068_v6 = vld [vmem:[#allocation11 + $0xd1c] sm:$0xf0]  ;;  %v5580_v63 = vld [vmem:[#allocation11 + $0x7e0] sm:$0xf0] }
  0x8b   :  { %3629 = vmatpush.bf16.msrb.mxu1 %v5963_v4  ;;  %v6506_v7 = vld [vmem:[#allocation11 + $0xf00] sm:$0xf]  ;;  %v6251_v8 = vor.u32 %v7068_v6, %v6250_v5  ;;  %v350_v4 = vperm.slane %v7474_v19, 4  ;;  %v351_v5 = vperm.slane %v7474_v19, 5  ;;  %v380_v6 = vpack.c.b16 %v372_v0, %v372_v0  ;;  %v6688_v0 = vld [vmem:[#allocation11 + $0x144] sm:$0xf] }
  0x8c   :  { %v7132_v9 = vld [vmem:[#allocation11 + $0xf1c] sm:$0xf0] }
  0x8d   :  { %v6507_v10 = vor.u32 %v7132_v9, %v6506_v7  ;;  %v5674_v11 = vld [vmem:[#allocation11 + $0x880] sm:$0xf]  ;;  %3641 = vmatpush.bf16.msrb.mxu2 %v6251_v8  ;;  %v381_v7 = vpack.c.b16 %v373_v1, %v373_v1  ;;  %v389_v8 = vperm.slane %v387_v2, 0  ;;  %v393_v9 = vperm.slane %v391_v3, 0 }
  0x8e   :  { %v6924_v12 = vld [vmem:[#allocation11 + $0x89c] sm:$0xf0] }
  0x8f   :  { %v5930_v13 = vld [vmem:[#allocation11 + $0xa80] sm:$0xf]  ;;  %v5675_v14 = vor.u32 %v6924_v12, %v5674_v11  ;;  %3654 = vmatpush.bf16.msrb.mxu3 %v6507_v10  ;;  %v364_v10 = vpack.c.bf16 %v351_v5, %v350_v4  ;;  %v395_v11 = vpack.i.b16 %v380_v6, %v380_v6  ;;  %v399_v12 = vpack.i.b16 %v381_v7, %v381_v7  ;;  %v4748_v4 = vld [vmem:[#allocation11 + $0x160] sm:$0xf0] }
  0x90   :  { %v6988_v15 = vld [vmem:[#allocation11 + $0xa9c] sm:$0xf0]  ;;  %v6752_v5 = vld [vmem:[#allocation11 + $0x344] sm:$0xf] }
  0x91   :  { %v5931_v16 = vor.u32 %v6988_v15, %v5930_v13  ;;  %v6218_v17 = vld [vmem:[#allocation11 + $0xcc0] sm:$0xf]  ;;  %3617 = vmatpush.bf16.msrb.mxu0 %v5675_v14  ;;  %v352_v13 = vperm.slane %v7474_v19, 6  ;;  %v353_v14 = vperm.slane %v7474_v19, 7  ;;  %v5004_v6 = vld [vmem:[#allocation11 + $0x360] sm:$0xf0] }
  0x92   :  { %v7060_v18 = vld [vmem:[#allocation11 + $0xcdc] sm:$0xf0] }
  0x93   :  { %v6219_v20 = vor.u32 %v7060_v18, %v6218_v17  ;;  %v6474_v21 = vld [vmem:[#allocation11 + $0xec0] sm:$0xf]  ;;  %3630 = vmatpush.bf16.msrb.mxu1 %v5931_v16  ;;  %v426_v17 = vunpack.c.l.bf16 %v389_v8 }
  0x94   :  { %v7124_v22 = vld [vmem:[#allocation11 + $0xedc] sm:$0xf0] }
  0x95   :  { %v6475_v23 = vor.u32 %v7124_v22, %v6474_v21  ;;  %v5642_v24 = vld [vmem:[#allocation11 + $0x840] sm:$0xf]  ;;  %3642 = vmatpush.bf16.msrb.mxu2 %v6219_v20  ;;  %v427_v20 = vunpack.c.l.bf16 %v393_v9  ;;  %v374_v21 = vunpack.c.l.b16 %v364_v10  ;;  %v375_v22 = vunpack.c.h.b16 %v364_v10 }
  0x96   :  { %v6916_v25 = vld [vmem:[#allocation11 + $0x85c] sm:$0xf0] }
  0x97   :  { %v5898_v26 = vld [vmem:[#allocation11 + $0xa40] sm:$0xf]  ;;  %v5643_v27 = vor.u32 %v6916_v25, %v5642_v24  ;;  %3655 = vmatpush.bf16.msrb.mxu3 %v6475_v23  ;;  %v397_v23 = vperm.slane %v395_v11, 0  ;;  %v382_v34 = vpack.c.b16 %v374_v21, %v374_v21  ;;  %v383_v19 = vpack.c.b16 %v375_v22, %v375_v22 }
  0x98   :  { %v6980_v28 = vld [vmem:[#allocation11 + $0xa5c] sm:$0xf0] }
  0x99   :  { %v5899_v29 = vor.u32 %v6980_v28, %v5898_v26  ;;  %v6186_v30 = vld [vmem:[#allocation11 + $0xc80] sm:$0xf]  ;;  %3618 = vmatpush.bf16.msrb.mxu0 %v5643_v27  ;;  %v401_v26 = vperm.slane %v399_v12, 0  ;;  %v365_v27 = vpack.c.bf16 %v353_v14, %v352_v13  ;;  %v6704_v28 = vld [vmem:[#allocation11 + $0x1c4] sm:$0xf] }
  0x9a   :  { %v7052_v31 = vld [vmem:[#allocation11 + $0xc9c] sm:$0xf0] }
  0x9b   :  { %v6442_v32 = vld [vmem:[#allocation11 + $0xe80] sm:$0xf]  ;;  %v6187_v35 = vor.u32 %v7052_v31, %v6186_v30  ;;  %3631 = vmatpush.bf16.msrb.mxu1 %v5899_v29  ;;  %v4812_v31 = vld [vmem:[#allocation11 + $0x1e0] sm:$0xf0]  ;;  %v377_v52 = vunpack.c.h.b16 %v365_v27 }
  0x9c   :  { %v7116_v36 = vld [vmem:[#allocation11 + $0xe9c] sm:$0xf0] }
  0x9d   :  { %v6443_v37 = vor.u32 %v7116_v36, %v6442_v32  ;;  %v5610_v38 = vld [vmem:[#allocation11 + $0x800] sm:$0xf]  ;;  %3643 = vmatpush.bf16.msrb.mxu2 %v6187_v35  ;;  %v6768_v32 = vld [vmem:[#allocation11 + $0x3c4] sm:$0xf]  ;;  %v428_v35 = vunpack.c.l.bf16 %v397_v23  ;;  %v385_v7 = vpack.c.b16 %v377_v52, %v377_v52 }
  0x9e   :  { %v6908_v39 = vld [vmem:[#allocation11 + $0x81c] sm:$0xf0]  ;;  %v5071_v48 = vor.u32 %v6768_v32, %v5068_v33  ;;  %v4716_v33 = vld [vmem:[#allocation11 + $0x120] sm:$0xf0] }
  0x9f   :  { %v5866_v40 = vld [vmem:[#allocation11 + $0xa00] sm:$0xf]  ;;  %v5611_v41 = vor.u32 %v6908_v39, %v5610_v38  ;;  %3656 = vmatpush.bf16.msrb.mxu3 %v6443_v37  ;;  %v6736_v52 = vld [vmem:[#allocation11 + $0x2c4] sm:$0xf] }
  0xa0   :  { %v6972_v42 = vld [vmem:[#allocation11 + $0xa1c] sm:$0xf0] }
  0xa1   :  { %v5867_v43 = vor.u32 %v6972_v42, %v5866_v40  ;;  %3619 = vmatpush.bf16.msrb.mxu0 %v5611_v41  ;;  %v6154_v45 = vld [vmem:[#allocation11 + $0xc40] sm:$0xf]  ;;  %v429_v40 = vunpack.c.l.bf16 %v401_v26  ;;  %v6696_v41 = vld [vmem:[#allocation11 + $0x184] sm:$0xf]  ;;  %v376_v42 = vunpack.c.l.b16 %v365_v27 }
  0xa2   :  { %v7044_v46 = vld [vmem:[#allocation11 + $0xc5c] sm:$0xf0]  ;;  %v6888_v26 = vld [vmem:[#allocation11 + $0x784] sm:$0xf] }
  0xa3   :  { %v6410_v47 = vld [vmem:[#allocation11 + $0xe40] sm:$0xf]  ;;  %3632 = vmatpush.bf16.msrb.mxu1 %v5867_v43  ;;  %v6155_v49 = vor.u32 %v7044_v46, %v6154_v45  ;;  %v384_v1 = vpack.c.b16 %v376_v42, %v376_v42  ;;  %v5548_v27 = vld [vmem:[#allocation11 + $0x7a0] sm:$0xf0] }
  0xa4   :  { %v7108_v50 = vld [vmem:[#allocation11 + $0xe5c] sm:$0xf0] }
  0xa5   :  { %v6411_v51 = vor.u32 %v7108_v50, %v6410_v47  ;;  %3644 = vmatpush.bf16.msrb.mxu2 %v6155_v49  ;;  %v6122_v54 = vld [vmem:[#allocation11 + $0xc00] sm:$0xf]  ;;  %v4815_v47 = vor.u32 %v6704_v28, %v4812_v31  ;;  %v4780_v49 = vld [vmem:[#allocation11 + $0x1a0] sm:$0xf0]  ;;  %v411_v21 = vpack.i.b16 %v384_v1, %v384_v1  ;;  %v415_v28 = vpack.i.b16 %v385_v7, %v385_v7 }
  0xa6   :  { %v7036_v55 = vld [vmem:[#allocation11 + $0xc1c] sm:$0xf0]  ;;  %v6760_v50 = vld [vmem:[#allocation11 + $0x384] sm:$0xf]  ;;  %v4783_v60 = vor.u32 %v6696_v41, %v4780_v49 }
  0xa7   :  { %3657 = vmatpush.bf16.msrb.mxu3 %v6411_v51  ;;  %v6123_v56 = vor.u32 %v7036_v55, %v6122_v54  ;;  %v6378_v57 = vld [vmem:[#allocation11 + $0xe00] sm:$0xf]  ;;  %v5036_v51 = vld [vmem:[#allocation11 + $0x3a0] sm:$0xf0]  ;;  %v403_v55 = vpack.i.b16 %v382_v34, %v382_v34  ;;  %v413_v41 = vperm.slane %v411_v21, 0  ;;  %v417_v42 = vperm.slane %v415_v28, 0 }
  0xa8   :  { %v7100_v58 = vld [vmem:[#allocation11 + $0xe1c] sm:$0xf0]  ;;  %v245_v15 = vpop.f32.mrf.mxu0  ;;  %v5039_v61 = vor.u32 %v6760_v50, %v5036_v51  ;;  %v6744_v34 = vld [vmem:[#allocation11 + $0x304] sm:$0xf] }
  0xa9   :  { %v6379_v59 = vor.u32 %v7100_v58, %v6378_v57  ;;  %3645 = vmatpush.bf16.msrb.mxu2 %v6123_v56  ;;  %v258_v16 = vpop.f32.mrf.mxu1  ;;  %v407_v56 = vpack.i.b16 %v383_v19, %v383_v19  ;;  %v405_v8 = vperm.slane %v403_v55, 0  ;;  %v4972_v19 = vld [vmem:[#allocation11 + $0x320] sm:$0xf0] }
  0xaa   :  { %v340_v18 = vpack.c.bf16 %v258_v16, %v245_v15  ;;  %v5583_v15 = vor.u32 %v6896_v62, %v5580_v63  ;;  %v4751_v16 = vor.u32 %v6688_v0, %v4748_v4  ;;  %v6672_v50 = vld [vmem:[#allocation11 + $0xc4] sm:$0xf]  ;;  %v432_v63 = vunpack.c.l.bf16 %v413_v41 }
  0xab   :  { %3658 = vmatpush.bf16.msrb.mxu3 %v6379_v59  ;;  %v5324_v59 = vld [vmem:[#allocation11 + $0x5e0] sm:$0xf0]  ;;  %v409_v9 = vperm.slane %v407_v56, 0  ;;  %v430_v31 = vunpack.c.l.bf16 %v405_v8  ;;  %v433_v0 = vunpack.c.l.bf16 %v417_v42 }
  0xac   :  { %v418_v24 = vunpack.c.l.bf16 %v340_v18  ;;  %v419_v25 = vunpack.c.h.bf16 %v340_v18  ;;  %v5327_v12 = vor.u32 %v6832_v44, %v5324_v59  ;;  %v6824_v18 = vld [vmem:[#allocation11 + $0x584] sm:$0xf] }
  0xad   :  { %v431_v32 = vunpack.c.l.bf16 %v409_v9  ;;  %v4684_v51 = vld [vmem:[#allocation11 + $0xe0] sm:$0xf0] }
  0xae   :  { %v434_v29 = vadd.f32 %v426_v17, %v418_v24  ;;  %v435_v30 = vadd.f32 %v427_v20, %v419_v25  ;;  %v5007_v17 = vor.u32 %v6752_v5, %v5004_v6  ;;  %v5292_v20 = vld [vmem:[#allocation11 + $0x5a0] sm:$0xf0]  ;;  %v4687_v8 = vor.u32 %v6672_v50, %v4684_v51 }
  0xaf   :  { %v4940_v55 = vld [vmem:[#allocation11 + $0x2e0] sm:$0xf0] }
  0xb0   :  { %v454_v36 = vmax.f32 %v434_v29, 0.0  ;;  %v455_v37 = vmax.f32 %v435_v30, 0.0  ;;  %v271_v38 = vpop.f32.mrf.mxu2  ;;  %v284_v39 = vpop.f32.mrf.mxu3  ;;  %v6680_v29 = vld [vmem:[#allocation11 + $0x104] sm:$0xf]  ;;  %v4943_v9 = vor.u32 %v6736_v52, %v4940_v55 }
  0xb1   :  { %v341_v43 = vpack.c.bf16 %v284_v39, %v271_v38  ;;  %v247_v45 = vpop.f32.mrf.mxu0  ;;  %v260_v46 = vpop.f32.mrf.mxu1  ;;  %v5551_v38 = vor.u32 %v6888_v26, %v5548_v27  ;;  %v6816_v39 = vld [vmem:[#allocation11 + $0x544] sm:$0xf] }
  0xb2   :  { %v7484_v53 = vpack.c.bf16 %v454_v36, %v454_v36  ;;  %v7486_v54 = vpack.c.bf16 %v455_v37, %v455_v37  ;;  %v5295_v37 = vor.u32 %v6824_v18, %v5292_v20  ;;  %v4975_v45 = vor.u32 %v6744_v34, %v4972_v19  ;;  %v6880_v46 = vld [vmem:[#allocation11 + $0x744] sm:$0xf] }
  0xb3   :  { %v420_v57 = vunpack.c.l.bf16 %v341_v43  ;;  %v421_v58 = vunpack.c.h.bf16 %v341_v43  ;;  %v4719_v43 = vor.u32 %v6680_v29, %v4716_v33  ;;  %v5228_v1 = vld [vmem:[#allocation11 + $0x520] sm:$0xf0] }
  0xb4   :  { %3568 = vmatmul.bf16.vlgmr.msra.gmra.mxu0 %v7484_v53  ;;  %3581 = vmatmul.bf16.vlgmr.msra.gmra.mxu1 %v7486_v54  ;;  %v6800_v18 = vld [vmem:[#allocation11 + $0x4c4] sm:$0xf] }
  0xb5   :  { %v436_v2 = vadd.f32 %v428_v35, %v420_v57  ;;  %v437_v3 = vadd.f32 %v429_v40, %v421_v58  ;;  %3664 = vmatpush.bf16.msra.mxu0 %v4815_v47  ;;  %3677 = vmatpush.bf16.msra.mxu1 %v5071_v48  ;;  %v5260_v40 = vld [vmem:[#allocation11 + $0x560] sm:$0xf0] }
  0xb6   :  { %v5516_v47 = vld [vmem:[#allocation11 + $0x760] sm:$0xf0]  ;;  %v5263_v59 = vor.u32 %v6816_v39, %v5260_v40 }
  0xb7   :  { %v456_v10 = vmax.f32 %v436_v2, 0.0  ;;  %v457_v11 = vmax.f32 %v437_v3, 0.0  ;;  %v6872_v2 = vld [vmem:[#allocation11 + $0x704] sm:$0xf] }
  0xb8   :  { %v273_v13 = vpop.f32.mrf.mxu2  ;;  %v286_v14 = vpop.f32.mrf.mxu3  ;;  %v5484_v3 = vld [vmem:[#allocation11 + $0x720] sm:$0xf0] }
  0xb9   :  { %v7490_v22 = vpack.c.bf16 %v456_v10, %v456_v10  ;;  %v7492_v23 = vpack.c.bf16 %v457_v11, %v457_v11  ;;  %3665 = vmatpush.bf16.msra.mxu0 %v4783_v60  ;;  %3678 = vmatpush.bf16.msra.mxu1 %v5039_v61  ;;  %v297_v24 = vpop.f32.mrf.mxu0  ;;  %v310_v25 = vpop.f32.mrf.mxu1  ;;  %v5519_v60 = vor.u32 %v6880_v46, %v5516_v47  ;;  %v6808_v61 = vld [vmem:[#allocation11 + $0x504] sm:$0xf] }
  0xba   :  { %v342_v30 = vpack.c.bf16 %v310_v25, %v297_v24  ;;  %v6664_v10 = vld [vmem:[#allocation11 + $0x84] sm:$0xf] }
  0xbb   :  { %3594 = vmatmul.bf16.vlgmr.msra.gmra.mxu2 %v7490_v22  ;;  %3607 = vmatmul.bf16.vlgmr.msra.gmra.mxu3 %v7492_v23  ;;  %v4652_v13 = vld [vmem:[#allocation11 + $0xa0] sm:$0xf0] }
  0xbc   :  { %v422_v35 = vunpack.c.l.bf16 %v342_v30  ;;  %v423_v36 = vunpack.c.h.bf16 %v342_v30  ;;  %3690 = vmatpush.bf16.msra.mxu2 %v5327_v12  ;;  %3703 = vmatpush.bf16.msra.mxu3 %v5583_v15  ;;  %v6728_v14 = vld [vmem:[#allocation11 + $0x284] sm:$0xf]  ;;  %v4655_v27 = vor.u32 %v6664_v10, %v4652_v13 }
  0xbd   :  { %3666 = vmatpush.bf16.msra.mxu0 %v4751_v16  ;;  %3679 = vmatpush.bf16.msra.mxu1 %v5007_v17  ;;  %v4908_v15 = vld [vmem:[#allocation11 + $0x2a0] sm:$0xf0]  ;;  %v5231_v16 = vor.u32 %v6808_v61, %v5228_v1  ;;  %v5487_v17 = vor.u32 %v6872_v2, %v5484_v3 }
  0xbe   :  { %v438_v48 = vadd.f32 %v430_v31, %v422_v35  ;;  %v439_v49 = vadd.f32 %v431_v32, %v423_v36  ;;  %v5196_v24 = vld [vmem:[#allocation11 + $0x4e0] sm:$0xf0]  ;;  %v4911_v28 = vor.u32 %v6728_v14, %v4908_v15 }
  0xbf   :  { %v6864_v25 = vld [vmem:[#allocation11 + $0x6c4] sm:$0xf]  ;;  %v5199_v19 = vor.u32 %v6800_v18, %v5196_v24 }
  0xc0   :  { %v458_v56 = vmax.f32 %v438_v48, 0.0  ;;  %v459_v57 = vmax.f32 %v439_v49, 0.0  ;;  %3691 = vmatpush.bf16.msra.mxu2 %v5295_v37  ;;  %3704 = vmatpush.bf16.msra.mxu3 %v5551_v38  ;;  %v336_v44 = vpop.f32.mrf.mxu3  ;;  %v5452_v26 = vld [vmem:[#allocation11 + $0x6e0] sm:$0xf0] }
  0xc1   :  { %v323_v58 = vpop.f32.mrf.mxu2  ;;  %3667 = vmatpush.bf16.msra.mxu0 %v4719_v43  ;;  %3680 = vmatpush.bf16.msra.mxu1 %v4975_v45  ;;  %v299_v4 = vpop.f32.mrf.mxu0  ;;  %v6656_v29 = vld [vmem:[#allocation11 + $0x44] sm:$0xf]  ;;  %v5455_v35 = vor.u32 %v6864_v25, %v5452_v26 }
  0xc2   :  { %v343_v62 = vpack.c.bf16 %v336_v44, %v323_v58  ;;  %v312_v5 = vpop.f32.mrf.mxu1  ;;  %v7496_v6 = vpack.c.bf16 %v458_v56, %v458_v56  ;;  %v7498_v7 = vpack.c.bf16 %v459_v57, %v459_v57  ;;  %v4620_v30 = vld [vmem:[#allocation11 + $0x60] sm:$0xf0] }
  0xc3   :  { %v6720_v33 = vld [vmem:[#allocation11 + $0x244] sm:$0xf]  ;;  %v4623_v45 = vor.u32 %v6656_v29, %v4620_v30 }
  0xc4   :  { %v424_v11 = vunpack.c.l.bf16 %v343_v62  ;;  %v425_v12 = vunpack.c.h.bf16 %v343_v62  ;;  %3692 = vmatpush.bf16.msra.mxu2 %v5263_v59  ;;  %3705 = vmatpush.bf16.msra.mxu3 %v5519_v60  ;;  %v4876_v34 = vld [vmem:[#allocation11 + $0x260] sm:$0xf0] }
  0xc5   :  { %3620 = vmatmul.bf16.vlgmr.msrb.gmra.mxu0 %v7496_v6  ;;  %3633 = vmatmul.bf16.vlgmr.msrb.gmra.mxu1 %v7498_v7  ;;  %v6792_v38 = vld [vmem:[#allocation11 + $0x484] sm:$0xf]  ;;  %v4879_v46 = vor.u32 %v6720_v33, %v4876_v34 }
  0xc6   :  { %v440_v20 = vadd.f32 %v432_v63, %v424_v11  ;;  %v441_v21 = vadd.f32 %v433_v0, %v425_v12  ;;  %3668 = vmatpush.bf16.msra.mxu0 %v4687_v8  ;;  %3681 = vmatpush.bf16.msra.mxu1 %v4943_v9  ;;  %v5164_v41 = vld [vmem:[#allocation11 + $0x4a0] sm:$0xf0] }
  0xc7   :  { %v6856_v42 = vld [vmem:[#allocation11 + $0x684] sm:$0xf]  ;;  %v5167_v55 = vor.u32 %v6792_v38, %v5164_v41 }
  0xc8   :  { %v460_v31 = vmax.f32 %v440_v20, 0.0  ;;  %v461_v32 = vmax.f32 %v441_v21, 0.0  ;;  %3693 = vmatpush.bf16.msra.mxu2 %v5231_v16  ;;  %3706 = vmatpush.bf16.msra.mxu3 %v5487_v17  ;;  %v338_v37 = vpop.f32.mrf.mxu3  ;;  %v5420_v43 = vld [vmem:[#allocation11 + $0x6a0] sm:$0xf0] }
  0xc9   :  { %v325_v36 = vpop.f32.mrf.mxu2  ;;  %v6648_v47 = vld [vmem:[#allocation11 + $0x4] sm:$0xf]  ;;  %v5423_v56 = vor.u32 %v6856_v42, %v5420_v43 }
  0xca   :  { %v7502_v39 = vpack.c.bf16 %v460_v31, %v460_v31  ;;  %v7504_v40 = vpack.c.bf16 %v461_v32, %v461_v32  ;;  %3669 = vmatpush.bf16.msra.mxu0 %v4655_v27  ;;  %3682 = vmatpush.bf16.msra.mxu1 %v4911_v28  ;;  %v4588_v48 = vld [vmem:[#allocation11 + $0x20] sm:$0xf0] }
  0xcb   :  { %v6712_v49 = vld [vmem:[#allocation11 + $0x204] sm:$0xf]  ;;  %v4591_v62 = vor.u32 %v6648_v47, %v4588_v48 }
  0xcc   :  { %3646 = vmatmul.bf16.vlgmr.msrb.gmra.mxu2 %v7502_v39  ;;  %3659 = vmatmul.bf16.vlgmr.msrb.gmra.mxu3 %v7504_v40  ;;  %v4844_v50 = vld [vmem:[#allocation11 + $0x220] sm:$0xf0] }
  0xcd   :  { %v6960_v51 = vld [vmem:[#allocation11 + $0x9c4] sm:$0xf]  ;;  %3694 = vmatpush.bf16.msra.mxu2 %v5199_v19  ;;  %3707 = vmatpush.bf16.msra.mxu3 %v5455_v35  ;;  %v4847_v63 = vor.u32 %v6712_v49, %v4844_v50 }
  0xce   :  { %v5836_v52 = vld [vmem:[#allocation11 + $0x9e0] sm:$0xf0]  ;;  %3670 = vmatpush.bf16.msra.mxu0 %v4623_v45  ;;  %3683 = vmatpush.bf16.msra.mxu1 %v4879_v46 }
  0xcf   :  { %v7024_v57 = vld [vmem:[#allocation11 + $0xbc4] sm:$0xf]  ;;  %v5839_v0 = vor.u32 %v6960_v51, %v5836_v52 }
  0xd0   :  { %v6092_v58 = vld [vmem:[#allocation11 + $0xbe0] sm:$0xf0] }
  0xd1   :  { %v6784_v44 = vld [vmem:[#allocation11 + $0x444] sm:$0xf]  ;;  %v6095_v1 = vor.u32 %v7024_v57, %v6092_v58  ;;  %3695 = vmatpush.bf16.msra.mxu2 %v5167_v55  ;;  %3708 = vmatpush.bf16.msra.mxu3 %v5423_v56 }
  0xd2   :  { %v5132_v59 = vld [vmem:[#allocation11 + $0x460] sm:$0xf0]  ;;  %3671 = vmatpush.bf16.msra.mxu0 %v4591_v62  ;;  %3684 = vmatpush.bf16.msra.mxu1 %v4847_v63 }
  0xd3   :  { %v6848_v60 = vld [vmem:[#allocation11 + $0x644] sm:$0xf]  ;;  %v5135_v5 = vor.u32 %v6784_v44, %v5132_v59 }
  0xd4   :  { %v5388_v61 = vld [vmem:[#allocation11 + $0x660] sm:$0xf0] }
  0xd5   :  { %v6952_v2 = vld [vmem:[#allocation11 + $0x984] sm:$0xf]  ;;  %v5391_v8 = vor.u32 %v6848_v60, %v5388_v61  ;;  %3696 = vmatpush.bf16.msra.mxu2 %v5135_v5  ;;  %3672 = vmatmul.bf16.vlgmr.msra.gmra.mxu0 %v7484_v53 }
  0xd6   :  { %v5804_v3 = vld [vmem:[#allocation11 + $0x9a0] sm:$0xf0]  ;;  %3716 = vmatpush.bf16.msrb.mxu0 %v5839_v0  ;;  %3729 = vmatpush.bf16.msrb.mxu1 %v6095_v1 }
  0xd7   :  { %v7016_v4 = vld [vmem:[#allocation11 + $0xb84] sm:$0xf]  ;;  %v5807_v18 = vor.u32 %v6952_v2, %v5804_v3  ;;  %3709 = vmatpush.bf16.msra.mxu3 %v5391_v8  ;;  %3685 = vmatmul.bf16.vlgmr.msra.gmra.mxu1 %v7486_v54 }
  0xd8   :  { %v6060_v9 = vld [vmem:[#allocation11 + $0xba0] sm:$0xf0] }
  0xd9   :  { %v6776_v10 = vld [vmem:[#allocation11 + $0x404] sm:$0xf]  ;;  %v6063_v20 = vor.u32 %v7016_v4, %v6060_v9 }
  0xda   :  { %v5100_v11 = vld [vmem:[#allocation11 + $0x420] sm:$0xf0]  ;;  %3717 = vmatpush.bf16.msrb.mxu0 %v5807_v18 }
  0xdb   :  { %v6840_v12 = vld [vmem:[#allocation11 + $0x604] sm:$0xf]  ;;  %v5103_v24 = vor.u32 %v6776_v10, %v5100_v11  ;;  %3730 = vmatpush.bf16.msrb.mxu1 %v6063_v20 }
  0xdc   :  { %v5356_v13 = vld [vmem:[#allocation11 + $0x620] sm:$0xf0] }
  0xdd   :  { %v7088_v14 = vld [vmem:[#allocation11 + $0xdc4] sm:$0xf]  ;;  %v5359_v25 = vor.u32 %v6840_v12, %v5356_v13  ;;  %3697 = vmatpush.bf16.msra.mxu2 %v5103_v24 }
  0xde   :  { %v6348_v15 = vld [vmem:[#allocation11 + $0xde0] sm:$0xf0] }
  0xdf   :  { %v7152_v16 = vld [vmem:[#allocation11 + $0xfc4] sm:$0xf]  ;;  %v6351_v29 = vor.u32 %v7088_v14, %v6348_v15  ;;  %3710 = vmatpush.bf16.msra.mxu3 %v5359_v25 }
  0xe0   :  { %v6604_v17 = vld [vmem:[#allocation11 + $0xfe0] sm:$0xf0]  ;;  %3698 = vmatmul.bf16.vlgmr.msra.gmra.mxu2 %v7490_v22 }
  0xe1   :  { %v6944_v21 = vld [vmem:[#allocation11 + $0x944] sm:$0xf]  ;;  %v6607_v30 = vor.u32 %v7152_v16, %v6604_v17  ;;  %3742 = vmatpush.bf16.msrb.mxu2 %v6351_v29 }
  0xe2   :  { %v5772_v26 = vld [vmem:[#allocation11 + $0x960] sm:$0xf0]  ;;  %3711 = vmatmul.bf16.vlgmr.msra.gmra.mxu3 %v7492_v23 }
  0xe3   :  { %v7008_v27 = vld [vmem:[#allocation11 + $0xb44] sm:$0xf]  ;;  %v5775_v19 = vor.u32 %v6944_v21, %v5772_v26  ;;  %3755 = vmatpush.bf16.msrb.mxu3 %v6607_v30 }
  0xe4   :  { %v6028_v28 = vld [vmem:[#allocation11 + $0xb60] sm:$0xf0] }
  0xe5   :  { %v7080_v31 = vld [vmem:[#allocation11 + $0xd84] sm:$0xf]  ;;  %v6031_v35 = vor.u32 %v7008_v27, %v6028_v28  ;;  %3718 = vmatpush.bf16.msrb.mxu0 %v5775_v19 }
  0xe6   :  { %v6316_v32 = vld [vmem:[#allocation11 + $0xda0] sm:$0xf0] }
  0xe7   :  { %v7144_v33 = vld [vmem:[#allocation11 + $0xf84] sm:$0xf]  ;;  %v6319_v42 = vor.u32 %v7080_v31, %v6316_v32  ;;  %3731 = vmatpush.bf16.msrb.mxu1 %v6031_v35 }
  0xe8   :  { %v6572_v34 = vld [vmem:[#allocation11 + $0xfa0] sm:$0xf0] }
  0xe9   :  { %v6936_v36 = vld [vmem:[#allocation11 + $0x904] sm:$0xf]  ;;  %v6575_v43 = vor.u32 %v7144_v33, %v6572_v34  ;;  %3743 = vmatpush.bf16.msrb.mxu2 %v6319_v42  ;;  %v4818_v33 = vld [vmem:[#allocation11 + $0x1c8] sm:$0xf] }
  0xea   :  { %v5740_v37 = vld [vmem:[#allocation11 + $0x920] sm:$0xf0]  ;;  %v6709_v34 = vld [vmem:[#allocation11 + $0x1e4] sm:$0xf0] }
  0xeb   :  { %v7000_v38 = vld [vmem:[#allocation11 + $0xb04] sm:$0xf]  ;;  %v5743_v49 = vor.u32 %v6936_v36, %v5740_v37  ;;  %3756 = vmatpush.bf16.msrb.mxu3 %v6575_v43  ;;  %v5074_v36 = vld [vmem:[#allocation11 + $0x3c8] sm:$0xf] }
  0xec   :  { %v5996_v41 = vld [vmem:[#allocation11 + $0xb20] sm:$0xf0]  ;;  %v6773_v37 = vld [vmem:[#allocation11 + $0x3e4] sm:$0xf0] }
  0xed   :  { %v7072_v45 = vld [vmem:[#allocation11 + $0xd44] sm:$0xf]  ;;  %v5999_v50 = vor.u32 %v7000_v38, %v5996_v41  ;;  %3719 = vmatpush.bf16.msrb.mxu0 %v5743_v49  ;;  %v4786_v49 = vld [vmem:[#allocation11 + $0x188] sm:$0xf] }
  0xee   :  { %v6284_v46 = vld [vmem:[#allocation11 + $0xd60] sm:$0xf0] }
  0xef   :  { %v7136_v47 = vld [vmem:[#allocation11 + $0xf44] sm:$0xf]  ;;  %v6287_v57 = vor.u32 %v7072_v45, %v6284_v46  ;;  %3732 = vmatpush.bf16.msrb.mxu1 %v5999_v50  ;;  %v6701_v50 = vld [vmem:[#allocation11 + $0x1a4] sm:$0xf0] }
  0xf0   :  { %v6540_v48 = vld [vmem:[#allocation11 + $0xf60] sm:$0xf0] }
  0xf1   :  { %v6928_v51 = vld [vmem:[#allocation11 + $0x8c4] sm:$0xf]  ;;  %v6543_v58 = vor.u32 %v7136_v47, %v6540_v48  ;;  %3744 = vmatpush.bf16.msrb.mxu2 %v6287_v57  ;;  %v4819_v47 = vor.u32 %v6709_v34, %v4818_v33  ;;  %v5075_v48 = vor.u32 %v6773_v37, %v5074_v36  ;;  %v4690_v33 = vld [vmem:[#allocation11 + $0xc8] sm:$0xf] }
  0xf2   :  { %v5708_v52 = vld [vmem:[#allocation11 + $0x8e0] sm:$0xf0]  ;;  %v6677_v34 = vld [vmem:[#allocation11 + $0xe4] sm:$0xf0] }
  0xf3   :  { %v6992_v55 = vld [vmem:[#allocation11 + $0xac4] sm:$0xf]  ;;  %v5711_v62 = vor.u32 %v6928_v51, %v5708_v52  ;;  %3757 = vmatpush.bf16.msrb.mxu3 %v6543_v58  ;;  %v5042_v51 = vld [vmem:[#allocation11 + $0x388] sm:$0xf] }
  0xf4   :  { %v5964_v56 = vld [vmem:[#allocation11 + $0xae0] sm:$0xf0]  ;;  %v4946_v36 = vld [vmem:[#allocation11 + $0x2c8] sm:$0xf] }
  0xf5   :  { %v7064_v44 = vld [vmem:[#allocation11 + $0xd04] sm:$0xf]  ;;  %v5967_v63 = vor.u32 %v6992_v55, %v5964_v56  ;;  %3720 = vmatpush.bf16.msrb.mxu0 %v5711_v62  ;;  %v6765_v56 = vld [vmem:[#allocation11 + $0x3a4] sm:$0xf0] }
  0xf6   :  { %v6252_v59 = vld [vmem:[#allocation11 + $0xd20] sm:$0xf0]  ;;  %v5586_v62 = vld [vmem:[#allocation11 + $0x7c8] sm:$0xf] }
  0xf7   :  { %v7128_v60 = vld [vmem:[#allocation11 + $0xf04] sm:$0xf]  ;;  %v6255_v4 = vor.u32 %v7064_v44, %v6252_v59  ;;  %3733 = vmatpush.bf16.msrb.mxu1 %v5967_v63  ;;  %v6901_v63 = vld [vmem:[#allocation11 + $0x7e4] sm:$0xf0] }
  0xf8   :  { %v6508_v61 = vld [vmem:[#allocation11 + $0xf20] sm:$0xf0]  ;;  %v6741_v37 = vld [vmem:[#allocation11 + $0x2e4] sm:$0xf0] }
  0xf9   :  { %v6920_v0 = vld [vmem:[#allocation11 + $0x884] sm:$0xf]  ;;  %v6511_v5 = vor.u32 %v7128_v60, %v6508_v61  ;;  %3745 = vmatpush.bf16.msrb.mxu2 %v6255_v4  ;;  %v5330_v60 = vld [vmem:[#allocation11 + $0x5c8] sm:$0xf] }
  0xfa   :  { %v5676_v1 = vld [vmem:[#allocation11 + $0x8a0] sm:$0xf0]  ;;  %v6837_v61 = vld [vmem:[#allocation11 + $0x5e4] sm:$0xf0] }
  0xfb   :  { %v6984_v2 = vld [vmem:[#allocation11 + $0xa84] sm:$0xf]  ;;  %v5679_v12 = vor.u32 %v6920_v0, %v5676_v1  ;;  %3758 = vmatpush.bf16.msrb.mxu3 %v6511_v5  ;;  %v4787_v0 = vor.u32 %v6701_v50, %v4786_v49  ;;  %v5043_v1 = vor.u32 %v6765_v56, %v5042_v51  ;;  %v4754_v4 = vld [vmem:[#allocation11 + $0x148] sm:$0xf] }
  0xfc   :  { %v5932_v3 = vld [vmem:[#allocation11 + $0xaa0] sm:$0xf0]  ;;  %v6693_v5 = vld [vmem:[#allocation11 + $0x164] sm:$0xf0] }
  0xfd   :  { %v7056_v8 = vld [vmem:[#allocation11 + $0xcc4] sm:$0xf]  ;;  %v5935_v13 = vor.u32 %v6984_v2, %v5932_v3  ;;  %3721 = vmatpush.bf16.msrb.mxu0 %v5679_v12  ;;  %v5298_v12 = vld [vmem:[#allocation11 + $0x588] sm:$0xf] }
  0xfe   :  { %v6220_v9 = vld [vmem:[#allocation11 + $0xce0] sm:$0xf0]  ;;  %v4914_v51 = vld [vmem:[#allocation11 + $0x288] sm:$0xf] }
  0xff   :  { %v7120_v10 = vld [vmem:[#allocation11 + $0xec4] sm:$0xf]  ;;  %v6223_v18 = vor.u32 %v7056_v8, %v6220_v9  ;;  %3734 = vmatpush.bf16.msrb.mxu1 %v5935_v13  ;;  %v5331_v8 = vor.u32 %v6837_v61, %v5330_v60  ;;  %v5587_v9 = vor.u32 %v6901_v63, %v5586_v62  ;;  %v6829_v13 = vld [vmem:[#allocation11 + $0x5a4] sm:$0xf0] }
 0x100   :  { %v6476_v11 = vld [vmem:[#allocation11 + $0xee0] sm:$0xf0]  ;;  %v6805_v56 = vld [vmem:[#allocation11 + $0x4e4] sm:$0xf0] }
 0x101   :  { %v6912_v14 = vld [vmem:[#allocation11 + $0x844] sm:$0xf]  ;;  %v6479_v20 = vor.u32 %v7120_v10, %v6476_v11  ;;  %3746 = vmatpush.bf16.msrb.mxu2 %v6223_v18  ;;  %v5010_v10 = vld [vmem:[#allocation11 + $0x348] sm:$0xf] }
 0x102   :  { %v5644_v15 = vld [vmem:[#allocation11 + $0x860] sm:$0xf0]  ;;  %v6757_v11 = vld [vmem:[#allocation11 + $0x364] sm:$0xf0] }
 0x103   :  { %v6976_v16 = vld [vmem:[#allocation11 + $0xa44] sm:$0xf]  ;;  %v5647_v27 = vor.u32 %v6912_v14, %v5644_v15  ;;  %3759 = vmatpush.bf16.msrb.mxu3 %v6479_v20  ;;  %v5554_v14 = vld [vmem:[#allocation11 + $0x788] sm:$0xf] }
 0x104   :  { %v5900_v17 = vld [vmem:[#allocation11 + $0xa60] sm:$0xf0]  ;;  %v6893_v15 = vld [vmem:[#allocation11 + $0x7a4] sm:$0xf0] }
 0x105   :  { %v7048_v21 = vld [vmem:[#allocation11 + $0xc84] sm:$0xf]  ;;  %v5903_v28 = vor.u32 %v6976_v16, %v5900_v17  ;;  %3722 = vmatpush.bf16.msrb.mxu0 %v5647_v27  ;;  %v4755_v16 = vor.u32 %v6693_v5, %v4754_v4  ;;  %v5011_v17 = vor.u32 %v6757_v11, %v5010_v10  ;;  %v4722_v18 = vld [vmem:[#allocation11 + $0x108] sm:$0xf] }
 0x106   :  { %v6188_v24 = vld [vmem:[#allocation11 + $0xca0] sm:$0xf0]  ;;  %v6685_v20 = vld [vmem:[#allocation11 + $0x124] sm:$0xf0] }
 0x107   :  { %v7112_v25 = vld [vmem:[#allocation11 + $0xe84] sm:$0xf]  ;;  %v6191_v19 = vor.u32 %v7048_v21, %v6188_v24  ;;  %3735 = vmatpush.bf16.msrb.mxu1 %v5903_v28  ;;  %v5299_v21 = vor.u32 %v6829_v13, %v5298_v12  ;;  %v5555_v24 = vor.u32 %v6893_v15, %v5554_v14  ;;  %v5266_v27 = vld [vmem:[#allocation11 + $0x548] sm:$0xf] }
 0x108   :  { %v6444_v26 = vld [vmem:[#allocation11 + $0xea0] sm:$0xf0]  ;;  %v6821_v28 = vld [vmem:[#allocation11 + $0x564] sm:$0xf0] }
 0x109   :  { %v6904_v29 = vld [vmem:[#allocation11 + $0x804] sm:$0xf]  ;;  %v6447_v35 = vor.u32 %v7112_v25, %v6444_v26  ;;  %3747 = vmatpush.bf16.msrb.mxu2 %v6191_v19  ;;  %v4978_v25 = vld [vmem:[#allocation11 + $0x308] sm:$0xf]  ;;  %v5267_v19 = vor.u32 %v6821_v28, %v5266_v27 }
 0x10a   :  { %v5612_v30 = vld [vmem:[#allocation11 + $0x820] sm:$0xf0]  ;;  %v6749_v26 = vld [vmem:[#allocation11 + $0x324] sm:$0xf0] }
 0x10b   :  { %v6968_v31 = vld [vmem:[#allocation11 + $0xa04] sm:$0xf]  ;;  %v5615_v45 = vor.u32 %v6904_v29, %v5612_v30  ;;  %3760 = vmatpush.bf16.msrb.mxu3 %v6447_v35  ;;  %v5522_v29 = vld [vmem:[#allocation11 + $0x748] sm:$0xf] }
 0x10c   :  { %v5868_v32 = vld [vmem:[#allocation11 + $0xa20] sm:$0xf0]  ;;  %v6885_v30 = vld [vmem:[#allocation11 + $0x764] sm:$0xf0] }
 0x10d   :  { %v7040_v38 = vld [vmem:[#allocation11 + $0xc44] sm:$0xf]  ;;  %v5871_v46 = vor.u32 %v6968_v31, %v5868_v32  ;;  %3723 = vmatpush.bf16.msrb.mxu0 %v5615_v45  ;;  %v4723_v31 = vor.u32 %v6685_v20, %v4722_v18  ;;  %v4979_v32 = vor.u32 %v6749_v26, %v4978_v25  ;;  %v5523_v35 = vor.u32 %v6885_v30, %v5522_v29  ;;  %v4626_v60 = vld [vmem:[#allocation11 + $0x48] sm:$0xf] }
 0x10e   :  { %v6156_v41 = vld [vmem:[#allocation11 + $0xc60] sm:$0xf0]  ;;  %v4691_v45 = vor.u32 %v6677_v34, %v4690_v33  ;;  %v6661_v61 = vld [vmem:[#allocation11 + $0x64] sm:$0xf0] }
 0x10f   :  { %v7104_v42 = vld [vmem:[#allocation11 + $0xe44] sm:$0xf]  ;;  %v6159_v52 = vor.u32 %v7040_v38, %v6156_v41  ;;  %3736 = vmatpush.bf16.msrb.mxu1 %v5871_v46  ;;  %v5234_v38 = vld [vmem:[#allocation11 + $0x508] sm:$0xf]  ;;  %v4947_v46 = vor.u32 %v6741_v37, %v4946_v36 }
 0x110   :  { %v6412_v43 = vld [vmem:[#allocation11 + $0xe60] sm:$0xf0]  ;;  %3724 = vmatmul.bf16.vlgmr.msrb.gmra.mxu0 %v7496_v6  ;;  %v6813_v41 = vld [vmem:[#allocation11 + $0x524] sm:$0xf0] }
 0x111   :  { %v6415_v55 = vor.u32 %v7104_v42, %v6412_v43  ;;  %v7032_v57 = vld [vmem:[#allocation11 + $0xc04] sm:$0xf]  ;;  %3768 = vmatpush.bf16.msra.mxu0 %v4819_v47  ;;  %3748 = vmatpush.bf16.msrb.mxu2 %v6159_v52  ;;  %v5490_v42 = vld [vmem:[#allocation11 + $0x708] sm:$0xf]  ;;  %v5235_v49 = vor.u32 %v6813_v41, %v5234_v38 }
 0x112   :  { %v6124_v58 = vld [vmem:[#allocation11 + $0xc20] sm:$0xf0]  ;;  %3737 = vmatmul.bf16.vlgmr.msrb.gmra.mxu1 %v7498_v7  ;;  %v6877_v43 = vld [vmem:[#allocation11 + $0x724] sm:$0xf0] }
 0x113   :  { %v7096_v44 = vld [vmem:[#allocation11 + $0xe04] sm:$0xf]  ;;  %3781 = vmatpush.bf16.msra.mxu1 %v5075_v48  ;;  %3761 = vmatpush.bf16.msrb.mxu3 %v6415_v55  ;;  %v6127_v2 = vor.u32 %v7032_v57, %v6124_v58  ;;  %v4658_v47 = vld [vmem:[#allocation11 + $0x88] sm:$0xf]  ;;  %v5491_v50 = vor.u32 %v6877_v43, %v5490_v42 }
 0x114   :  { %v6380_v59 = vld [vmem:[#allocation11 + $0xe20] sm:$0xf0]  ;;  %v6669_v48 = vld [vmem:[#allocation11 + $0xa4] sm:$0xf0] }
 0x115   :  { %v6383_v3 = vor.u32 %v7096_v44, %v6380_v59  ;;  %3769 = vmatpush.bf16.msra.mxu0 %v4787_v0  ;;  %3749 = vmatpush.bf16.msrb.mxu2 %v6127_v2  ;;  %v6733_v52 = vld [vmem:[#allocation11 + $0x2a4] sm:$0xf0]  ;;  %v4659_v44 = vor.u32 %v6669_v48, %v4658_v47 }
 0x116   :  { %v5202_v55 = vld [vmem:[#allocation11 + $0x4c8] sm:$0xf]  ;;  %v4915_v59 = vor.u32 %v6733_v52, %v4914_v51 }
 0x117   :  { %3782 = vmatpush.bf16.msra.mxu1 %v5043_v1  ;;  %3762 = vmatpush.bf16.msrb.mxu3 %v6383_v3  ;;  %v5458_v57 = vld [vmem:[#allocation11 + $0x6c8] sm:$0xf]  ;;  %v5203_v62 = vor.u32 %v6805_v56, %v5202_v55 }
 0x118   :  { %3750 = vmatmul.bf16.vlgmr.msrb.gmra.mxu2 %v7502_v39  ;;  %v6869_v58 = vld [vmem:[#allocation11 + $0x6e4] sm:$0xf0] }
 0x119   :  { %3794 = vmatpush.bf16.msra.mxu2 %v5331_v8  ;;  %3770 = vmatpush.bf16.msra.mxu0 %v4755_v16  ;;  %v5459_v63 = vor.u32 %v6869_v58, %v5458_v57  ;;  %v4882_v0 = vld [vmem:[#allocation11 + $0x248] sm:$0xf]  ;;  %v4627_v8 = vor.u32 %v6661_v61, %v4626_v60 }
 0x11a   :  { %3763 = vmatmul.bf16.vlgmr.msrb.gmra.mxu3 %v7504_v40  ;;  %v6725_v1 = vld [vmem:[#allocation11 + $0x264] sm:$0xf0] }
 0x11b   :  { %3807 = vmatpush.bf16.msra.mxu3 %v5587_v9  ;;  %3783 = vmatpush.bf16.msra.mxu1 %v5011_v17  ;;  %v5170_v2 = vld [vmem:[#allocation11 + $0x488] sm:$0xf]  ;;  %v4883_v9 = vor.u32 %v6725_v1, %v4882_v0 }
 0x11c   :  { %v6797_v3 = vld [vmem:[#allocation11 + $0x4a4] sm:$0xf0] }
 0x11d   :  { %3795 = vmatpush.bf16.msra.mxu2 %v5299_v21  ;;  %3771 = vmatpush.bf16.msra.mxu0 %v4723_v31  ;;  %v5426_v4 = vld [vmem:[#allocation11 + $0x688] sm:$0xf]  ;;  %v5171_v13 = vor.u32 %v6797_v3, %v5170_v2 }
 0x11e   :  { %v6861_v5 = vld [vmem:[#allocation11 + $0x6a4] sm:$0xf0] }
 0x11f   :  { %3808 = vmatpush.bf16.msra.mxu3 %v5555_v24  ;;  %3784 = vmatpush.bf16.msra.mxu1 %v4979_v32  ;;  %v4594_v10 = vld [vmem:[#allocation11 + $0x8] sm:$0xf]  ;;  %v5427_v14 = vor.u32 %v6861_v5, %v5426_v4 }
 0x120   :  { %v6653_v11 = vld [vmem:[#allocation11 + $0x24] sm:$0xf0] }
 0x121   :  { %3796 = vmatpush.bf16.msra.mxu2 %v5267_v19  ;;  %3772 = vmatpush.bf16.msra.mxu0 %v4691_v45  ;;  %v4850_v12 = vld [vmem:[#allocation11 + $0x208] sm:$0xf]  ;;  %v4595_v27 = vor.u32 %v6653_v11, %v4594_v10 }
 0x122   :  { %v6717_v15 = vld [vmem:[#allocation11 + $0x224] sm:$0xf0] }
 0x123   :  { %3809 = vmatpush.bf16.msra.mxu3 %v5523_v35  ;;  %3785 = vmatpush.bf16.msra.mxu1 %v4947_v46  ;;  %v5842_v16 = vld [vmem:[#allocation11 + $0x9c8] sm:$0xf]  ;;  %v4851_v28 = vor.u32 %v6717_v15, %v4850_v12 }
 0x124   :  { %v6965_v17 = vld [vmem:[#allocation11 + $0x9e4] sm:$0xf0] }
 0x125   :  { %3797 = vmatpush.bf16.msra.mxu2 %v5235_v49  ;;  %3773 = vmatpush.bf16.msra.mxu0 %v4659_v44  ;;  %v6098_v18 = vld [vmem:[#allocation11 + $0xbc8] sm:$0xf]  ;;  %v5843_v29 = vor.u32 %v6965_v17, %v5842_v16 }
 0x126   :  { %v7029_v20 = vld [vmem:[#allocation11 + $0xbe4] sm:$0xf0] }
 0x127   :  { %3810 = vmatpush.bf16.msra.mxu3 %v5491_v50  ;;  %3786 = vmatpush.bf16.msra.mxu1 %v4915_v59  ;;  %v5138_v21 = vld [vmem:[#allocation11 + $0x448] sm:$0xf]  ;;  %v6099_v30 = vor.u32 %v7029_v20, %v6098_v18 }
 0x128   :  { %v6789_v24 = vld [vmem:[#allocation11 + $0x464] sm:$0xf0] }
 0x129   :  { %3798 = vmatpush.bf16.msra.mxu2 %v5203_v62  ;;  %v5394_v25 = vld [vmem:[#allocation11 + $0x648] sm:$0xf]  ;;  %3774 = vmatpush.bf16.msra.mxu0 %v4627_v8  ;;  %v5139_v34 = vor.u32 %v6789_v24, %v5138_v21 }
 0x12a   :  { %v6853_v26 = vld [vmem:[#allocation11 + $0x664] sm:$0xf0] }
 0x12b   :  { %3811 = vmatpush.bf16.msra.mxu3 %v5459_v63  ;;  %3787 = vmatpush.bf16.msra.mxu1 %v4883_v9  ;;  %v5810_v31 = vld [vmem:[#allocation11 + $0x988] sm:$0xf]  ;;  %v5395_v19 = vor.u32 %v6853_v26, %v5394_v25 }
 0x12c   :  { %v6957_v32 = vld [vmem:[#allocation11 + $0x9a4] sm:$0xf0] }
 0x12d   :  { %3799 = vmatpush.bf16.msra.mxu2 %v5171_v13  ;;  %v6066_v33 = vld [vmem:[#allocation11 + $0xb88] sm:$0xf]  ;;  %3775 = vmatpush.bf16.msra.mxu0 %v4595_v27  ;;  %v5811_v47 = vor.u32 %v6957_v32, %v5810_v31 }
 0x12e   :  { %v7021_v35 = vld [vmem:[#allocation11 + $0xba4] sm:$0xf0] }
 0x12f   :  { %3812 = vmatpush.bf16.msra.mxu3 %v5427_v14  ;;  %v5106_v36 = vld [vmem:[#allocation11 + $0x408] sm:$0xf]  ;;  %3788 = vmatpush.bf16.msra.mxu1 %v4851_v28  ;;  %v6067_v48 = vor.u32 %v7021_v35, %v6066_v33 }
 0x130   :  { %v6781_v37 = vld [vmem:[#allocation11 + $0x424] sm:$0xf0]  ;;  %3776 = vmatmul.bf16.vlgmr.msra.gmra.mxu0 %v7484_v53 }
 0x131   :  { %v5362_v38 = vld [vmem:[#allocation11 + $0x608] sm:$0xf]  ;;  %3820 = vmatpush.bf16.msrb.mxu0 %v5843_v29  ;;  %3800 = vmatpush.bf16.msra.mxu2 %v5139_v34  ;;  %v5107_v49 = vor.u32 %v6781_v37, %v5106_v36 }
 0x132   :  { %v6845_v41 = vld [vmem:[#allocation11 + $0x624] sm:$0xf0]  ;;  %3789 = vmatmul.bf16.vlgmr.msra.gmra.mxu1 %v7486_v54 }
 0x133   :  { %v6354_v42 = vld [vmem:[#allocation11 + $0xdc8] sm:$0xf]  ;;  %3833 = vmatpush.bf16.msrb.mxu1 %v6099_v30  ;;  %3813 = vmatpush.bf16.msra.mxu3 %v5395_v19  ;;  %v5363_v50 = vor.u32 %v6845_v41, %v5362_v38 }
 0x134   :  { %v7093_v43 = vld [vmem:[#allocation11 + $0xde4] sm:$0xf0] }
 0x135   :  { %v6610_v45 = vld [vmem:[#allocation11 + $0xfc8] sm:$0xf]  ;;  %v6355_v55 = vor.u32 %v7093_v43, %v6354_v42  ;;  %3821 = vmatpush.bf16.msrb.mxu0 %v5811_v47  ;;  %3801 = vmatpush.bf16.msra.mxu2 %v5107_v49 }
 0x136   :  { %v7157_v46 = vld [vmem:[#allocation11 + $0xfe4] sm:$0xf0] }
 0x137   :  { %v5778_v51 = vld [vmem:[#allocation11 + $0x948] sm:$0xf]  ;;  %v6611_v56 = vor.u32 %v7157_v46, %v6610_v45  ;;  %3834 = vmatpush.bf16.msrb.mxu1 %v6067_v48  ;;  %3814 = vmatpush.bf16.msra.mxu3 %v5363_v50 }
 0x138   :  { %v6949_v52 = vld [vmem:[#allocation11 + $0x964] sm:$0xf0]  ;;  %3802 = vmatmul.bf16.vlgmr.msra.gmra.mxu2 %v7490_v22 }
 0x139   :  { %v6034_v57 = vld [vmem:[#allocation11 + $0xb48] sm:$0xf]  ;;  %v5779_v62 = vor.u32 %v6949_v52, %v5778_v51  ;;  %3846 = vmatpush.bf16.msrb.mxu2 %v6355_v55 }
 0x13a   :  { %v7013_v58 = vld [vmem:[#allocation11 + $0xb64] sm:$0xf0]  ;;  %3815 = vmatmul.bf16.vlgmr.msra.gmra.mxu3 %v7492_v23 }
 0x13b   :  { %v6322_v44 = vld [vmem:[#allocation11 + $0xd88] sm:$0xf]  ;;  %v6035_v63 = vor.u32 %v7013_v58, %v6034_v57  ;;  %3859 = vmatpush.bf16.msrb.mxu3 %v6611_v56  ;;  %3822 = vmatpush.bf16.msrb.mxu0 %v5779_v62  ;;  %v6705_v62 = vld [vmem:[#allocation11 + $0x1cc] sm:$0xf] }
 0x13c   :  { %v7085_v59 = vld [vmem:[#allocation11 + $0xda4] sm:$0xf0] }
 0x13d   :  { %v6578_v60 = vld [vmem:[#allocation11 + $0xf88] sm:$0xf]  ;;  %v6323_v2 = vor.u32 %v7085_v59, %v6322_v44  ;;  %3835 = vmatpush.bf16.msrb.mxu1 %v6035_v63  ;;  %v4820_v63 = vld [vmem:[#allocation11 + $0x1e8] sm:$0xf0] }
 0x13e   :  { %v7149_v61 = vld [vmem:[#allocation11 + $0xfa4] sm:$0xf0] }
 0x13f   :  { %v5746_v0 = vld [vmem:[#allocation11 + $0x908] sm:$0xf]  ;;  %v6579_v3 = vor.u32 %v7149_v61, %v6578_v60  ;;  %3847 = vmatpush.bf16.msrb.mxu2 %v6323_v2 }
 0x140   :  { %v6941_v1 = vld [vmem:[#allocation11 + $0x924] sm:$0xf0] }
 0x141   :  { %v6002_v4 = vld [vmem:[#allocation11 + $0xb08] sm:$0xf]  ;;  %v5747_v12 = vor.u32 %v6941_v1, %v5746_v0  ;;  %3860 = vmatpush.bf16.msrb.mxu3 %v6579_v3  ;;  %v6769_v0 = vld [vmem:[#allocation11 + $0x3cc] sm:$0xf] }
 0x142   :  { %v7005_v5 = vld [vmem:[#allocation11 + $0xb24] sm:$0xf0]  ;;  %v5076_v1 = vld [vmem:[#allocation11 + $0x3e8] sm:$0xf0] }
 0x143   :  { %v6290_v8 = vld [vmem:[#allocation11 + $0xd48] sm:$0xf]  ;;  %v6003_v13 = vor.u32 %v7005_v5, %v6002_v4  ;;  %3823 = vmatpush.bf16.msrb.mxu0 %v5747_v12  ;;  %v5079_v12 = vor.u32 %v6769_v0, %v5076_v1 }
 0x144   :  { %v7077_v9 = vld [vmem:[#allocation11 + $0xd64] sm:$0xf0] }
 0x145   :  { %v6546_v10 = vld [vmem:[#allocation11 + $0xf48] sm:$0xf]  ;;  %v6291_v16 = vor.u32 %v7077_v9, %v6290_v8  ;;  %3836 = vmatpush.bf16.msrb.mxu1 %v6003_v13  ;;  %v4788_v13 = vld [vmem:[#allocation11 + $0x1a8] sm:$0xf0] }
 0x146   :  { %v7141_v11 = vld [vmem:[#allocation11 + $0xf64] sm:$0xf0] }
 0x147   :  { %v5714_v14 = vld [vmem:[#allocation11 + $0x8c8] sm:$0xf]  ;;  %v6547_v17 = vor.u32 %v7141_v11, %v6546_v10  ;;  %3848 = vmatpush.bf16.msrb.mxu2 %v6291_v16  ;;  %v6697_v10 = vld [vmem:[#allocation11 + $0x18c] sm:$0xf]  ;;  %v4823_v11 = vor.u32 %v6705_v62, %v4820_v63 }
 0x148   :  { %v6933_v15 = vld [vmem:[#allocation11 + $0x8e4] sm:$0xf0]  ;;  %v5524_v62 = vld [vmem:[#allocation11 + $0x768] sm:$0xf0] }
 0x149   :  { %v5970_v18 = vld [vmem:[#allocation11 + $0xac8] sm:$0xf]  ;;  %v5715_v27 = vor.u32 %v6933_v15, %v5714_v14  ;;  %3861 = vmatpush.bf16.msrb.mxu3 %v6547_v17  ;;  %v6761_v14 = vld [vmem:[#allocation11 + $0x38c] sm:$0xf] }
 0x14a   :  { %v6997_v20 = vld [vmem:[#allocation11 + $0xae4] sm:$0xf0]  ;;  %v5044_v15 = vld [vmem:[#allocation11 + $0x3a8] sm:$0xf0] }
 0x14b   :  { %v6258_v21 = vld [vmem:[#allocation11 + $0xd08] sm:$0xf]  ;;  %v5971_v28 = vor.u32 %v6997_v20, %v5970_v18  ;;  %3824 = vmatpush.bf16.msrb.mxu0 %v5715_v27  ;;  %v6897_v27 = vld [vmem:[#allocation11 + $0x7cc] sm:$0xf] }
 0x14c   :  { %v7069_v24 = vld [vmem:[#allocation11 + $0xd24] sm:$0xf0] }
 0x14d   :  { %v6514_v25 = vld [vmem:[#allocation11 + $0xf08] sm:$0xf]  ;;  %v6259_v31 = vor.u32 %v7069_v24, %v6258_v21  ;;  %3837 = vmatpush.bf16.msrb.mxu1 %v5971_v28  ;;  %v5588_v28 = vld [vmem:[#allocation11 + $0x7e8] sm:$0xf0] }
 0x14e   :  { %v7133_v26 = vld [vmem:[#allocation11 + $0xf24] sm:$0xf0] }
 0x14f   :  { %v5682_v29 = vld [vmem:[#allocation11 + $0x888] sm:$0xf]  ;;  %v6515_v32 = vor.u32 %v7133_v26, %v6514_v25  ;;  %3849 = vmatpush.bf16.msrb.mxu2 %v6259_v31  ;;  %v6833_v25 = vld [vmem:[#allocation11 + $0x5cc] sm:$0xf]  ;;  %v5047_v31 = vor.u32 %v6761_v14, %v5044_v15 }
 0x150   :  { %v6925_v30 = vld [vmem:[#allocation11 + $0x8a4] sm:$0xf0]  ;;  %v5332_v26 = vld [vmem:[#allocation11 + $0x5e8] sm:$0xf0] }
 0x151   :  { %v5938_v33 = vld [vmem:[#allocation11 + $0xa88] sm:$0xf]  ;;  %v5683_v38 = vor.u32 %v6925_v30, %v5682_v29  ;;  %3862 = vmatpush.bf16.msrb.mxu3 %v6515_v32  ;;  %v7520_v29 = vld [vmem:[#allocation12] sm:$0xff]  ;;  %v4791_v30 = vor.u32 %v6697_v10, %v4788_v13  ;;  %v6809_v10 = vld [vmem:[#allocation11 + $0x50c] sm:$0xf] }
 0x152   :  { %v6989_v34 = vld [vmem:[#allocation11 + $0xaa4] sm:$0xf0]  ;;  %v5492_v13 = vld [vmem:[#allocation11 + $0x728] sm:$0xf0] }
 0x153   :  { %v6226_v19 = vld [vmem:[#allocation11 + $0xcc8] sm:$0xf]  ;;  %v5939_v41 = vor.u32 %v6989_v34, %v5938_v33  ;;  %3825 = vmatpush.bf16.msrb.mxu0 %v5683_v38  ;;  %v6689_v34 = vld [vmem:[#allocation11 + $0x14c] sm:$0xf] }
 0x154   :  { %v7061_v35 = vld [vmem:[#allocation11 + $0xce4] sm:$0xf0]  ;;  %v5012_v38 = vld [vmem:[#allocation11 + $0x368] sm:$0xf0] }
 0x155   :  { %v6482_v36 = vld [vmem:[#allocation11 + $0xec8] sm:$0xf]  ;;  %v6227_v45 = vor.u32 %v7061_v35, %v6226_v19  ;;  %3838 = vmatpush.bf16.msrb.mxu1 %v5939_v41  ;;  %v4756_v19 = vld [vmem:[#allocation11 + $0x168] sm:$0xf0]  ;;  %v984_v41 = vperm.slane %v7520_v29, 0 }
 0x156   :  { %v7125_v37 = vld [vmem:[#allocation11 + $0xee4] sm:$0xf0]  ;;  %v6753_v35 = vld [vmem:[#allocation11 + $0x34c] sm:$0xf] }
 0x157   :  { %v5650_v42 = vld [vmem:[#allocation11 + $0x848] sm:$0xf]  ;;  %v6483_v46 = vor.u32 %v7125_v37, %v6482_v36  ;;  %3850 = vmatpush.bf16.msrb.mxu2 %v6227_v45  ;;  %v5335_v36 = vor.u32 %v6833_v25, %v5332_v26  ;;  %v5591_v37 = vor.u32 %v6897_v27, %v5588_v28  ;;  %v6889_v45 = vld [vmem:[#allocation11 + $0x78c] sm:$0xf] }
 0x158   :  { %v6917_v43 = vld [vmem:[#allocation11 + $0x864] sm:$0xf0]  ;;  %v6729_v25 = vld [vmem:[#allocation11 + $0x28c] sm:$0xf] }
 0x159   :  { %v5906_v47 = vld [vmem:[#allocation11 + $0xa48] sm:$0xf]  ;;  %v5651_v55 = vor.u32 %v6917_v43, %v5650_v42  ;;  %3863 = vmatpush.bf16.msrb.mxu3 %v6483_v46  ;;  %v6825_v42 = vld [vmem:[#allocation11 + $0x58c] sm:$0xf] }
 0x15a   :  { %v6981_v48 = vld [vmem:[#allocation11 + $0xa64] sm:$0xf0]  ;;  %v5300_v43 = vld [vmem:[#allocation11 + $0x5a8] sm:$0xf0] }
 0x15b   :  { %v6194_v49 = vld [vmem:[#allocation11 + $0xc88] sm:$0xf]  ;;  %v5907_v56 = vor.u32 %v6981_v48, %v5906_v47  ;;  %3826 = vmatpush.bf16.msrb.mxu0 %v5651_v55  ;;  %v5556_v46 = vld [vmem:[#allocation11 + $0x7a8] sm:$0xf0]  ;;  %v4759_v47 = vor.u32 %v6689_v34, %v4756_v19  ;;  %v5015_v48 = vor.u32 %v6753_v35, %v5012_v38  ;;  %v3595_v35 = vpop.f32.mrf.mxu2 }
 0x15c   :  { %v7053_v50 = vld [vmem:[#allocation11 + $0xca4] sm:$0xf0]  ;;  %v4916_v26 = vld [vmem:[#allocation11 + $0x2a8] sm:$0xf0] }
 0x15d   :  { %v6450_v51 = vld [vmem:[#allocation11 + $0xe88] sm:$0xf]  ;;  %v6195_v59 = vor.u32 %v7053_v50, %v6194_v49  ;;  %3839 = vmatpush.bf16.msrb.mxu1 %v5907_v56  ;;  %v3569_v49 = vpop.f32.mrf.mxu0  ;;  %v3582_v50 = vpop.f32.mrf.mxu1  ;;  %v5303_v56 = vor.u32 %v6825_v42, %v5300_v43  ;;  %v6801_v27 = vld [vmem:[#allocation11 + $0x4cc] sm:$0xf] }
 0x15e   :  { %v7117_v52 = vld [vmem:[#allocation11 + $0xea4] sm:$0xf0]  ;;  %v3570_v55 = vadd.f32 %v3569_v49, %v984_v41  ;;  %v5204_v28 = vld [vmem:[#allocation11 + $0x4e8] sm:$0xf0] }
 0x15f   :  { %v5618_v57 = vld [vmem:[#allocation11 + $0x808] sm:$0xf]  ;;  %v6451_v60 = vor.u32 %v7117_v52, %v6450_v51  ;;  %3851 = vmatpush.bf16.msrb.mxu2 %v6195_v59  ;;  %v6681_v51 = vld [vmem:[#allocation11 + $0x10c] sm:$0xf] }
 0x160   :  { %v6909_v58 = vld [vmem:[#allocation11 + $0x824] sm:$0xf0]  ;;  %v4724_v52 = vld [vmem:[#allocation11 + $0x128] sm:$0xf0]  ;;  %v3583_v63 = vadd.f32 %v3582_v50, %v3570_v55 }
 0x161   :  { %v5874_v44 = vld [vmem:[#allocation11 + $0xa08] sm:$0xf]  ;;  %v5619_v8 = vor.u32 %v6909_v58, %v5618_v57  ;;  %3864 = vmatpush.bf16.msrb.mxu3 %v6451_v60  ;;  %v5559_v57 = vor.u32 %v6889_v45, %v5556_v46  ;;  %v6745_v58 = vld [vmem:[#allocation11 + $0x30c] sm:$0xf]  ;;  %v4727_v0 = vor.u32 %v6681_v51, %v4724_v52 }
 0x162   :  { %v6973_v61 = vld [vmem:[#allocation11 + $0xa24] sm:$0xf0]  ;;  %v6817_v59 = vld [vmem:[#allocation11 + $0x54c] sm:$0xf]  ;;  %v3596_v45 = vadd.f32 %v3595_v35, %v3583_v63 }
 0x163   :  { %v6162_v2 = vld [vmem:[#allocation11 + $0xc48] sm:$0xf]  ;;  %v5875_v9 = vor.u32 %v6973_v61, %v5874_v44  ;;  %3827 = vmatpush.bf16.msrb.mxu0 %v5619_v8  ;;  %v4980_v44 = vld [vmem:[#allocation11 + $0x328] sm:$0xf0] }
 0x164   :  { %v7045_v3 = vld [vmem:[#allocation11 + $0xc64] sm:$0xf0]  ;;  %v5268_v60 = vld [vmem:[#allocation11 + $0x568] sm:$0xf0]  ;;  %v4983_v1 = vor.u32 %v6745_v58, %v4980_v44 }
 0x165   :  { %v6418_v4 = vld [vmem:[#allocation11 + $0xe48] sm:$0xf]  ;;  %v6163_v16 = vor.u32 %v7045_v3, %v6162_v2  ;;  %3840 = vmatpush.bf16.msrb.mxu1 %v5875_v9  ;;  %v6881_v61 = vld [vmem:[#allocation11 + $0x74c] sm:$0xf] }
 0x166   :  { %v7109_v5 = vld [vmem:[#allocation11 + $0xe64] sm:$0xf0]  ;;  %3828 = vmatmul.bf16.vlgmr.msrb.gmra.mxu0 %v7496_v6  ;;  %v6673_v2 = vld [vmem:[#allocation11 + $0xcc] sm:$0xf] }
 0x167   :  { %v6419_v17 = vor.u32 %v7109_v5, %v6418_v4  ;;  %v6130_v18 = vld [vmem:[#allocation11 + $0xc08] sm:$0xf]  ;;  %3872 = vmatpush.bf16.msra.mxu0 %v4823_v11  ;;  %3852 = vmatpush.bf16.msrb.mxu2 %v6163_v16  ;;  %v4692_v3 = vld [vmem:[#allocation11 + $0xe8] sm:$0xf0]  ;;  %v5271_v4 = vor.u32 %v6817_v59, %v5268_v60  ;;  %v5527_v5 = vor.u32 %v6881_v61, %v5524_v62  ;;  %v3571_v16 = vpop.f32.mrf.mxu0 }
 0x168   :  { %v7037_v20 = vld [vmem:[#allocation11 + $0xc24] sm:$0xf0]  ;;  %3841 = vmatmul.bf16.vlgmr.msrb.gmra.mxu1 %v7498_v7  ;;  %v6737_v8 = vld [vmem:[#allocation11 + $0x2cc] sm:$0xf]  ;;  %v4695_v14 = vor.u32 %v6673_v2, %v4692_v3 }
 0x169   :  { %v6386_v21 = vld [vmem:[#allocation11 + $0xe08] sm:$0xf]  ;;  %3885 = vmatpush.bf16.msra.mxu1 %v5079_v12  ;;  %3865 = vmatpush.bf16.msrb.mxu3 %v6419_v17  ;;  %v6131_v32 = vor.u32 %v7037_v20, %v6130_v18  ;;  %v4948_v9 = vld [vmem:[#allocation11 + $0x2e8] sm:$0xf0]  ;;  %v3584_v17 = vpop.f32.mrf.mxu1 }
 0x16a   :  { %v7101_v24 = vld [vmem:[#allocation11 + $0xe24] sm:$0xf0]  ;;  %v5236_v11 = vld [vmem:[#allocation11 + $0x528] sm:$0xf0]  ;;  %v4951_v15 = vor.u32 %v6737_v8, %v4948_v9 }
 0x16b   :  { %v6387_v33 = vor.u32 %v7101_v24, %v6386_v21  ;;  %3873 = vmatpush.bf16.msra.mxu0 %v4791_v30  ;;  %3853 = vmatpush.bf16.msrb.mxu2 %v6131_v32  ;;  %v6873_v12 = vld [vmem:[#allocation11 + $0x70c] sm:$0xf]  ;;  %v5239_v21 = vor.u32 %v6809_v10, %v5236_v11  ;;  %v3597_v11 = vpop.f32.mrf.mxu2 }
 0x16c   :  { %v6665_v18 = vld [vmem:[#allocation11 + $0x8c] sm:$0xf]  ;;  %v5495_v24 = vor.u32 %v6873_v12, %v5492_v13 }
 0x16d   :  { %3886 = vmatpush.bf16.msra.mxu1 %v5047_v31  ;;  %3866 = vmatpush.bf16.msrb.mxu3 %v6387_v33  ;;  %v4660_v20 = vld [vmem:[#allocation11 + $0xa8] sm:$0xf0]  ;;  %v4919_v33 = vor.u32 %v6729_v25, %v4916_v26 }
 0x16e   :  { %3854 = vmatmul.bf16.vlgmr.msrb.gmra.mxu2 %v7502_v39  ;;  %v6865_v30 = vld [vmem:[#allocation11 + $0x6cc] sm:$0xf]  ;;  %v4663_v32 = vor.u32 %v6665_v18, %v4660_v20 }
 0x16f   :  { %3898 = vmatpush.bf16.msra.mxu2 %v5335_v36  ;;  %3874 = vmatpush.bf16.msra.mxu0 %v4759_v47  ;;  %v5460_v31 = vld [vmem:[#allocation11 + $0x6e8] sm:$0xf0]  ;;  %v3608_v36 = vpop.f32.mrf.mxu3 }
 0x170   :  { %3867 = vmatmul.bf16.vlgmr.msrb.gmra.mxu3 %v7504_v40  ;;  %v6657_v34 = vld [vmem:[#allocation11 + $0x4c] sm:$0xf]  ;;  %v5463_v38 = vor.u32 %v6865_v30, %v5460_v31  ;;  %v3609_v49 = vadd.f32 %v3608_v36, %v3596_v45 }
 0x171   :  { %3911 = vmatpush.bf16.msra.mxu3 %v5591_v37  ;;  %3887 = vmatpush.bf16.msra.mxu1 %v5015_v48  ;;  %v4628_v19 = vld [vmem:[#allocation11 + $0x68] sm:$0xf0]  ;;  %v5207_v37 = vor.u32 %v6801_v27, %v5204_v28  ;;  %v3634_v58 = vpop.f32.mrf.mxu1 }
 0x172   :  { %v6721_v41 = vld [vmem:[#allocation11 + $0x24c] sm:$0xf]  ;;  %v4631_v50 = vor.u32 %v6657_v34, %v4628_v19 }
 0x173   :  { %3899 = vmatpush.bf16.msra.mxu2 %v5303_v56  ;;  %3875 = vmatpush.bf16.msra.mxu0 %v4727_v0  ;;  %v4884_v42 = vld [vmem:[#allocation11 + $0x268] sm:$0xf0] }
 0x174   :  { %v6793_v43 = vld [vmem:[#allocation11 + $0x48c] sm:$0xf]  ;;  %v4887_v51 = vor.u32 %v6721_v41, %v4884_v42 }
 0x175   :  { %3912 = vmatpush.bf16.msra.mxu3 %v5559_v57  ;;  %3888 = vmatpush.bf16.msra.mxu1 %v4983_v1  ;;  %v5172_v46 = vld [vmem:[#allocation11 + $0x4a8] sm:$0xf0]  ;;  %v3621_v57 = vpop.f32.mrf.mxu0 }
 0x176   :  { %v6857_v47 = vld [vmem:[#allocation11 + $0x68c] sm:$0xf]  ;;  %v5175_v44 = vor.u32 %v6793_v43, %v5172_v46  ;;  %v3622_v63 = vadd.f32 %v3621_v57, %v3609_v49 }
 0x177   :  { %3900 = vmatpush.bf16.msra.mxu2 %v5271_v4  ;;  %3876 = vmatpush.bf16.msra.mxu0 %v4695_v14  ;;  %v5428_v48 = vld [vmem:[#allocation11 + $0x6a8] sm:$0xf0]  ;;  %v3610_v12 = vpop.f32.mrf.mxu3 }
 0x178   :  { %v6649_v52 = vld [vmem:[#allocation11 + $0xc] sm:$0xf]  ;;  %v5431_v59 = vor.u32 %v6857_v47, %v5428_v48  ;;  %v3635_v8 = vadd.f32 %v3634_v58, %v3622_v63  ;;  %v985_v58 = vperm.slane %v7520_v29, 1 }
 0x179   :  { %3913 = vmatpush.bf16.msra.mxu3 %v5527_v5  ;;  %3889 = vmatpush.bf16.msra.mxu1 %v4951_v15  ;;  %v4596_v55 = vld [vmem:[#allocation11 + $0x28] sm:$0xf0]  ;;  %v3636_v34 = vpop.f32.mrf.mxu1 }
 0x17a   :  { %v6713_v56 = vld [vmem:[#allocation11 + $0x20c] sm:$0xf]  ;;  %v4599_v9 = vor.u32 %v6649_v52, %v4596_v55 }
 0x17b   :  { %3901 = vmatpush.bf16.msra.mxu2 %v5239_v21  ;;  %3877 = vmatpush.bf16.msra.mxu0 %v4663_v32  ;;  %v4852_v60 = vld [vmem:[#allocation11 + $0x228] sm:$0xf0] }
 0x17c   :  { %v6961_v61 = vld [vmem:[#allocation11 + $0x9cc] sm:$0xf]  ;;  %v4855_v10 = vor.u32 %v6713_v56, %v4852_v60 }
 0x17d   :  { %3914 = vmatpush.bf16.msra.mxu3 %v5495_v24  ;;  %3890 = vmatpush.bf16.msra.mxu1 %v4919_v33  ;;  %v5844_v62 = vld [vmem:[#allocation11 + $0x9e8] sm:$0xf0]  ;;  %v3623_v33 = vpop.f32.mrf.mxu0 }
 0x17e   :  { %v7025_v0 = vld [vmem:[#allocation11 + $0xbcc] sm:$0xf]  ;;  %v5847_v13 = vor.u32 %v6961_v61, %v5844_v62 }
 0x17f   :  { %3902 = vmatpush.bf16.msra.mxu2 %v5207_v37  ;;  %v6100_v1 = vld [vmem:[#allocation11 + $0xbe8] sm:$0xf0]  ;;  %3878 = vmatpush.bf16.msra.mxu0 %v4631_v50  ;;  %v3660_v52 = vpop.f32.mrf.mxu3 }
 0x180   :  { %v6785_v2 = vld [vmem:[#allocation11 + $0x44c] sm:$0xf]  ;;  %v6103_v14 = vor.u32 %v7025_v0, %v6100_v1 }
 0x181   :  { %3915 = vmatpush.bf16.msra.mxu3 %v5463_v38  ;;  %v5140_v3 = vld [vmem:[#allocation11 + $0x468] sm:$0xf0]  ;;  %3891 = vmatpush.bf16.msra.mxu1 %v4887_v51  ;;  %v3647_v51 = vpop.f32.mrf.mxu2 }
 0x182   :  { %v6849_v4 = vld [vmem:[#allocation11 + $0x64c] sm:$0xf]  ;;  %v5143_v18 = vor.u32 %v6785_v2, %v5140_v3  ;;  %v3648_v55 = vadd.f32 %v3647_v51, %v3635_v8  ;;  %v3686_v8 = vpop.f32.mrf.mxu1 }
 0x183   :  { %v5396_v5 = vld [vmem:[#allocation11 + $0x668] sm:$0xf0]  ;;  %3903 = vmatpush.bf16.msra.mxu2 %v5175_v44  ;;  %3879 = vmatpush.bf16.msra.mxu0 %v4599_v9 }
 0x184   :  { %v6953_v15 = vld [vmem:[#allocation11 + $0x98c] sm:$0xf]  ;;  %v5399_v20 = vor.u32 %v6849_v4, %v5396_v5  ;;  %v7530_v1 = vadd.f32 %v3660_v52, %v3648_v55 }
 0x185   :  { %3916 = vmatpush.bf16.msra.mxu3 %v5431_v59  ;;  %v5812_v16 = vld [vmem:[#allocation11 + $0x9a8] sm:$0xf0]  ;;  %3892 = vmatpush.bf16.msra.mxu1 %v4855_v10  ;;  %v3673_v5 = vpop.f32.mrf.mxu0 }
 0x186   :  { %v7017_v17 = vld [vmem:[#allocation11 + $0xb8c] sm:$0xf]  ;;  %v5815_v19 = vor.u32 %v6953_v15, %v5812_v16  ;;  %3880 = vmatmul.bf16.vlgmr.msra.gmra.mxu0 %v7484_v53  ;;  %v3674_v9 = vadd.f32 %v3673_v5, %v985_v58 }
 0x187   :  { %v6068_v21 = vld [vmem:[#allocation11 + $0xba8] sm:$0xf0]  ;;  %3924 = vmatpush.bf16.msrb.mxu0 %v5847_v13  ;;  %3904 = vmatpush.bf16.msra.mxu2 %v5143_v18 }
 0x188   :  { %v6777_v24 = vld [vmem:[#allocation11 + $0x40c] sm:$0xf]  ;;  %v6071_v35 = vor.u32 %v7017_v17, %v6068_v21  ;;  %3893 = vmatmul.bf16.vlgmr.msra.gmra.mxu1 %v7486_v54 }
 0x189   :  { %v5108_v25 = vld [vmem:[#allocation11 + $0x428] sm:$0xf0]  ;;  %3937 = vmatpush.bf16.msrb.mxu1 %v6103_v14  ;;  %3917 = vmatpush.bf16.msra.mxu3 %v5399_v20  ;;  %v3687_v20 = vadd.f32 %v3686_v8, %v3674_v9  ;;  %v4826_v8 = vld [vmem:[#allocation11 + $0x1d0] sm:$0xf] }
 0x18a   :  { %v6841_v26 = vld [vmem:[#allocation11 + $0x60c] sm:$0xf]  ;;  %v5111_v36 = vor.u32 %v6777_v24, %v5108_v25  ;;  %v6710_v9 = vld [vmem:[#allocation11 + $0x1ec] sm:$0xf0] }
 0x18b   :  { %v5364_v27 = vld [vmem:[#allocation11 + $0x628] sm:$0xf0]  ;;  %3925 = vmatpush.bf16.msrb.mxu0 %v5815_v19 }
 0x18c   :  { %v7089_v28 = vld [vmem:[#allocation11 + $0xdcc] sm:$0xf]  ;;  %v5367_v37 = vor.u32 %v6841_v26, %v5364_v27  ;;  %3905 = vmatpush.bf16.msra.mxu2 %v5111_v36  ;;  %v3649_v26 = vpop.f32.mrf.mxu2  ;;  %v3662_v27 = vpop.f32.mrf.mxu3 }
 0x18d   :  { %v6356_v30 = vld [vmem:[#allocation11 + $0xde8] sm:$0xf0]  ;;  %3938 = vmatpush.bf16.msrb.mxu1 %v6071_v35  ;;  %v5050_v26 = vld [vmem:[#allocation11 + $0x390] sm:$0xf] }
 0x18e   :  { %v7153_v31 = vld [vmem:[#allocation11 + $0xfcc] sm:$0xf]  ;;  %v6359_v42 = vor.u32 %v7089_v28, %v6356_v30  ;;  %3918 = vmatpush.bf16.msra.mxu3 %v5367_v37 }
 0x18f   :  { %v6612_v32 = vld [vmem:[#allocation11 + $0xfe8] sm:$0xf0]  ;;  %3906 = vmatmul.bf16.vlgmr.msra.gmra.mxu2 %v7490_v22 }
 0x190   :  { %v6945_v38 = vld [vmem:[#allocation11 + $0x94c] sm:$0xf]  ;;  %v6615_v43 = vor.u32 %v7153_v31, %v6612_v32  ;;  %3950 = vmatpush.bf16.msrb.mxu2 %v6359_v42  ;;  %v3675_v42 = vpop.f32.mrf.mxu0 }
 0x191   :  { %v5780_v41 = vld [vmem:[#allocation11 + $0x968] sm:$0xf0]  ;;  %3919 = vmatmul.bf16.vlgmr.msra.gmra.mxu3 %v7492_v23 }
 0x192   :  { %v7009_v45 = vld [vmem:[#allocation11 + $0xb4c] sm:$0xf]  ;;  %v5783_v56 = vor.u32 %v6945_v38, %v5780_v41  ;;  %3963 = vmatpush.bf16.msrb.mxu3 %v6615_v43  ;;  %v3688_v43 = vpop.f32.mrf.mxu1 }
 0x193   :  { %v6036_v46 = vld [vmem:[#allocation11 + $0xb68] sm:$0xf0] }
 0x194   :  { %v7081_v47 = vld [vmem:[#allocation11 + $0xd8c] sm:$0xf]  ;;  %v6039_v57 = vor.u32 %v7009_v45, %v6036_v46  ;;  %3926 = vmatpush.bf16.msrb.mxu0 %v5783_v56 }
 0x195   :  { %v6324_v48 = vld [vmem:[#allocation11 + $0xda8] sm:$0xf0] }
 0x196   :  { %v7145_v49 = vld [vmem:[#allocation11 + $0xf8c] sm:$0xf]  ;;  %v6327_v60 = vor.u32 %v7081_v47, %v6324_v48  ;;  %3939 = vmatpush.bf16.msrb.mxu1 %v6039_v57 }
 0x197   :  { %v6580_v50 = vld [vmem:[#allocation11 + $0xfa8] sm:$0xf0] }
 0x198   :  { %v6937_v44 = vld [vmem:[#allocation11 + $0x90c] sm:$0xf]  ;;  %v6583_v61 = vor.u32 %v7145_v49, %v6580_v50  ;;  %3951 = vmatpush.bf16.msrb.mxu2 %v6327_v60 }
 0x199   :  { %v5748_v59 = vld [vmem:[#allocation11 + $0x928] sm:$0xf0] }
 0x19a   :  { %v7001_v62 = vld [vmem:[#allocation11 + $0xb0c] sm:$0xf]  ;;  %v5751_v10 = vor.u32 %v6937_v44, %v5748_v59  ;;  %3964 = vmatpush.bf16.msrb.mxu3 %v6583_v61  ;;  %v3699_v44 = vpop.f32.mrf.mxu2  ;;  %v3712_v59 = vpop.f32.mrf.mxu3 }
 0x19b   :  { %v6004_v63 = vld [vmem:[#allocation11 + $0xb28] sm:$0xf0] }
 0x19c   :  { %v7073_v0 = vld [vmem:[#allocation11 + $0xd4c] sm:$0xf]  ;;  %v6007_v11 = vor.u32 %v7001_v62, %v6004_v63  ;;  %3927 = vmatpush.bf16.msrb.mxu0 %v5751_v10  ;;  %v5082_v10 = vld [vmem:[#allocation11 + $0x3d0] sm:$0xf] }
 0x19d   :  { %v6292_v2 = vld [vmem:[#allocation11 + $0xd68] sm:$0xf0] }
 0x19e   :  { %v7137_v3 = vld [vmem:[#allocation11 + $0xf4c] sm:$0xf]  ;;  %v6295_v14 = vor.u32 %v7073_v0, %v6292_v2  ;;  %3940 = vmatpush.bf16.msrb.mxu1 %v6007_v11  ;;  %v3700_v2 = vadd.f32 %v3699_v44, %v3687_v20  ;;  %v6774_v11 = vld [vmem:[#allocation11 + $0x3ec] sm:$0xf0]  ;;  %v4827_v20 = vor.u32 %v6710_v9, %v4826_v8 }
 0x19f   :  { %v6548_v4 = vld [vmem:[#allocation11 + $0xf68] sm:$0xf0]  ;;  %v6822_v8 = vld [vmem:[#allocation11 + $0x56c] sm:$0xf0] }
 0x1a0   :  { %v6929_v12 = vld [vmem:[#allocation11 + $0x8cc] sm:$0xf]  ;;  %v6551_v15 = vor.u32 %v7137_v3, %v6548_v4  ;;  %3952 = vmatpush.bf16.msrb.mxu2 %v6295_v14  ;;  %v5530_v9 = vld [vmem:[#allocation11 + $0x750] sm:$0xf] }
 0x1a1   :  { %v5716_v13 = vld [vmem:[#allocation11 + $0x8e8] sm:$0xf0] }
 0x1a2   :  { %v6993_v16 = vld [vmem:[#allocation11 + $0xacc] sm:$0xf]  ;;  %v5719_v28 = vor.u32 %v6929_v12, %v5716_v13  ;;  %3965 = vmatpush.bf16.msrb.mxu3 %v6551_v15  ;;  %v7534_v13 = vadd.f32 %v3712_v59, %v3700_v2  ;;  %v6750_v2 = vld [vmem:[#allocation11 + $0x32c] sm:$0xf0] }
 0x1a3   :  { %v5972_v17 = vld [vmem:[#allocation11 + $0xae8] sm:$0xf0] }
 0x1a4   :  { %v7065_v18 = vld [vmem:[#allocation11 + $0xd0c] sm:$0xf]  ;;  %v5975_v30 = vor.u32 %v6993_v16, %v5972_v17  ;;  %3928 = vmatpush.bf16.msrb.mxu0 %v5719_v28 }
 0x1a5   :  { %v6260_v21 = vld [vmem:[#allocation11 + $0xd28] sm:$0xf0] }
 0x1a6   :  { %v7129_v24 = vld [vmem:[#allocation11 + $0xf0c] sm:$0xf]  ;;  %v6263_v33 = vor.u32 %v7065_v18, %v6260_v21  ;;  %3941 = vmatpush.bf16.msrb.mxu1 %v5975_v30  ;;  %v5083_v21 = vor.u32 %v6774_v11, %v5082_v10  ;;  %v6766_v30 = vld [vmem:[#allocation11 + $0x3ac] sm:$0xf0] }
 0x1a7   :  { %v6516_v25 = vld [vmem:[#allocation11 + $0xf28] sm:$0xf0]  ;;  %v5051_v43 = vor.u32 %v6766_v30, %v5050_v26  ;;  %v6886_v10 = vld [vmem:[#allocation11 + $0x76c] sm:$0xf0] }
 0x1a8   :  { %v6921_v31 = vld [vmem:[#allocation11 + $0x88c] sm:$0xf]  ;;  %v6519_v34 = vor.u32 %v7129_v24, %v6516_v25  ;;  %3953 = vmatpush.bf16.msrb.mxu2 %v6263_v33  ;;  %v4794_v24 = vld [vmem:[#allocation11 + $0x190] sm:$0xf] }
 0x1a9   :  { %v5684_v32 = vld [vmem:[#allocation11 + $0x8a8] sm:$0xf0]  ;;  %v6702_v25 = vld [vmem:[#allocation11 + $0x1ac] sm:$0xf0] }
 0x1aa   :  { %v6985_v19 = vld [vmem:[#allocation11 + $0xa8c] sm:$0xf]  ;;  %v5687_v45 = vor.u32 %v6921_v31, %v5684_v32  ;;  %3966 = vmatpush.bf16.msrb.mxu3 %v6519_v34  ;;  %v4795_v42 = vor.u32 %v6702_v25, %v4794_v24  ;;  %v4954_v24 = vld [vmem:[#allocation11 + $0x2d0] sm:$0xf] }
 0x1ab   :  { %v5940_v35 = vld [vmem:[#allocation11 + $0xaa8] sm:$0xf0]  ;;  %v6742_v25 = vld [vmem:[#allocation11 + $0x2ec] sm:$0xf0] }
 0x1ac   :  { %v7057_v36 = vld [vmem:[#allocation11 + $0xccc] sm:$0xf]  ;;  %v5943_v46 = vor.u32 %v6985_v19, %v5940_v35  ;;  %3929 = vmatpush.bf16.msrb.mxu0 %v5687_v45  ;;  %v5338_v19 = vld [vmem:[#allocation11 + $0x5d0] sm:$0xf]  ;;  %v3701_v35 = vpop.f32.mrf.mxu2 }
 0x1ad   :  { %v6228_v37 = vld [vmem:[#allocation11 + $0xce8] sm:$0xf0]  ;;  %v5242_v26 = vld [vmem:[#allocation11 + $0x510] sm:$0xf] }
 0x1ae   :  { %v7121_v38 = vld [vmem:[#allocation11 + $0xecc] sm:$0xf]  ;;  %v6231_v49 = vor.u32 %v7057_v36, %v6228_v37  ;;  %3942 = vmatpush.bf16.msrb.mxu1 %v5943_v46  ;;  %v3714_v36 = vpop.f32.mrf.mxu3  ;;  %v6838_v37 = vld [vmem:[#allocation11 + $0x5ec] sm:$0xf0] }
 0x1af   :  { %v6484_v41 = vld [vmem:[#allocation11 + $0xee8] sm:$0xf0]  ;;  %v6878_v30 = vld [vmem:[#allocation11 + $0x72c] sm:$0xf0] }
 0x1b0   :  { %v6913_v47 = vld [vmem:[#allocation11 + $0x84c] sm:$0xf]  ;;  %v6487_v50 = vor.u32 %v7121_v38, %v6484_v41  ;;  %3954 = vmatpush.bf16.msrb.mxu2 %v6231_v49  ;;  %v5594_v38 = vld [vmem:[#allocation11 + $0x7d0] sm:$0xf]  ;;  %v5339_v49 = vor.u32 %v6838_v37, %v5338_v19 }
 0x1b1   :  { %v5652_v48 = vld [vmem:[#allocation11 + $0x868] sm:$0xf0]  ;;  %v6902_v41 = vld [vmem:[#allocation11 + $0x7ec] sm:$0xf0] }
 0x1b2   :  { %v6977_v51 = vld [vmem:[#allocation11 + $0xa4c] sm:$0xf]  ;;  %v5655_v60 = vor.u32 %v6913_v47, %v5652_v48  ;;  %3967 = vmatpush.bf16.msrb.mxu3 %v6487_v50  ;;  %v4762_v47 = vld [vmem:[#allocation11 + $0x150] sm:$0xf]  ;;  %v5595_v50 = vor.u32 %v6902_v41, %v5594_v38 }
 0x1b3   :  { %v5908_v52 = vld [vmem:[#allocation11 + $0xa68] sm:$0xf0]  ;;  %v6694_v48 = vld [vmem:[#allocation11 + $0x16c] sm:$0xf0] }
 0x1b4   :  { %v7049_v55 = vld [vmem:[#allocation11 + $0xc8c] sm:$0xf]  ;;  %v5911_v61 = vor.u32 %v6977_v51, %v5908_v52  ;;  %3930 = vmatpush.bf16.msrb.mxu0 %v5655_v60  ;;  %v5018_v51 = vld [vmem:[#allocation11 + $0x350] sm:$0xf]  ;;  %v4763_v44 = vor.u32 %v6694_v48, %v4762_v47 }
 0x1b5   :  { %v6196_v56 = vld [vmem:[#allocation11 + $0xca8] sm:$0xf0]  ;;  %v6758_v52 = vld [vmem:[#allocation11 + $0x36c] sm:$0xf0] }
 0x1b6   :  { %v7113_v57 = vld [vmem:[#allocation11 + $0xe8c] sm:$0xf]  ;;  %v6199_v3 = vor.u32 %v7049_v55, %v6196_v56  ;;  %3943 = vmatpush.bf16.msrb.mxu1 %v5911_v61  ;;  %v5306_v55 = vld [vmem:[#allocation11 + $0x590] sm:$0xf]  ;;  %v5019_v59 = vor.u32 %v6758_v52, %v5018_v51 }
 0x1b7   :  { %v6452_v58 = vld [vmem:[#allocation11 + $0xea8] sm:$0xf0]  ;;  %v6830_v56 = vld [vmem:[#allocation11 + $0x5ac] sm:$0xf0] }
 0x1b8   :  { %v6905_v62 = vld [vmem:[#allocation11 + $0x80c] sm:$0xf]  ;;  %v6455_v4 = vor.u32 %v7113_v57, %v6452_v58  ;;  %3955 = vmatpush.bf16.msrb.mxu2 %v6199_v3  ;;  %v5562_v57 = vld [vmem:[#allocation11 + $0x790] sm:$0xf] }
 0x1b9   :  { %v5620_v63 = vld [vmem:[#allocation11 + $0x828] sm:$0xf0]  ;;  %v6894_v58 = vld [vmem:[#allocation11 + $0x7ac] sm:$0xf0] }
 0x1ba   :  { %v6969_v0 = vld [vmem:[#allocation11 + $0xa0c] sm:$0xf]  ;;  %v5623_v17 = vor.u32 %v6905_v62, %v5620_v63  ;;  %3968 = vmatpush.bf16.msrb.mxu3 %v6455_v4  ;;  %v4730_v60 = vld [vmem:[#allocation11 + $0x110] sm:$0xf]  ;;  %v5307_v62 = vor.u32 %v6830_v56, %v5306_v55  ;;  %v5563_v63 = vor.u32 %v6894_v58, %v5562_v57  ;;  %v3725_v4 = vpop.f32.mrf.mxu0 }
 0x1bb   :  { %v5876_v5 = vld [vmem:[#allocation11 + $0xa28] sm:$0xf0]  ;;  %v6686_v61 = vld [vmem:[#allocation11 + $0x12c] sm:$0xf0]  ;;  %v3726_v11 = vadd.f32 %v3725_v4, %v7534_v13 }
 0x1bc   :  { %v7041_v12 = vld [vmem:[#allocation11 + $0xc4c] sm:$0xf]  ;;  %v5879_v18 = vor.u32 %v6969_v0, %v5876_v5  ;;  %3931 = vmatpush.bf16.msrb.mxu0 %v5623_v17  ;;  %v4986_v0 = vld [vmem:[#allocation11 + $0x310] sm:$0xf]  ;;  %v3738_v5 = vpop.f32.mrf.mxu1 }
 0x1bd   :  { %v6164_v14 = vld [vmem:[#allocation11 + $0xc68] sm:$0xf0]  ;;  %v5274_v3 = vld [vmem:[#allocation11 + $0x550] sm:$0xf] }
 0x1be   :  { %v7105_v15 = vld [vmem:[#allocation11 + $0xe4c] sm:$0xf]  ;;  %v6167_v27 = vor.u32 %v7041_v12, %v6164_v14  ;;  %3944 = vmatpush.bf16.msrb.mxu1 %v5879_v18  ;;  %v4731_v14 = vor.u32 %v6686_v61, %v4730_v60  ;;  %v6678_v17 = vld [vmem:[#allocation11 + $0xec] sm:$0xf0]  ;;  %v3739_v18 = vadd.f32 %v3738_v5, %v3726_v11  ;;  %v3764_v60 = vpop.f32.mrf.mxu3 }
 0x1bf   :  { %v6420_v16 = vld [vmem:[#allocation11 + $0xe68] sm:$0xf0]  ;;  %3932 = vmatmul.bf16.vlgmr.msrb.gmra.mxu0 %v7496_v6  ;;  %v4922_v36 = vld [vmem:[#allocation11 + $0x290] sm:$0xf] }
 0x1c0   :  { %v6423_v28 = vor.u32 %v7105_v15, %v6420_v16  ;;  %v7033_v31 = vld [vmem:[#allocation11 + $0xc0c] sm:$0xf]  ;;  %3976 = vmatpush.bf16.msra.mxu0 %v4827_v20  ;;  %3956 = vmatpush.bf16.msrb.mxu2 %v6167_v27  ;;  %v4987_v15 = vor.u32 %v6750_v2, %v4986_v0  ;;  %v4698_v16 = vld [vmem:[#allocation11 + $0xd0] sm:$0xf]  ;;  %v5275_v20 = vor.u32 %v6822_v8, %v5274_v3  ;;  %v4392_v0 = vmax.f32 %v7530_v1, 0.0 }
 0x1c1   :  { %v6132_v32 = vld [vmem:[#allocation11 + $0xc28] sm:$0xf0]  ;;  %3945 = vmatmul.bf16.vlgmr.msrb.gmra.mxu1 %v7498_v7  ;;  %v6814_v27 = vld [vmem:[#allocation11 + $0x52c] sm:$0xf0]  ;;  %v4699_v13 = vor.u32 %v6678_v17, %v4698_v16 }
 0x1c2   :  { %v7097_v33 = vld [vmem:[#allocation11 + $0xe0c] sm:$0xf]  ;;  %3989 = vmatpush.bf16.msra.mxu1 %v5083_v21  ;;  %3969 = vmatpush.bf16.msrb.mxu3 %v6423_v28  ;;  %v6135_v45 = vor.u32 %v7033_v31, %v6132_v32  ;;  %v5531_v21 = vor.u32 %v6886_v10, %v5530_v9  ;;  %v5498_v28 = vld [vmem:[#allocation11 + $0x710] sm:$0xf]  ;;  %v4955_v32 = vor.u32 %v6742_v25, %v4954_v24  ;;  %v3727_v41 = vpop.f32.mrf.mxu0 }
 0x1c3   :  { %v6388_v34 = vld [vmem:[#allocation11 + $0xe28] sm:$0xf0]  ;;  %v5243_v19 = vor.u32 %v6814_v27, %v5242_v26  ;;  %v5499_v35 = vor.u32 %v6878_v30, %v5498_v28  ;;  %v6734_v37 = vld [vmem:[#allocation11 + $0x2ac] sm:$0xf0] }
 0x1c4   :  { %v6391_v46 = vor.u32 %v7097_v33, %v6388_v34  ;;  %3977 = vmatpush.bf16.msra.mxu0 %v4795_v42  ;;  %3957 = vmatpush.bf16.msrb.mxu2 %v6135_v45  ;;  %v4400_v12 = vld [vmem:[#allocation14] sm:$0xff]  ;;  %v4666_v33 = vld [vmem:[#allocation11 + $0x90] sm:$0xf]  ;;  %v3740_v42 = vpop.f32.mrf.mxu1 }
 0x1c5   :  { %v7541_v31 = vunpack.c.l.bf16 %v4400_v12  ;;  %v6670_v34 = vld [vmem:[#allocation11 + $0xac] sm:$0xf0] }
 0x1c6   :  { %3990 = vmatpush.bf16.msra.mxu1 %v5051_v43  ;;  %3970 = vmatpush.bf16.msrb.mxu3 %v6391_v46  ;;  %v5210_v38 = vld [vmem:[#allocation11 + $0x4d0] sm:$0xf]  ;;  %v3766_v42 = vpop.f32.mrf.mxu3 }
 0x1c7   :  { %3958 = vmatmul.bf16.vlgmr.msrb.gmra.mxu2 %v7502_v39  ;;  %v6806_v43 = vld [vmem:[#allocation11 + $0x4ec] sm:$0xf0]  ;;  %v4405_v47 = vperm.slane %v7541_v31, 0  ;;  %v4406_v48 = vperm.slane %v7541_v31, 2 }
 0x1c8   :  { %4002 = vmatpush.bf16.msra.mxu2 %v5339_v49  ;;  %3978 = vmatpush.bf16.msra.mxu0 %v4763_v44  ;;  %v5466_v45 = vld [vmem:[#allocation11 + $0x6d0] sm:$0xf]  ;;  %v4667_v49 = vor.u32 %v6670_v34, %v4666_v33  ;;  %v5211_v55 = vor.u32 %v6806_v43, %v5210_v38 }
 0x1c9   :  { %3971 = vmatmul.bf16.vlgmr.msrb.gmra.mxu3 %v7504_v40  ;;  %v6870_v46 = vld [vmem:[#allocation11 + $0x6ec] sm:$0xf0]  ;;  %v4421_v2 = vperm.slane %v4405_v47, 0  ;;  %v4422_v4 = vperm.slane %v4406_v48, 0 }
 0x1ca   :  { %4015 = vmatpush.bf16.msra.mxu3 %v5595_v50  ;;  %3991 = vmatpush.bf16.msra.mxu1 %v5019_v59  ;;  %v4923_v50 = vor.u32 %v6734_v37, %v4922_v36  ;;  %v4634_v51 = vld [vmem:[#allocation11 + $0x50] sm:$0xf]  ;;  %v5467_v56 = vor.u32 %v6870_v46, %v5466_v45  ;;  %v3751_v59 = vpop.f32.mrf.mxu2 }
 0x1cb   :  { %v6662_v52 = vld [vmem:[#allocation11 + $0x6c] sm:$0xf0]  ;;  %v3752_v3 = vadd.f32 %v3751_v59, %v3739_v18  ;;  %v4429_v28 = vmul.f32 %v4421_v2, %v4392_v0 }
 0x1cc   :  { %4003 = vmatpush.bf16.msra.mxu2 %v5307_v62  ;;  %3979 = vmatpush.bf16.msra.mxu0 %v4731_v14  ;;  %v4890_v57 = vld [vmem:[#allocation11 + $0x250] sm:$0xf]  ;;  %v4635_v8 = vor.u32 %v6662_v52, %v4634_v51 }
 0x1cd   :  { %v6726_v58 = vld [vmem:[#allocation11 + $0x26c] sm:$0xf0]  ;;  %v3765_v14 = vadd.f32 %v3764_v60, %v3752_v3 }
 0x1ce   :  { %4016 = vmatpush.bf16.msra.mxu3 %v5563_v63  ;;  %3992 = vmatpush.bf16.msra.mxu1 %v4987_v15  ;;  %v5178_v44 = vld [vmem:[#allocation11 + $0x490] sm:$0xf]  ;;  %v4891_v9 = vor.u32 %v6726_v58, %v4890_v57 }
 0x1cf   :  { %v6798_v61 = vld [vmem:[#allocation11 + $0x4ac] sm:$0xf0]  ;;  %v4393_v25 = vmax.f32 %v3765_v14, 0.0 }
 0x1d0   :  { %4004 = vmatpush.bf16.msra.mxu2 %v5275_v20  ;;  %3980 = vmatpush.bf16.msra.mxu0 %v4699_v13  ;;  %v5434_v62 = vld [vmem:[#allocation11 + $0x690] sm:$0xf]  ;;  %v5179_v15 = vor.u32 %v6798_v61, %v5178_v44 }
 0x1d1   :  { %v6862_v63 = vld [vmem:[#allocation11 + $0x6ac] sm:$0xf0] }
 0x1d2   :  { %4017 = vmatpush.bf16.msra.mxu3 %v5531_v21  ;;  %3993 = vmatpush.bf16.msra.mxu1 %v4955_v32  ;;  %v4602_v5 = vld [vmem:[#allocation11 + $0x10] sm:$0xf]  ;;  %v5435_v16 = vor.u32 %v6862_v63, %v5434_v62  ;;  %v4430_v32 = vmul.f32 %v4422_v4, %v4393_v25  ;;  %v3753_v41 = vpop.f32.mrf.mxu2 }
 0x1d3   :  { %v6654_v10 = vld [vmem:[#allocation11 + $0x2c] sm:$0xf0] }
 0x1d4   :  { %4005 = vmatpush.bf16.msra.mxu2 %v5243_v19  ;;  %3981 = vmatpush.bf16.msra.mxu0 %v4667_v49  ;;  %v4858_v11 = vld [vmem:[#allocation11 + $0x210] sm:$0xf]  ;;  %v4603_v30 = vor.u32 %v6654_v10, %v4602_v5  ;;  %v7546_v47 = vadd.f32 %v4430_v32, %v4429_v28 }
 0x1d5   :  { %v6718_v12 = vld [vmem:[#allocation11 + $0x22c] sm:$0xf0] }
 0x1d6   :  { %4018 = vmatpush.bf16.msra.mxu3 %v5499_v35  ;;  %3994 = vmatpush.bf16.msra.mxu1 %v4923_v50  ;;  %v5850_v17 = vld [vmem:[#allocation11 + $0x9d0] sm:$0xf]  ;;  %v4859_v13 = vor.u32 %v6718_v12, %v4858_v11 }
 0x1d7   :  { %v6966_v20 = vld [vmem:[#allocation11 + $0x9ec] sm:$0xf0] }
 0x1d8   :  { %4006 = vmatpush.bf16.msra.mxu2 %v5211_v55  ;;  %v6106_v21 = vld [vmem:[#allocation11 + $0xbd0] sm:$0xf]  ;;  %3982 = vmatpush.bf16.msra.mxu0 %v4635_v8  ;;  %v5851_v33 = vor.u32 %v6966_v20, %v5850_v17  ;;  %v986_v8 = vperm.slane %v7520_v29, 2 }
 0x1d9   :  { %v7030_v1 = vld [vmem:[#allocation11 + $0xbec] sm:$0xf0] }
 0x1da   :  { %4019 = vmatpush.bf16.msra.mxu3 %v5467_v56  ;;  %v5146_v24 = vld [vmem:[#allocation11 + $0x450] sm:$0xf]  ;;  %3995 = vmatpush.bf16.msra.mxu1 %v4891_v9  ;;  %v6107_v34 = vor.u32 %v7030_v1, %v6106_v21  ;;  %v3777_v21 = vpop.f32.mrf.mxu0  ;;  %v3790_v1 = vpop.f32.mrf.mxu1 }
 0x1db   :  { %v6790_v18 = vld [vmem:[#allocation11 + $0x46c] sm:$0xf0]  ;;  %v3778_v29 = vadd.f32 %v3777_v21, %v986_v8 }
 0x1dc   :  { %v5402_v26 = vld [vmem:[#allocation11 + $0x650] sm:$0xf]  ;;  %4007 = vmatpush.bf16.msra.mxu2 %v5179_v15  ;;  %v5147_v37 = vor.u32 %v6790_v18, %v5146_v24  ;;  %3983 = vmatpush.bf16.msra.mxu0 %v4603_v30 }
 0x1dd   :  { %v6854_v27 = vld [vmem:[#allocation11 + $0x66c] sm:$0xf0] }
 0x1de   :  { %4020 = vmatpush.bf16.msra.mxu3 %v5435_v16  ;;  %v5818_v19 = vld [vmem:[#allocation11 + $0x990] sm:$0xf]  ;;  %v5403_v38 = vor.u32 %v6854_v27, %v5402_v26  ;;  %3996 = vmatpush.bf16.msra.mxu1 %v4859_v13  ;;  %v3791_v13 = vadd.f32 %v3790_v1, %v3778_v29  ;;  %v6770_v29 = vld [vmem:[#allocation11 + $0x3d4] sm:$0xf] }
 0x1df   :  { %v6958_v35 = vld [vmem:[#allocation11 + $0x9ac] sm:$0xf0]  ;;  %3984 = vmatmul.bf16.vlgmr.msra.gmra.mxu0 %v7484_v53 }
 0x1e0   :  { %v6074_v36 = vld [vmem:[#allocation11 + $0xb90] sm:$0xf]  ;;  %4028 = vmatpush.bf16.msrb.mxu0 %v5851_v33  ;;  %v5819_v56 = vor.u32 %v6958_v35, %v5818_v19  ;;  %4008 = vmatpush.bf16.msra.mxu2 %v5147_v37 }
 0x1e1   :  { %v7022_v43 = vld [vmem:[#allocation11 + $0xbac] sm:$0xf0]  ;;  %3997 = vmatmul.bf16.vlgmr.msra.gmra.mxu1 %v7486_v54 }
 0x1e2   :  { %v5114_v45 = vld [vmem:[#allocation11 + $0x410] sm:$0xf]  ;;  %4041 = vmatpush.bf16.msrb.mxu1 %v6107_v34  ;;  %v6075_v57 = vor.u32 %v7022_v43, %v6074_v36  ;;  %4021 = vmatpush.bf16.msra.mxu3 %v5403_v38 }
 0x1e3   :  { %v6782_v46 = vld [vmem:[#allocation11 + $0x42c] sm:$0xf0] }
 0x1e4   :  { %v5370_v48 = vld [vmem:[#allocation11 + $0x610] sm:$0xf]  ;;  %v5115_v58 = vor.u32 %v6782_v46, %v5114_v45  ;;  %4029 = vmatpush.bf16.msrb.mxu0 %v5819_v56 }
 0x1e5   :  { %v6846_v49 = vld [vmem:[#allocation11 + $0x62c] sm:$0xf0] }
 0x1e6   :  { %v6362_v50 = vld [vmem:[#allocation11 + $0xdd0] sm:$0xf]  ;;  %v5371_v44 = vor.u32 %v6846_v49, %v5370_v48  ;;  %4042 = vmatpush.bf16.msrb.mxu1 %v6075_v57  ;;  %4009 = vmatpush.bf16.msra.mxu2 %v5115_v58 }
 0x1e7   :  { %v7094_v51 = vld [vmem:[#allocation11 + $0xdec] sm:$0xf0] }
 0x1e8   :  { %v6618_v52 = vld [vmem:[#allocation11 + $0xfd0] sm:$0xf]  ;;  %v6363_v61 = vor.u32 %v7094_v51, %v6362_v50  ;;  %4022 = vmatpush.bf16.msra.mxu3 %v5371_v44 }
 0x1e9   :  { %v7158_v55 = vld [vmem:[#allocation11 + $0xfec] sm:$0xf0]  ;;  %4010 = vmatmul.bf16.vlgmr.msra.gmra.mxu2 %v7490_v22 }
 0x1ea   :  { %v5786_v59 = vld [vmem:[#allocation11 + $0x950] sm:$0xf]  ;;  %v6619_v62 = vor.u32 %v7158_v55, %v6618_v52  ;;  %4054 = vmatpush.bf16.msrb.mxu2 %v6363_v61  ;;  %v3779_v52 = vpop.f32.mrf.mxu0  ;;  %v3792_v55 = vpop.f32.mrf.mxu1 }
 0x1eb   :  { %v6950_v60 = vld [vmem:[#allocation11 + $0x96c] sm:$0xf0]  ;;  %4023 = vmatmul.bf16.vlgmr.msra.gmra.mxu3 %v7492_v23  ;;  %v5340_v52 = vld [vmem:[#allocation11 + $0x5f0] sm:$0xf0] }
 0x1ec   :  { %v6042_v63 = vld [vmem:[#allocation11 + $0xb50] sm:$0xf]  ;;  %v5787_v9 = vor.u32 %v6950_v60, %v5786_v59  ;;  %4067 = vmatpush.bf16.msrb.mxu3 %v6619_v62  ;;  %v6898_v55 = vld [vmem:[#allocation11 + $0x7d4] sm:$0xf] }
 0x1ed   :  { %v7014_v0 = vld [vmem:[#allocation11 + $0xb6c] sm:$0xf0] }
 0x1ee   :  { %v6330_v2 = vld [vmem:[#allocation11 + $0xd90] sm:$0xf]  ;;  %v6043_v10 = vor.u32 %v7014_v0, %v6042_v63  ;;  %4030 = vmatpush.bf16.msrb.mxu0 %v5787_v9 }
 0x1ef   :  { %v7086_v3 = vld [vmem:[#allocation11 + $0xdac] sm:$0xf0] }
 0x1f0   :  { %v6586_v4 = vld [vmem:[#allocation11 + $0xf90] sm:$0xf]  ;;  %v6331_v14 = vor.u32 %v7086_v3, %v6330_v2  ;;  %4043 = vmatpush.bf16.msrb.mxu1 %v6043_v10 }
 0x1f1   :  { %v7150_v5 = vld [vmem:[#allocation11 + $0xfac] sm:$0xf0] }
 0x1f2   :  { %v5754_v11 = vld [vmem:[#allocation11 + $0x910] sm:$0xf]  ;;  %v6587_v15 = vor.u32 %v7150_v5, %v6586_v4  ;;  %4055 = vmatpush.bf16.msrb.mxu2 %v6331_v14  ;;  %v3803_v4 = vpop.f32.mrf.mxu2  ;;  %v3816_v5 = vpop.f32.mrf.mxu3 }
 0x1f3   :  { %v6942_v12 = vld [vmem:[#allocation11 + $0x92c] sm:$0xf0] }
 0x1f4   :  { %v6010_v16 = vld [vmem:[#allocation11 + $0xb10] sm:$0xf]  ;;  %v5755_v26 = vor.u32 %v6942_v12, %v5754_v11  ;;  %4068 = vmatpush.bf16.msrb.mxu3 %v6587_v15  ;;  %v3804_v11 = vadd.f32 %v3803_v4, %v3791_v13  ;;  %v5308_v4 = vld [vmem:[#allocation11 + $0x5b0] sm:$0xf0] }
 0x1f5   :  { %v7006_v17 = vld [vmem:[#allocation11 + $0xb2c] sm:$0xf0] }
 0x1f6   :  { %v6298_v20 = vld [vmem:[#allocation11 + $0xd50] sm:$0xf]  ;;  %v6011_v27 = vor.u32 %v7006_v17, %v6010_v16  ;;  %4031 = vmatpush.bf16.msrb.mxu0 %v5755_v26  ;;  %v5084_v26 = vld [vmem:[#allocation11 + $0x3f0] sm:$0xf0] }
 0x1f7   :  { %v7078_v24 = vld [vmem:[#allocation11 + $0xd6c] sm:$0xf0] }
 0x1f8   :  { %v6554_v18 = vld [vmem:[#allocation11 + $0xf50] sm:$0xf]  ;;  %v6299_v32 = vor.u32 %v7078_v24, %v6298_v20  ;;  %4044 = vmatpush.bf16.msrb.mxu1 %v6011_v27  ;;  %v7553_v20 = vadd.f32 %v3816_v5, %v3804_v11  ;;  %v6890_v5 = vld [vmem:[#allocation11 + $0x794] sm:$0xf] }
 0x1f9   :  { %v7142_v25 = vld [vmem:[#allocation11 + $0xf6c] sm:$0xf0]  ;;  %v6682_v11 = vld [vmem:[#allocation11 + $0x114] sm:$0xf] }
 0x1fa   :  { %v5722_v28 = vld [vmem:[#allocation11 + $0x8d0] sm:$0xf]  ;;  %v6555_v33 = vor.u32 %v7142_v25, %v6554_v18  ;;  %4056 = vmatpush.bf16.msrb.mxu2 %v6299_v32  ;;  %v6706_v18 = vld [vmem:[#allocation11 + $0x1d4] sm:$0xf] }
 0x1fb   :  { %v6934_v30 = vld [vmem:[#allocation11 + $0x8ec] sm:$0xf0]  ;;  %v4828_v25 = vld [vmem:[#allocation11 + $0x1f0] sm:$0xf0] }
 0x1fc   :  { %v5978_v34 = vld [vmem:[#allocation11 + $0xad0] sm:$0xf]  ;;  %v5723_v41 = vor.u32 %v6934_v30, %v5722_v28  ;;  %4069 = vmatpush.bf16.msrb.mxu3 %v6555_v33 }
 0x1fd   :  { %v6998_v19 = vld [vmem:[#allocation11 + $0xaec] sm:$0xf0] }
 0x1fe   :  { %v6266_v35 = vld [vmem:[#allocation11 + $0xd10] sm:$0xf]  ;;  %v5979_v42 = vor.u32 %v6998_v19, %v5978_v34  ;;  %4032 = vmatpush.bf16.msrb.mxu0 %v5723_v41  ;;  %v4831_v34 = vor.u32 %v6706_v18, %v4828_v25  ;;  %v5087_v19 = vor.u32 %v6770_v29, %v5084_v26  ;;  %v5276_v18 = vld [vmem:[#allocation11 + $0x570] sm:$0xf0] }
 0x1ff   :  { %v7070_v36 = vld [vmem:[#allocation11 + $0xd2c] sm:$0xf0]  ;;  %v6882_v25 = vld [vmem:[#allocation11 + $0x754] sm:$0xf] }
 0x200   :  { %v6522_v37 = vld [vmem:[#allocation11 + $0xf10] sm:$0xf]  ;;  %v6267_v46 = vor.u32 %v7070_v36, %v6266_v35  ;;  %4045 = vmatpush.bf16.msrb.mxu1 %v5979_v42  ;;  %v6698_v35 = vld [vmem:[#allocation11 + $0x194] sm:$0xf]  ;;  %v3805_v42 = vpop.f32.mrf.mxu2 }
 0x201   :  { %v7134_v38 = vld [vmem:[#allocation11 + $0xf2c] sm:$0xf0]  ;;  %v4796_v36 = vld [vmem:[#allocation11 + $0x1b0] sm:$0xf0] }
 0x202   :  { %v5690_v43 = vld [vmem:[#allocation11 + $0x890] sm:$0xf]  ;;  %v6523_v48 = vor.u32 %v7134_v38, %v6522_v37  ;;  %4057 = vmatpush.bf16.msrb.mxu2 %v6267_v46  ;;  %v6762_v37 = vld [vmem:[#allocation11 + $0x394] sm:$0xf] }
 0x203   :  { %v6926_v45 = vld [vmem:[#allocation11 + $0x8ac] sm:$0xf0]  ;;  %v5532_v29 = vld [vmem:[#allocation11 + $0x770] sm:$0xf0] }
 0x204   :  { %v5946_v49 = vld [vmem:[#allocation11 + $0xa90] sm:$0xf]  ;;  %v5691_v44 = vor.u32 %v6926_v45, %v5690_v43  ;;  %4070 = vmatpush.bf16.msrb.mxu3 %v6523_v48  ;;  %v3818_v43 = vpop.f32.mrf.mxu3  ;;  %v5052_v45 = vld [vmem:[#allocation11 + $0x3b0] sm:$0xf0] }
 0x205   :  { %v6990_v50 = vld [vmem:[#allocation11 + $0xaac] sm:$0xf0]  ;;  %v6666_v43 = vld [vmem:[#allocation11 + $0x94] sm:$0xf] }
 0x206   :  { %v6234_v51 = vld [vmem:[#allocation11 + $0xcd0] sm:$0xf]  ;;  %v5947_v59 = vor.u32 %v6990_v50, %v5946_v49  ;;  %4033 = vmatpush.bf16.msrb.mxu0 %v5691_v44 }
 0x207   :  { %v7062_v56 = vld [vmem:[#allocation11 + $0xcec] sm:$0xf0] }
 0x208   :  { %v6490_v57 = vld [vmem:[#allocation11 + $0xed0] sm:$0xf]  ;;  %v6235_v62 = vor.u32 %v7062_v56, %v6234_v51  ;;  %4046 = vmatpush.bf16.msrb.mxu1 %v5947_v59  ;;  %v6834_v51 = vld [vmem:[#allocation11 + $0x5d4] sm:$0xf] }
 0x209   :  { %v7126_v58 = vld [vmem:[#allocation11 + $0xeec] sm:$0xf0]  ;;  %v5596_v56 = vld [vmem:[#allocation11 + $0x7f0] sm:$0xf0] }
 0x20a   :  { %v5658_v60 = vld [vmem:[#allocation11 + $0x850] sm:$0xf]  ;;  %v6491_v63 = vor.u32 %v7126_v58, %v6490_v57  ;;  %4058 = vmatpush.bf16.msrb.mxu2 %v6235_v62  ;;  %v4799_v57 = vor.u32 %v6698_v35, %v4796_v36  ;;  %v5055_v58 = vor.u32 %v6762_v37, %v5052_v45  ;;  %v5343_v62 = vor.u32 %v6834_v51, %v5340_v52  ;;  %v4956_v35 = vld [vmem:[#allocation11 + $0x2f0] sm:$0xf0] }
 0x20b   :  { %v6918_v61 = vld [vmem:[#allocation11 + $0x86c] sm:$0xf0]  ;;  %v6810_v36 = vld [vmem:[#allocation11 + $0x514] sm:$0xf] }
 0x20c   :  { %v5914_v0 = vld [vmem:[#allocation11 + $0xa50] sm:$0xf]  ;;  %v5659_v12 = vor.u32 %v6918_v61, %v5658_v60  ;;  %4071 = vmatpush.bf16.msrb.mxu3 %v6491_v63  ;;  %v6690_v60 = vld [vmem:[#allocation11 + $0x154] sm:$0xf]  ;;  %v5599_v63 = vor.u32 %v6898_v55, %v5596_v56 }
 0x20d   :  { %v6982_v2 = vld [vmem:[#allocation11 + $0xa6c] sm:$0xf0]  ;;  %v4764_v61 = vld [vmem:[#allocation11 + $0x170] sm:$0xf0] }
 0x20e   :  { %v6202_v3 = vld [vmem:[#allocation11 + $0xc90] sm:$0xf]  ;;  %v5915_v14 = vor.u32 %v6982_v2, %v5914_v0  ;;  %4034 = vmatpush.bf16.msrb.mxu0 %v5659_v12  ;;  %v6754_v0 = vld [vmem:[#allocation11 + $0x354] sm:$0xf] }
 0x20f   :  { %v7054_v8 = vld [vmem:[#allocation11 + $0xcac] sm:$0xf0]  ;;  %v5020_v2 = vld [vmem:[#allocation11 + $0x370] sm:$0xf0] }
 0x210   :  { %v6458_v9 = vld [vmem:[#allocation11 + $0xe90] sm:$0xf]  ;;  %v6203_v21 = vor.u32 %v7054_v8, %v6202_v3  ;;  %4047 = vmatpush.bf16.msrb.mxu1 %v5915_v14  ;;  %v6826_v3 = vld [vmem:[#allocation11 + $0x594] sm:$0xf] }
 0x211   :  { %v7118_v10 = vld [vmem:[#allocation11 + $0xeac] sm:$0xf0]  ;;  %v5564_v8 = vld [vmem:[#allocation11 + $0x7b0] sm:$0xf0]  ;;  %v5311_v14 = vor.u32 %v6826_v3, %v5308_v4 }
 0x212   :  { %v5626_v15 = vld [vmem:[#allocation11 + $0x810] sm:$0xf]  ;;  %v6459_v1 = vor.u32 %v7118_v10, %v6458_v9  ;;  %4059 = vmatpush.bf16.msrb.mxu2 %v6203_v21  ;;  %v4767_v9 = vor.u32 %v6690_v60, %v4764_v61  ;;  %v5023_v10 = vor.u32 %v6754_v0, %v5020_v2  ;;  %v4732_v12 = vld [vmem:[#allocation11 + $0x130] sm:$0xf0] }
 0x213   :  { %v6910_v16 = vld [vmem:[#allocation11 + $0x82c] sm:$0xf0]  ;;  %v6818_v21 = vld [vmem:[#allocation11 + $0x554] sm:$0xf] }
 0x214   :  { %v5882_v17 = vld [vmem:[#allocation11 + $0xa10] sm:$0xf]  ;;  %v5627_v32 = vor.u32 %v6910_v16, %v5626_v15  ;;  %4072 = vmatpush.bf16.msrb.mxu3 %v6459_v1  ;;  %v5567_v15 = vor.u32 %v6890_v5, %v5564_v8  ;;  %v6746_v16 = vld [vmem:[#allocation11 + $0x314] sm:$0xf]  ;;  %v3829_v1 = vpop.f32.mrf.mxu0  ;;  %v3855_v5 = vpop.f32.mrf.mxu2 }
 0x215   :  { %v6974_v24 = vld [vmem:[#allocation11 + $0xa2c] sm:$0xf0]  ;;  %v3830_v26 = vadd.f32 %v3829_v1, %v7553_v20  ;;  %v5244_v37 = vld [vmem:[#allocation11 + $0x530] sm:$0xf0]  ;;  %v3868_v8 = vpop.f32.mrf.mxu3 }
 0x216   :  { %v6170_v27 = vld [vmem:[#allocation11 + $0xc50] sm:$0xf]  ;;  %v5883_v33 = vor.u32 %v6974_v24, %v5882_v17  ;;  %4035 = vmatpush.bf16.msrb.mxu0 %v5627_v32  ;;  %v4988_v17 = vld [vmem:[#allocation11 + $0x330] sm:$0xf0]  ;;  %v3842_v24 = vpop.f32.mrf.mxu1 }
 0x217   :  { %v7046_v28 = vld [vmem:[#allocation11 + $0xc6c] sm:$0xf0]  ;;  %v3843_v32 = vadd.f32 %v3842_v24, %v3830_v26  ;;  %v4668_v45 = vld [vmem:[#allocation11 + $0xb0] sm:$0xf0] }
 0x218   :  { %v6426_v30 = vld [vmem:[#allocation11 + $0xe50] sm:$0xf]  ;;  %v6171_v38 = vor.u32 %v7046_v28, %v6170_v27  ;;  %4048 = vmatpush.bf16.msrb.mxu1 %v5883_v33  ;;  %v4735_v27 = vor.u32 %v6682_v11, %v4732_v12  ;;  %v4991_v28 = vor.u32 %v6746_v16, %v4988_v17  ;;  %v5279_v33 = vor.u32 %v6818_v21, %v5276_v18  ;;  %v6802_v51 = vld [vmem:[#allocation11 + $0x4d4] sm:$0xf] }
 0x219   :  { %v7110_v13 = vld [vmem:[#allocation11 + $0xe6c] sm:$0xf0]  ;;  %4036 = vmatmul.bf16.vlgmr.msrb.gmra.mxu0 %v7496_v6  ;;  %v5212_v56 = vld [vmem:[#allocation11 + $0x4f0] sm:$0xf0]  ;;  %v3856_v12 = vadd.f32 %v3855_v5, %v3843_v32 }
 0x21a   :  { %v6427_v41 = vor.u32 %v7110_v13, %v6426_v30  ;;  %v6138_v46 = vld [vmem:[#allocation11 + $0xc10] sm:$0xf]  ;;  %4080 = vmatpush.bf16.msra.mxu0 %v4831_v34  ;;  %4060 = vmatpush.bf16.msrb.mxu2 %v6171_v38  ;;  %v6674_v30 = vld [vmem:[#allocation11 + $0xd4] sm:$0xf]  ;;  %v5535_v34 = vor.u32 %v6882_v25, %v5532_v29 }
 0x21b   :  { %v7038_v48 = vld [vmem:[#allocation11 + $0xc2c] sm:$0xf0]  ;;  %4049 = vmatmul.bf16.vlgmr.msrb.gmra.mxu1 %v7498_v7  ;;  %v4700_v13 = vld [vmem:[#allocation11 + $0xf0] sm:$0xf0]  ;;  %v3869_v18 = vadd.f32 %v3868_v8, %v3856_v12 }
 0x21c   :  { %v6394_v49 = vld [vmem:[#allocation11 + $0xe10] sm:$0xf]  ;;  %4093 = vmatpush.bf16.msra.mxu1 %v5087_v19  ;;  %4073 = vmatpush.bf16.msrb.mxu3 %v6427_v41  ;;  %v6139_v44 = vor.u32 %v7038_v48, %v6138_v46  ;;  %v6738_v19 = vld [vmem:[#allocation11 + $0x2d4] sm:$0xf]  ;;  %v4703_v20 = vor.u32 %v6674_v30, %v4700_v13  ;;  %v5247_v46 = vor.u32 %v6810_v36, %v5244_v37  ;;  %v3831_v52 = vpop.f32.mrf.mxu0 }
 0x21d   :  { %v7102_v50 = vld [vmem:[#allocation11 + $0xe2c] sm:$0xf0]  ;;  %v6874_v38 = vld [vmem:[#allocation11 + $0x714] sm:$0xf]  ;;  %v4959_v42 = vor.u32 %v6738_v19, %v4956_v35 }
 0x21e   :  { %v6395_v59 = vor.u32 %v7102_v50, %v6394_v49  ;;  %4081 = vmatpush.bf16.msra.mxu0 %v4799_v57  ;;  %4061 = vmatpush.bf16.msrb.mxu2 %v6139_v44  ;;  %v5500_v41 = vld [vmem:[#allocation11 + $0x730] sm:$0xf0]  ;;  %v3844_v55 = vpop.f32.mrf.mxu1  ;;  %v4407_v44 = vperm.slane %v7541_v31, 4 }
 0x21f   :  { %v5503_v48 = vor.u32 %v6874_v38, %v5500_v41  ;;  %v6730_v49 = vld [vmem:[#allocation11 + $0x294] sm:$0xf] }
 0x220   :  { %4094 = vmatpush.bf16.msra.mxu1 %v5055_v58  ;;  %4074 = vmatpush.bf16.msrb.mxu3 %v6395_v59  ;;  %v4924_v50 = vld [vmem:[#allocation11 + $0x2b0] sm:$0xf0]  ;;  %v4671_v59 = vor.u32 %v6666_v43, %v4668_v45 }
 0x221   :  { %4062 = vmatmul.bf16.vlgmr.msrb.gmra.mxu2 %v7502_v39  ;;  %v6866_v57 = vld [vmem:[#allocation11 + $0x6d4] sm:$0xf]  ;;  %v4927_v60 = vor.u32 %v6730_v49, %v4924_v50  ;;  %v3870_v49 = vpop.f32.mrf.mxu3 }
 0x222   :  { %4106 = vmatpush.bf16.msra.mxu2 %v5343_v62  ;;  %4082 = vmatpush.bf16.msra.mxu0 %v4767_v9  ;;  %v5468_v58 = vld [vmem:[#allocation11 + $0x6f0] sm:$0xf0] }
 0x223   :  { %4075 = vmatmul.bf16.vlgmr.msrb.gmra.mxu3 %v7504_v40  ;;  %v6658_v61 = vld [vmem:[#allocation11 + $0x54] sm:$0xf]  ;;  %v5471_v0 = vor.u32 %v6866_v57, %v5468_v58 }
 0x224   :  { %4119 = vmatpush.bf16.msra.mxu3 %v5599_v63  ;;  %4095 = vmatpush.bf16.msra.mxu1 %v5023_v10  ;;  %v4636_v62 = vld [vmem:[#allocation11 + $0x70] sm:$0xf0]  ;;  %v5215_v63 = vor.u32 %v6802_v51, %v5212_v56 }
 0x225   :  { %v6722_v2 = vld [vmem:[#allocation11 + $0x254] sm:$0xf]  ;;  %v4639_v16 = vor.u32 %v6658_v61, %v4636_v62 }
 0x226   :  { %4107 = vmatpush.bf16.msra.mxu2 %v5311_v14  ;;  %4083 = vmatpush.bf16.msra.mxu0 %v4735_v27  ;;  %v4892_v3 = vld [vmem:[#allocation11 + $0x270] sm:$0xf0]  ;;  %v4423_v14 = vperm.slane %v4407_v44, 0 }
 0x227   :  { %v6794_v4 = vld [vmem:[#allocation11 + $0x494] sm:$0xf]  ;;  %v4895_v17 = vor.u32 %v6722_v2, %v4892_v3 }
 0x228   :  { %4120 = vmatpush.bf16.msra.mxu3 %v5567_v15  ;;  %4096 = vmatpush.bf16.msra.mxu1 %v4991_v28  ;;  %v5180_v9 = vld [vmem:[#allocation11 + $0x4b0] sm:$0xf0] }
 0x229   :  { %v6858_v10 = vld [vmem:[#allocation11 + $0x694] sm:$0xf]  ;;  %v5183_v25 = vor.u32 %v6794_v4, %v5180_v9 }
 0x22a   :  { %4108 = vmatpush.bf16.msra.mxu2 %v5279_v33  ;;  %4084 = vmatpush.bf16.msra.mxu0 %v4703_v20  ;;  %v5436_v11 = vld [vmem:[#allocation11 + $0x6b0] sm:$0xf0]  ;;  %v4394_v33 = vmax.f32 %v3869_v18, 0.0 }
 0x22b   :  { %v6650_v15 = vld [vmem:[#allocation11 + $0x14] sm:$0xf]  ;;  %v5439_v29 = vor.u32 %v6858_v10, %v5436_v11 }
 0x22c   :  { %4121 = vmatpush.bf16.msra.mxu3 %v5535_v34  ;;  %4097 = vmatpush.bf16.msra.mxu1 %v4959_v42  ;;  %v4604_v21 = vld [vmem:[#allocation11 + $0x30] sm:$0xf0]  ;;  %v4431_v37 = vmul.f32 %v4423_v14, %v4394_v33  ;;  %v7566_v14 = vld [vmem:[#allocation12] sm:$0xff] }
 0x22d   :  { %v6714_v1 = vld [vmem:[#allocation11 + $0x214] sm:$0xf]  ;;  %v4607_v35 = vor.u32 %v6650_v15, %v4604_v21  ;;  %v987_v15 = vperm.slane %v7566_v14, 3 }
 0x22e   :  { %4109 = vmatpush.bf16.msra.mxu2 %v5247_v46  ;;  %4085 = vmatpush.bf16.msra.mxu0 %v4671_v59  ;;  %v4860_v24 = vld [vmem:[#allocation11 + $0x230] sm:$0xf0]  ;;  %v7562_v55 = vadd.f32 %v7546_v47, %v4431_v37 }
 0x22f   :  { %v6962_v26 = vld [vmem:[#allocation11 + $0x9d4] sm:$0xf]  ;;  %v4863_v36 = vor.u32 %v6714_v1, %v4860_v24 }
 0x230   :  { %4122 = vmatpush.bf16.msra.mxu3 %v5503_v48  ;;  %4098 = vmatpush.bf16.msra.mxu1 %v4927_v60  ;;  %v5852_v27 = vld [vmem:[#allocation11 + $0x9f0] sm:$0xf0]  ;;  %v3857_v48 = vpop.f32.mrf.mxu2 }
 0x231   :  { %v7026_v28 = vld [vmem:[#allocation11 + $0xbd4] sm:$0xf]  ;;  %v5855_v38 = vor.u32 %v6962_v26, %v5852_v27  ;;  %v3881_v27 = vpop.f32.mrf.mxu0 }
 0x232   :  { %4110 = vmatpush.bf16.msra.mxu2 %v5215_v63  ;;  %v6108_v30 = vld [vmem:[#allocation11 + $0xbf0] sm:$0xf0]  ;;  %4086 = vmatpush.bf16.msra.mxu0 %v4639_v16  ;;  %v3882_v33 = vadd.f32 %v3881_v27, %v987_v15  ;;  %v3920_v15 = vpop.f32.mrf.mxu3 }
 0x233   :  { %v6786_v13 = vld [vmem:[#allocation11 + $0x454] sm:$0xf]  ;;  %v6111_v41 = vor.u32 %v7026_v28, %v6108_v30  ;;  %v3894_v28 = vpop.f32.mrf.mxu1 }
 0x234   :  { %4123 = vmatpush.bf16.msra.mxu3 %v5471_v0  ;;  %v5148_v32 = vld [vmem:[#allocation11 + $0x470] sm:$0xf0]  ;;  %4099 = vmatpush.bf16.msra.mxu1 %v4895_v17  ;;  %v3895_v37 = vadd.f32 %v3894_v28, %v3882_v33  ;;  %v6711_v33 = vld [vmem:[#allocation11 + $0x1f4] sm:$0xf0] }
 0x235   :  { %v6850_v34 = vld [vmem:[#allocation11 + $0x654] sm:$0xf]  ;;  %v5151_v45 = vor.u32 %v6786_v13, %v5148_v32 }
 0x236   :  { %v5404_v19 = vld [vmem:[#allocation11 + $0x670] sm:$0xf0]  ;;  %4111 = vmatpush.bf16.msra.mxu2 %v5183_v25  ;;  %4087 = vmatpush.bf16.msra.mxu0 %v4607_v35 }
 0x237   :  { %v6954_v20 = vld [vmem:[#allocation11 + $0x994] sm:$0xf]  ;;  %v5407_v46 = vor.u32 %v6850_v34, %v5404_v19 }
 0x238   :  { %4124 = vmatpush.bf16.msra.mxu3 %v5439_v29  ;;  %v5820_v42 = vld [vmem:[#allocation11 + $0x9b0] sm:$0xf0]  ;;  %4100 = vmatpush.bf16.msra.mxu1 %v4863_v36 }
 0x239   :  { %v7018_v43 = vld [vmem:[#allocation11 + $0xb94] sm:$0xf]  ;;  %v5823_v61 = vor.u32 %v6954_v20, %v5820_v42  ;;  %4088 = vmatmul.bf16.vlgmr.msra.gmra.mxu0 %v7484_v53 }
 0x23a   :  { %v6076_v50 = vld [vmem:[#allocation11 + $0xbb0] sm:$0xf0]  ;;  %4132 = vmatpush.bf16.msrb.mxu0 %v5855_v38  ;;  %4112 = vmatpush.bf16.msra.mxu2 %v5151_v45 }
 0x23b   :  { %v6778_v51 = vld [vmem:[#allocation11 + $0x414] sm:$0xf]  ;;  %v6079_v62 = vor.u32 %v7018_v43, %v6076_v50  ;;  %4101 = vmatmul.bf16.vlgmr.msra.gmra.mxu1 %v7486_v54 }
 0x23c   :  { %v5116_v52 = vld [vmem:[#allocation11 + $0x430] sm:$0xf0]  ;;  %4145 = vmatpush.bf16.msrb.mxu1 %v6111_v41  ;;  %4125 = vmatpush.bf16.msra.mxu3 %v5407_v46 }
 0x23d   :  { %v6842_v56 = vld [vmem:[#allocation11 + $0x614] sm:$0xf]  ;;  %v5119_v63 = vor.u32 %v6778_v51, %v5116_v52 }
 0x23e   :  { %v5372_v57 = vld [vmem:[#allocation11 + $0x630] sm:$0xf0]  ;;  %4133 = vmatpush.bf16.msrb.mxu0 %v5823_v61  ;;  %v3896_v61 = vpop.f32.mrf.mxu1 }
 0x23f   :  { %v7090_v58 = vld [vmem:[#allocation11 + $0xdd4] sm:$0xf]  ;;  %v5375_v0 = vor.u32 %v6842_v56, %v5372_v57  ;;  %4113 = vmatpush.bf16.msra.mxu2 %v5119_v63  ;;  %v6839_v61 = vld [vmem:[#allocation11 + $0x5f4] sm:$0xf0] }
 0x240   :  { %v6364_v44 = vld [vmem:[#allocation11 + $0xdf0] sm:$0xf0]  ;;  %4146 = vmatpush.bf16.msrb.mxu1 %v6079_v62 }
 0x241   :  { %v7154_v59 = vld [vmem:[#allocation11 + $0xfd4] sm:$0xf]  ;;  %v6367_v47 = vor.u32 %v7090_v58, %v6364_v44  ;;  %4126 = vmatpush.bf16.msra.mxu3 %v5375_v0 }
 0x242   :  { %v6620_v60 = vld [vmem:[#allocation11 + $0xff0] sm:$0xf0]  ;;  %4114 = vmatmul.bf16.vlgmr.msra.gmra.mxu2 %v7490_v22 }
 0x243   :  { %v6946_v2 = vld [vmem:[#allocation11 + $0x954] sm:$0xf]  ;;  %v6623_v4 = vor.u32 %v7154_v59, %v6620_v60  ;;  %4158 = vmatpush.bf16.msrb.mxu2 %v6367_v47  ;;  %v3883_v60 = vpop.f32.mrf.mxu0 }
 0x244   :  { %v5788_v3 = vld [vmem:[#allocation11 + $0x970] sm:$0xf0]  ;;  %4127 = vmatmul.bf16.vlgmr.msra.gmra.mxu3 %v7492_v23  ;;  %v5346_v60 = vld [vmem:[#allocation11 + $0x5d8] sm:$0xf] }
 0x245   :  { %v7010_v5 = vld [vmem:[#allocation11 + $0xb54] sm:$0xf]  ;;  %v5791_v16 = vor.u32 %v6946_v2, %v5788_v3  ;;  %4171 = vmatpush.bf16.msrb.mxu3 %v6623_v4 }
 0x246   :  { %v6044_v8 = vld [vmem:[#allocation11 + $0xb70] sm:$0xf0] }
 0x247   :  { %v7082_v9 = vld [vmem:[#allocation11 + $0xd94] sm:$0xf]  ;;  %v6047_v17 = vor.u32 %v7010_v5, %v6044_v8  ;;  %4134 = vmatpush.bf16.msrb.mxu0 %v5791_v16 }
 0x248   :  { %v6332_v10 = vld [vmem:[#allocation11 + $0xdb0] sm:$0xf0] }
 0x249   :  { %v7146_v11 = vld [vmem:[#allocation11 + $0xf94] sm:$0xf]  ;;  %v6335_v24 = vor.u32 %v7082_v9, %v6332_v10  ;;  %4147 = vmatpush.bf16.msrb.mxu1 %v6047_v17 }
 0x24a   :  { %v6588_v12 = vld [vmem:[#allocation11 + $0xfb0] sm:$0xf0] }
 0x24b   :  { %v6938_v21 = vld [vmem:[#allocation11 + $0x914] sm:$0xf]  ;;  %v6591_v18 = vor.u32 %v7146_v11, %v6588_v12  ;;  %4159 = vmatpush.bf16.msrb.mxu2 %v6335_v24  ;;  %v3907_v12 = vpop.f32.mrf.mxu2 }
 0x24c   :  { %v5756_v1 = vld [vmem:[#allocation11 + $0x930] sm:$0xf0] }
 0x24d   :  { %v7002_v25 = vld [vmem:[#allocation11 + $0xb14] sm:$0xf]  ;;  %v5759_v34 = vor.u32 %v6938_v21, %v5756_v1  ;;  %4172 = vmatpush.bf16.msrb.mxu3 %v6591_v18  ;;  %v3908_v1 = vadd.f32 %v3907_v12, %v3895_v37  ;;  %v5314_v12 = vld [vmem:[#allocation11 + $0x598] sm:$0xf] }
 0x24e   :  { %v6012_v29 = vld [vmem:[#allocation11 + $0xb30] sm:$0xf0] }
 0x24f   :  { %v7074_v26 = vld [vmem:[#allocation11 + $0xd54] sm:$0xf]  ;;  %v6015_v19 = vor.u32 %v7002_v25, %v6012_v29  ;;  %4135 = vmatpush.bf16.msrb.mxu0 %v5759_v34  ;;  %v7571_v27 = vadd.f32 %v3920_v15, %v3908_v1  ;;  %v5090_v34 = vld [vmem:[#allocation11 + $0x3d8] sm:$0xf] }
 0x250   :  { %v6300_v30 = vld [vmem:[#allocation11 + $0xd70] sm:$0xf0]  ;;  %v6831_v15 = vld [vmem:[#allocation11 + $0x5b4] sm:$0xf0] }
 0x251   :  { %v7138_v13 = vld [vmem:[#allocation11 + $0xf54] sm:$0xf]  ;;  %v6303_v38 = vor.u32 %v7074_v26, %v6300_v30  ;;  %4148 = vmatpush.bf16.msrb.mxu1 %v6015_v19  ;;  %v6775_v19 = vld [vmem:[#allocation11 + $0x3f4] sm:$0xf0] }
 0x252   :  { %v6556_v32 = vld [vmem:[#allocation11 + $0xf70] sm:$0xf0] }
 0x253   :  { %v6930_v35 = vld [vmem:[#allocation11 + $0x8d4] sm:$0xf]  ;;  %v6559_v41 = vor.u32 %v7138_v13, %v6556_v32  ;;  %4160 = vmatpush.bf16.msrb.mxu2 %v6303_v38  ;;  %v4834_v32 = vld [vmem:[#allocation11 + $0x1d8] sm:$0xf] }
 0x254   :  { %v5724_v36 = vld [vmem:[#allocation11 + $0x8f0] sm:$0xf0] }
 0x255   :  { %v6994_v20 = vld [vmem:[#allocation11 + $0xad4] sm:$0xf]  ;;  %v5727_v49 = vor.u32 %v6930_v35, %v5724_v36  ;;  %4173 = vmatpush.bf16.msrb.mxu3 %v6559_v41 }
 0x256   :  { %v5980_v42 = vld [vmem:[#allocation11 + $0xaf0] sm:$0xf0] }
 0x257   :  { %v7066_v43 = vld [vmem:[#allocation11 + $0xd14] sm:$0xf]  ;;  %v5983_v50 = vor.u32 %v6994_v20, %v5980_v42  ;;  %4136 = vmatpush.bf16.msrb.mxu0 %v5727_v49  ;;  %v4835_v42 = vor.u32 %v6711_v33, %v4834_v32  ;;  %v3946_v32 = vpop.f32.mrf.mxu1  ;;  %v6823_v33 = vld [vmem:[#allocation11 + $0x574] sm:$0xf0] }
 0x258   :  { %v6268_v45 = vld [vmem:[#allocation11 + $0xd30] sm:$0xf0] }
 0x259   :  { %v7130_v46 = vld [vmem:[#allocation11 + $0xf14] sm:$0xf]  ;;  %v6271_v56 = vor.u32 %v7066_v43, %v6268_v45  ;;  %4149 = vmatpush.bf16.msrb.mxu1 %v5983_v50  ;;  %v5091_v43 = vor.u32 %v6775_v19, %v5090_v34  ;;  %v4802_v45 = vld [vmem:[#allocation11 + $0x198] sm:$0xf] }
 0x25a   :  { %v6524_v48 = vld [vmem:[#allocation11 + $0xf30] sm:$0xf0]  ;;  %v5538_v34 = vld [vmem:[#allocation11 + $0x758] sm:$0xf] }
 0x25b   :  { %v6922_v51 = vld [vmem:[#allocation11 + $0x894] sm:$0xf]  ;;  %v6527_v57 = vor.u32 %v7130_v46, %v6524_v48  ;;  %4161 = vmatpush.bf16.msrb.mxu2 %v6271_v56  ;;  %v6703_v46 = vld [vmem:[#allocation11 + $0x1b4] sm:$0xf0] }
 0x25c   :  { %v5692_v52 = vld [vmem:[#allocation11 + $0x8b0] sm:$0xf0]  ;;  %v5058_v48 = vld [vmem:[#allocation11 + $0x398] sm:$0xf] }
 0x25d   :  { %v6986_v58 = vld [vmem:[#allocation11 + $0xa94] sm:$0xf]  ;;  %v5695_v2 = vor.u32 %v6922_v51, %v5692_v52  ;;  %4174 = vmatpush.bf16.msrb.mxu3 %v6527_v57  ;;  %v3909_v51 = vpop.f32.mrf.mxu2  ;;  %v3922_v52 = vpop.f32.mrf.mxu3  ;;  %v6767_v56 = vld [vmem:[#allocation11 + $0x3b4] sm:$0xf0] }
 0x25e   :  { %v5948_v44 = vld [vmem:[#allocation11 + $0xab0] sm:$0xf0]  ;;  %v6887_v19 = vld [vmem:[#allocation11 + $0x774] sm:$0xf0] }
 0x25f   :  { %v7058_v59 = vld [vmem:[#allocation11 + $0xcd4] sm:$0xf]  ;;  %v5951_v3 = vor.u32 %v6986_v58, %v5948_v44  ;;  %4137 = vmatpush.bf16.msrb.mxu0 %v5695_v2  ;;  %v5059_v2 = vor.u32 %v6767_v56, %v5058_v48  ;;  %v5250_v48 = vld [vmem:[#allocation11 + $0x518] sm:$0xf] }
 0x260   :  { %v6236_v62 = vld [vmem:[#allocation11 + $0xcf0] sm:$0xf0]  ;;  %v6879_v51 = vld [vmem:[#allocation11 + $0x734] sm:$0xf0] }
 0x261   :  { %v7122_v63 = vld [vmem:[#allocation11 + $0xed4] sm:$0xf]  ;;  %v6239_v5 = vor.u32 %v7058_v59, %v6236_v62  ;;  %4150 = vmatpush.bf16.msrb.mxu1 %v5951_v3  ;;  %v5602_v62 = vld [vmem:[#allocation11 + $0x7d8] sm:$0xf] }
 0x262   :  { %v6492_v0 = vld [vmem:[#allocation11 + $0xef0] sm:$0xf0]  ;;  %v4674_v56 = vld [vmem:[#allocation11 + $0x98] sm:$0xf] }
 0x263   :  { %v6914_v47 = vld [vmem:[#allocation11 + $0x854] sm:$0xf]  ;;  %v6495_v8 = vor.u32 %v7122_v63, %v6492_v0  ;;  %4162 = vmatpush.bf16.msrb.mxu2 %v6239_v5  ;;  %v6903_v63 = vld [vmem:[#allocation11 + $0x7f4] sm:$0xf0]  ;;  %v4803_v0 = vor.u32 %v6703_v46, %v4802_v45 }
 0x264   :  { %v5660_v4 = vld [vmem:[#allocation11 + $0x870] sm:$0xf0]  ;;  %v6695_v5 = vld [vmem:[#allocation11 + $0x174] sm:$0xf0] }
 0x265   :  { %v6978_v9 = vld [vmem:[#allocation11 + $0xa54] sm:$0xf]  ;;  %v5663_v24 = vor.u32 %v6914_v47, %v5660_v4  ;;  %4175 = vmatpush.bf16.msrb.mxu3 %v6495_v8  ;;  %v4770_v4 = vld [vmem:[#allocation11 + $0x158] sm:$0xf]  ;;  %v5347_v8 = vor.u32 %v6839_v61, %v5346_v60 }
 0x266   :  { %v5916_v10 = vld [vmem:[#allocation11 + $0xa70] sm:$0xf0]  ;;  %v4962_v45 = vld [vmem:[#allocation11 + $0x2d8] sm:$0xf] }
 0x267   :  { %v7050_v11 = vld [vmem:[#allocation11 + $0xc94] sm:$0xf]  ;;  %v5919_v18 = vor.u32 %v6978_v9, %v5916_v10  ;;  %4138 = vmatpush.bf16.msrb.mxu0 %v5663_v24  ;;  %v5603_v9 = vor.u32 %v6903_v63, %v5602_v62  ;;  %v5026_v10 = vld [vmem:[#allocation11 + $0x358] sm:$0xf]  ;;  %v3948_v63 = vpop.f32.mrf.mxu1 }
 0x268   :  { %v6204_v16 = vld [vmem:[#allocation11 + $0xcb0] sm:$0xf0]  ;;  %v4738_v24 = vld [vmem:[#allocation11 + $0x118] sm:$0xf] }
 0x269   :  { %v7114_v17 = vld [vmem:[#allocation11 + $0xe94] sm:$0xf]  ;;  %v6207_v28 = vor.u32 %v7050_v11, %v6204_v16  ;;  %4151 = vmatpush.bf16.msrb.mxu1 %v5919_v18  ;;  %v6759_v11 = vld [vmem:[#allocation11 + $0x374] sm:$0xf0] }
 0x26a   :  { %v6460_v21 = vld [vmem:[#allocation11 + $0xeb0] sm:$0xf0]  ;;  %v5570_v16 = vld [vmem:[#allocation11 + $0x798] sm:$0xf]  ;;  %v5027_v1 = vor.u32 %v6759_v11, %v5026_v10 }
 0x26b   :  { %v6906_v25 = vld [vmem:[#allocation11 + $0x814] sm:$0xf]  ;;  %v6463_v30 = vor.u32 %v7114_v17, %v6460_v21  ;;  %4163 = vmatpush.bf16.msrb.mxu2 %v6207_v28  ;;  %v6895_v17 = vld [vmem:[#allocation11 + $0x7b4] sm:$0xf0]  ;;  %v4771_v21 = vor.u32 %v6695_v5, %v4770_v4 }
 0x26c   :  { %v5628_v29 = vld [vmem:[#allocation11 + $0x830] sm:$0xf0]  ;;  %v6687_v18 = vld [vmem:[#allocation11 + $0x134] sm:$0xf0] }
 0x26d   :  { %v6970_v26 = vld [vmem:[#allocation11 + $0xa14] sm:$0xf]  ;;  %v5631_v41 = vor.u32 %v6906_v25, %v5628_v29  ;;  %4176 = vmatpush.bf16.msrb.mxu3 %v6463_v30  ;;  %v5315_v25 = vor.u32 %v6831_v15, %v5314_v12  ;;  %v5571_v29 = vor.u32 %v6895_v17, %v5570_v16  ;;  %v6751_v28 = vld [vmem:[#allocation11 + $0x334] sm:$0xf0]  ;;  %v3959_v17 = vpop.f32.mrf.mxu2 }
 0x26e   :  { %v5884_v13 = vld [vmem:[#allocation11 + $0xa30] sm:$0xf0]  ;;  %v5282_v30 = vld [vmem:[#allocation11 + $0x558] sm:$0xf] }
 0x26f   :  { %v7042_v35 = vld [vmem:[#allocation11 + $0xc54] sm:$0xf]  ;;  %v5887_v20 = vor.u32 %v6970_v26, %v5884_v13  ;;  %4139 = vmatpush.bf16.msrb.mxu0 %v5631_v41  ;;  %v4994_v26 = vld [vmem:[#allocation11 + $0x318] sm:$0xf]  ;;  %v3933_v13 = vpop.f32.mrf.mxu0 }
 0x270   :  { %v6172_v36 = vld [vmem:[#allocation11 + $0xc70] sm:$0xf0]  ;;  %v6679_v41 = vld [vmem:[#allocation11 + $0xf4] sm:$0xf0] }
 0x271   :  { %v7106_v37 = vld [vmem:[#allocation11 + $0xe54] sm:$0xf]  ;;  %v6175_v49 = vor.u32 %v7042_v35, %v6172_v36  ;;  %4152 = vmatpush.bf16.msrb.mxu1 %v5887_v20  ;;  %v3934_v35 = vadd.f32 %v3933_v13, %v7571_v27  ;;  %v4739_v36 = vor.u32 %v6687_v18, %v4738_v24  ;;  %v6743_v46 = vld [vmem:[#allocation11 + $0x2f4] sm:$0xf0] }
 0x272   :  { %v6428_v38 = vld [vmem:[#allocation11 + $0xe70] sm:$0xf0]  ;;  %4140 = vmatmul.bf16.vlgmr.msrb.gmra.mxu0 %v7496_v6  ;;  %v4963_v52 = vor.u32 %v6743_v46, %v4962_v45  ;;  %v6735_v60 = vld [vmem:[#allocation11 + $0x2b4] sm:$0xf0] }
 0x273   :  { %v6431_v50 = vor.u32 %v7106_v37, %v6428_v38  ;;  %v7034_v57 = vld [vmem:[#allocation11 + $0xc14] sm:$0xf]  ;;  %4184 = vmatpush.bf16.msra.mxu0 %v4835_v42  ;;  %4164 = vmatpush.bf16.msrb.mxu2 %v6175_v49  ;;  %v4995_v37 = vor.u32 %v6751_v28, %v4994_v26  ;;  %v4706_v38 = vld [vmem:[#allocation11 + $0xd8] sm:$0xf]  ;;  %v3947_v20 = vadd.f32 %v3946_v32, %v3934_v35 }
 0x274   :  { %v6140_v58 = vld [vmem:[#allocation11 + $0xc30] sm:$0xf0]  ;;  %4153 = vmatmul.bf16.vlgmr.msrb.gmra.mxu1 %v7498_v7  ;;  %v5283_v42 = vor.u32 %v6823_v33, %v5282_v30  ;;  %v6815_v49 = vld [vmem:[#allocation11 + $0x534] sm:$0xf0]  ;;  %v4707_v27 = vor.u32 %v6679_v41, %v4706_v38 }
 0x275   :  { %v7098_v44 = vld [vmem:[#allocation11 + $0xe14] sm:$0xf]  ;;  %4197 = vmatpush.bf16.msra.mxu1 %v5091_v43  ;;  %4177 = vmatpush.bf16.msrb.mxu3 %v6431_v50  ;;  %v6143_v3 = vor.u32 %v7034_v57, %v6140_v58  ;;  %v5539_v43 = vor.u32 %v6887_v19, %v5538_v34  ;;  %v5506_v50 = vld [vmem:[#allocation11 + $0x718] sm:$0xf]  ;;  %v5251_v58 = vor.u32 %v6815_v49, %v5250_v48 }
 0x276   :  { %v6396_v59 = vld [vmem:[#allocation11 + $0xe30] sm:$0xf0]  ;;  %v6671_v57 = vld [vmem:[#allocation11 + $0xb4] sm:$0xf0] }
 0x277   :  { %v6399_v47 = vor.u32 %v7098_v44, %v6396_v59  ;;  %4185 = vmatpush.bf16.msra.mxu0 %v4803_v0  ;;  %4165 = vmatpush.bf16.msrb.mxu2 %v6143_v3  ;;  %v5507_v44 = vor.u32 %v6879_v51, %v5506_v50  ;;  %v4930_v59 = vld [vmem:[#allocation11 + $0x298] sm:$0xf]  ;;  %v3935_v62 = vpop.f32.mrf.mxu0  ;;  %v4675_v4 = vor.u32 %v6671_v57, %v4674_v56 }
 0x278   :  { %v5218_v61 = vld [vmem:[#allocation11 + $0x4d8] sm:$0xf]  ;;  %v4931_v5 = vor.u32 %v6735_v60, %v4930_v59 }
 0x279   :  { %4198 = vmatpush.bf16.msra.mxu1 %v5059_v2  ;;  %4178 = vmatpush.bf16.msrb.mxu3 %v6399_v47  ;;  %v6807_v0 = vld [vmem:[#allocation11 + $0x4f4] sm:$0xf0]  ;;  %v4408_v47 = vperm.slane %v7541_v31, 6 }
 0x27a   :  { %4166 = vmatmul.bf16.vlgmr.msrb.gmra.mxu2 %v7502_v39  ;;  %v5474_v2 = vld [vmem:[#allocation11 + $0x6d8] sm:$0xf]  ;;  %v5219_v10 = vor.u32 %v6807_v0, %v5218_v61 }
 0x27b   :  { %4210 = vmatpush.bf16.msra.mxu2 %v5347_v8  ;;  %4186 = vmatpush.bf16.msra.mxu0 %v4771_v21  ;;  %v6871_v3 = vld [vmem:[#allocation11 + $0x6f4] sm:$0xf0]  ;;  %v3972_v21 = vpop.f32.mrf.mxu3  ;;  %v4424_v31 = vperm.slane %v4408_v47, 0 }
 0x27c   :  { %4179 = vmatmul.bf16.vlgmr.msrb.gmra.mxu3 %v7504_v40  ;;  %v4642_v8 = vld [vmem:[#allocation11 + $0x58] sm:$0xf]  ;;  %v5475_v11 = vor.u32 %v6871_v3, %v5474_v2 }
 0x27d   :  { %4223 = vmatpush.bf16.msra.mxu3 %v5603_v9  ;;  %4199 = vmatpush.bf16.msra.mxu1 %v5027_v1  ;;  %v6663_v9 = vld [vmem:[#allocation11 + $0x74] sm:$0xf0] }
 0x27e   :  { %v4898_v12 = vld [vmem:[#allocation11 + $0x258] sm:$0xf]  ;;  %v4643_v26 = vor.u32 %v6663_v9, %v4642_v8 }
 0x27f   :  { %4211 = vmatpush.bf16.msra.mxu2 %v5315_v25  ;;  %4187 = vmatpush.bf16.msra.mxu0 %v4739_v36  ;;  %v6727_v15 = vld [vmem:[#allocation11 + $0x274] sm:$0xf0]  ;;  %v3960_v25 = vadd.f32 %v3959_v17, %v3947_v20 }
 0x280   :  { %v5186_v16 = vld [vmem:[#allocation11 + $0x498] sm:$0xf]  ;;  %v4899_v28 = vor.u32 %v6727_v15, %v4898_v12 }
 0x281   :  { %4224 = vmatpush.bf16.msra.mxu3 %v5571_v29  ;;  %4200 = vmatpush.bf16.msra.mxu1 %v4995_v37  ;;  %v6799_v1 = vld [vmem:[#allocation11 + $0x4b4] sm:$0xf0]  ;;  %v3973_v33 = vadd.f32 %v3972_v21, %v3960_v25 }
 0x282   :  { %v5442_v24 = vld [vmem:[#allocation11 + $0x698] sm:$0xf]  ;;  %v5187_v34 = vor.u32 %v6799_v1, %v5186_v16 }
 0x283   :  { %4212 = vmatpush.bf16.msra.mxu2 %v5283_v42  ;;  %4188 = vmatpush.bf16.msra.mxu0 %v4707_v27  ;;  %v6863_v18 = vld [vmem:[#allocation11 + $0x6b4] sm:$0xf0]  ;;  %v4395_v42 = vmax.f32 %v3973_v33, 0.0  ;;  %v3974_v59 = vpop.f32.mrf.mxu3 }
 0x284   :  { %v4610_v29 = vld [vmem:[#allocation11 + $0x18] sm:$0xf]  ;;  %v5443_v19 = vor.u32 %v6863_v18, %v5442_v24 }
 0x285   :  { %4225 = vmatpush.bf16.msra.mxu3 %v5539_v43  ;;  %4201 = vmatpush.bf16.msra.mxu1 %v4963_v52  ;;  %v6655_v30 = vld [vmem:[#allocation11 + $0x34] sm:$0xf0]  ;;  %v4432_v49 = vmul.f32 %v4424_v31, %v4395_v42  ;;  %v988_v31 = vperm.slane %v7566_v14, 4 }
 0x286   :  { %v4866_v13 = vld [vmem:[#allocation11 + $0x218] sm:$0xf]  ;;  %v4611_v46 = vor.u32 %v6655_v30, %v4610_v29 }
 0x287   :  { %4213 = vmatpush.bf16.msra.mxu2 %v5251_v58  ;;  %4189 = vmatpush.bf16.msra.mxu0 %v4675_v4  ;;  %v6719_v32 = vld [vmem:[#allocation11 + $0x234] sm:$0xf0]  ;;  %v7580_v63 = vadd.f32 %v7562_v55, %v4432_v49 }
 0x288   :  { %v5858_v35 = vld [vmem:[#allocation11 + $0x9d8] sm:$0xf]  ;;  %v4867_v48 = vor.u32 %v6719_v32, %v4866_v13 }
 0x289   :  { %4226 = vmatpush.bf16.msra.mxu3 %v5507_v44  ;;  %4202 = vmatpush.bf16.msra.mxu1 %v4931_v5  ;;  %v6967_v36 = vld [vmem:[#allocation11 + $0x9f4] sm:$0xf0]  ;;  %v3961_v44 = vpop.f32.mrf.mxu2 }
 0x28a   :  { %v6114_v37 = vld [vmem:[#allocation11 + $0xbd8] sm:$0xf]  ;;  %v5859_v50 = vor.u32 %v6967_v36, %v5858_v35  ;;  %v3985_v35 = vpop.f32.mrf.mxu0  ;;  %v3998_v36 = vpop.f32.mrf.mxu1 }
 0x28b   :  { %4214 = vmatpush.bf16.msra.mxu2 %v5219_v10  ;;  %v7031_v38 = vld [vmem:[#allocation11 + $0xbf4] sm:$0xf0]  ;;  %4190 = vmatpush.bf16.msra.mxu0 %v4643_v26  ;;  %v3986_v14 = vadd.f32 %v3985_v35, %v988_v31 }
 0x28c   :  { %v5154_v41 = vld [vmem:[#allocation11 + $0x458] sm:$0xf]  ;;  %v6115_v51 = vor.u32 %v7031_v38, %v6114_v37 }
 0x28d   :  { %4227 = vmatpush.bf16.msra.mxu3 %v5475_v11  ;;  %v6791_v20 = vld [vmem:[#allocation11 + $0x474] sm:$0xf0]  ;;  %4203 = vmatpush.bf16.msra.mxu1 %v4899_v28 }
 0x28e   :  { %v5410_v43 = vld [vmem:[#allocation11 + $0x658] sm:$0xf]  ;;  %v5155_v57 = vor.u32 %v6791_v20, %v5154_v41 }
 0x28f   :  { %v6855_v45 = vld [vmem:[#allocation11 + $0x674] sm:$0xf0]  ;;  %4215 = vmatpush.bf16.msra.mxu2 %v5187_v34  ;;  %4191 = vmatpush.bf16.msra.mxu0 %v4611_v46  ;;  %v3999_v46 = vadd.f32 %v3998_v36, %v3986_v14  ;;  %v5092_v14 = vld [vmem:[#allocation11 + $0x3f8] sm:$0xf0] }
 0x290   :  { %v5826_v27 = vld [vmem:[#allocation11 + $0x998] sm:$0xf]  ;;  %v5411_v58 = vor.u32 %v6855_v45, %v5410_v43 }
 0x291   :  { %4228 = vmatpush.bf16.msra.mxu3 %v5443_v19  ;;  %v6959_v52 = vld [vmem:[#allocation11 + $0x9b4] sm:$0xf0]  ;;  %4204 = vmatpush.bf16.msra.mxu1 %v4867_v48 }
 0x292   :  { %v6082_v56 = vld [vmem:[#allocation11 + $0xb98] sm:$0xf]  ;;  %v5827_v8 = vor.u32 %v6959_v52, %v5826_v27  ;;  %4192 = vmatmul.bf16.vlgmr.msra.gmra.mxu0 %v7484_v53 }
 0x293   :  { %v7023_v60 = vld [vmem:[#allocation11 + $0xbb4] sm:$0xf0]  ;;  %4236 = vmatpush.bf16.msrb.mxu0 %v5859_v50  ;;  %4216 = vmatpush.bf16.msra.mxu2 %v5155_v57 }
 0x294   :  { %v5122_v61 = vld [vmem:[#allocation11 + $0x418] sm:$0xf]  ;;  %v6083_v9 = vor.u32 %v7023_v60, %v6082_v56  ;;  %4205 = vmatmul.bf16.vlgmr.msra.gmra.mxu1 %v7486_v54 }
 0x295   :  { %v6783_v62 = vld [vmem:[#allocation11 + $0x434] sm:$0xf0]  ;;  %4249 = vmatpush.bf16.msrb.mxu1 %v6115_v51  ;;  %4229 = vmatpush.bf16.msra.mxu3 %v5411_v58 }
 0x296   :  { %v5378_v0 = vld [vmem:[#allocation11 + $0x618] sm:$0xf]  ;;  %v5123_v10 = vor.u32 %v6783_v62, %v5122_v61 }
 0x297   :  { %v6847_v2 = vld [vmem:[#allocation11 + $0x634] sm:$0xf0]  ;;  %4237 = vmatpush.bf16.msrb.mxu0 %v5827_v8 }
 0x298   :  { %v6370_v3 = vld [vmem:[#allocation11 + $0xdd8] sm:$0xf]  ;;  %v5379_v11 = vor.u32 %v6847_v2, %v5378_v0  ;;  %4217 = vmatpush.bf16.msra.mxu2 %v5123_v10 }
 0x299   :  { %v7095_v47 = vld [vmem:[#allocation11 + $0xdf4] sm:$0xf0]  ;;  %4250 = vmatpush.bf16.msrb.mxu1 %v6083_v9 }
 0x29a   :  { %v6626_v4 = vld [vmem:[#allocation11 + $0xfd8] sm:$0xf]  ;;  %v6371_v55 = vor.u32 %v7095_v47, %v6370_v3  ;;  %4230 = vmatpush.bf16.msra.mxu3 %v5379_v11  ;;  %v3987_v47 = vpop.f32.mrf.mxu0 }
 0x29b   :  { %v7159_v5 = vld [vmem:[#allocation11 + $0xff4] sm:$0xf0]  ;;  %4218 = vmatmul.bf16.vlgmr.msra.gmra.mxu2 %v7490_v22  ;;  %v6899_v47 = vld [vmem:[#allocation11 + $0x7dc] sm:$0xf] }
 0x29c   :  { %v5794_v12 = vld [vmem:[#allocation11 + $0x958] sm:$0xf]  ;;  %v6627_v16 = vor.u32 %v7159_v5, %v6626_v4  ;;  %4262 = vmatpush.bf16.msrb.mxu2 %v6371_v55  ;;  %v4000_v4 = vpop.f32.mrf.mxu1 }
 0x29d   :  { %v6951_v15 = vld [vmem:[#allocation11 + $0x974] sm:$0xf0]  ;;  %4231 = vmatmul.bf16.vlgmr.msra.gmra.mxu3 %v7492_v23  ;;  %v5604_v4 = vld [vmem:[#allocation11 + $0x7f8] sm:$0xf0] }
 0x29e   :  { %v6050_v17 = vld [vmem:[#allocation11 + $0xb58] sm:$0xf]  ;;  %v5795_v29 = vor.u32 %v6951_v15, %v5794_v12  ;;  %4275 = vmatpush.bf16.msrb.mxu3 %v6627_v16 }
 0x29f   :  { %v7015_v21 = vld [vmem:[#allocation11 + $0xb74] sm:$0xf0] }
 0x2a0   :  { %v6338_v1 = vld [vmem:[#allocation11 + $0xd98] sm:$0xf]  ;;  %v6051_v26 = vor.u32 %v7015_v21, %v6050_v17  ;;  %4238 = vmatpush.bf16.msrb.mxu0 %v5795_v29 }
 0x2a1   :  { %v7087_v24 = vld [vmem:[#allocation11 + $0xdb4] sm:$0xf0] }
 0x2a2   :  { %v6594_v18 = vld [vmem:[#allocation11 + $0xf98] sm:$0xf]  ;;  %v6339_v13 = vor.u32 %v7087_v24, %v6338_v1  ;;  %4251 = vmatpush.bf16.msrb.mxu1 %v6051_v26  ;;  %v4011_v24 = vpop.f32.mrf.mxu2 }
 0x2a3   :  { %v7151_v25 = vld [vmem:[#allocation11 + $0xfb4] sm:$0xf0]  ;;  %v4012_v26 = vadd.f32 %v4011_v24, %v3999_v46  ;;  %v6891_v24 = vld [vmem:[#allocation11 + $0x79c] sm:$0xf] }
 0x2a4   :  { %v5762_v28 = vld [vmem:[#allocation11 + $0x918] sm:$0xf]  ;;  %v6595_v32 = vor.u32 %v7151_v25, %v6594_v18  ;;  %4263 = vmatpush.bf16.msrb.mxu2 %v6339_v13  ;;  %v4024_v18 = vpop.f32.mrf.mxu3 }
 0x2a5   :  { %v6943_v30 = vld [vmem:[#allocation11 + $0x934] sm:$0xf0] }
 0x2a6   :  { %v6018_v33 = vld [vmem:[#allocation11 + $0xb18] sm:$0xf]  ;;  %v5763_v20 = vor.u32 %v6943_v30, %v5762_v28  ;;  %4276 = vmatpush.bf16.msrb.mxu3 %v6595_v32 }
 0x2a7   :  { %v7007_v34 = vld [vmem:[#allocation11 + $0xb34] sm:$0xf0] }
 0x2a8   :  { %v6306_v19 = vld [vmem:[#allocation11 + $0xd58] sm:$0xf]  ;;  %v6019_v42 = vor.u32 %v7007_v34, %v6018_v33  ;;  %4239 = vmatpush.bf16.msrb.mxu0 %v5763_v20  ;;  %v7587_v34 = vadd.f32 %v4024_v18, %v4012_v26  ;;  %v5572_v18 = vld [vmem:[#allocation11 + $0x7b8] sm:$0xf0] }
 0x2a9   :  { %v7079_v37 = vld [vmem:[#allocation11 + $0xd74] sm:$0xf0]  ;;  %v4740_v26 = vld [vmem:[#allocation11 + $0x138] sm:$0xf0] }
 0x2aa   :  { %v6562_v38 = vld [vmem:[#allocation11 + $0xf58] sm:$0xf]  ;;  %v6307_v48 = vor.u32 %v7079_v37, %v6306_v19  ;;  %4252 = vmatpush.bf16.msrb.mxu1 %v6019_v42  ;;  %v6707_v37 = vld [vmem:[#allocation11 + $0x1dc] sm:$0xf] }
 0x2ab   :  { %v7143_v41 = vld [vmem:[#allocation11 + $0xf74] sm:$0xf0] }
 0x2ac   :  { %v5730_v43 = vld [vmem:[#allocation11 + $0x8d8] sm:$0xf]  ;;  %v6563_v49 = vor.u32 %v7143_v41, %v6562_v38  ;;  %4264 = vmatpush.bf16.msrb.mxu2 %v6307_v48  ;;  %v4836_v38 = vld [vmem:[#allocation11 + $0x1f8] sm:$0xf0] }
 0x2ad   :  { %v6935_v45 = vld [vmem:[#allocation11 + $0x8f4] sm:$0xf0]  ;;  %v6771_v41 = vld [vmem:[#allocation11 + $0x3dc] sm:$0xf] }
 0x2ae   :  { %v5986_v50 = vld [vmem:[#allocation11 + $0xad8] sm:$0xf]  ;;  %v5731_v58 = vor.u32 %v6935_v45, %v5730_v43  ;;  %4277 = vmatpush.bf16.msrb.mxu3 %v6563_v49  ;;  %v4839_v49 = vor.u32 %v6707_v37, %v4836_v38  ;;  %v6883_v37 = vld [vmem:[#allocation11 + $0x75c] sm:$0xf] }
 0x2af   :  { %v6999_v51 = vld [vmem:[#allocation11 + $0xaf4] sm:$0xf0]  ;;  %v5540_v38 = vld [vmem:[#allocation11 + $0x778] sm:$0xf0] }
 0x2b0   :  { %v6274_v27 = vld [vmem:[#allocation11 + $0xd18] sm:$0xf]  ;;  %v5987_v44 = vor.u32 %v6999_v51, %v5986_v50  ;;  %4240 = vmatpush.bf16.msrb.mxu0 %v5731_v58  ;;  %v5095_v50 = vor.u32 %v6771_v41, %v5092_v14  ;;  %v6699_v51 = vld [vmem:[#allocation11 + $0x19c] sm:$0xf]  ;;  %v4013_v58 = vpop.f32.mrf.mxu2 }
 0x2b1   :  { %v7071_v52 = vld [vmem:[#allocation11 + $0xd34] sm:$0xf0]  ;;  %v6667_v58 = vld [vmem:[#allocation11 + $0x9c] sm:$0xf] }
 0x2b2   :  { %v6530_v56 = vld [vmem:[#allocation11 + $0xf18] sm:$0xf]  ;;  %v6275_v61 = vor.u32 %v7071_v52, %v6274_v27  ;;  %4253 = vmatpush.bf16.msrb.mxu1 %v5987_v44  ;;  %v4804_v27 = vld [vmem:[#allocation11 + $0x1b8] sm:$0xf0]  ;;  %v4026_v44 = vpop.f32.mrf.mxu3 }
 0x2b3   :  { %v7135_v57 = vld [vmem:[#allocation11 + $0xf34] sm:$0xf0]  ;;  %v6763_v52 = vld [vmem:[#allocation11 + $0x39c] sm:$0xf] }
 0x2b4   :  { %v5698_v59 = vld [vmem:[#allocation11 + $0x898] sm:$0xf]  ;;  %v6531_v62 = vor.u32 %v7135_v57, %v6530_v56  ;;  %4265 = vmatpush.bf16.msrb.mxu2 %v6275_v61  ;;  %v4676_v44 = vld [vmem:[#allocation11 + $0xb8] sm:$0xf0] }
 0x2b5   :  { %v6927_v60 = vld [vmem:[#allocation11 + $0x8b4] sm:$0xf0] }
 0x2b6   :  { %v5954_v0 = vld [vmem:[#allocation11 + $0xa98] sm:$0xf]  ;;  %v5699_v10 = vor.u32 %v6927_v60, %v5698_v59  ;;  %4278 = vmatpush.bf16.msrb.mxu3 %v6531_v62  ;;  %v5060_v59 = vld [vmem:[#allocation11 + $0x3b8] sm:$0xf0] }
 0x2b7   :  { %v6991_v2 = vld [vmem:[#allocation11 + $0xab4] sm:$0xf0] }
 0x2b8   :  { %v6242_v3 = vld [vmem:[#allocation11 + $0xcd8] sm:$0xf]  ;;  %v5955_v11 = vor.u32 %v6991_v2, %v5954_v0  ;;  %4241 = vmatpush.bf16.msrb.mxu0 %v5699_v10  ;;  %v6835_v2 = vld [vmem:[#allocation11 + $0x5dc] sm:$0xf] }
 0x2b9   :  { %v7063_v5 = vld [vmem:[#allocation11 + $0xcf4] sm:$0xf0] }
 0x2ba   :  { %v6498_v8 = vld [vmem:[#allocation11 + $0xed8] sm:$0xf]  ;;  %v6243_v55 = vor.u32 %v7063_v5, %v6242_v3  ;;  %4254 = vmatpush.bf16.msrb.mxu1 %v5955_v11  ;;  %v5348_v3 = vld [vmem:[#allocation11 + $0x5f8] sm:$0xf0]  ;;  %v4807_v5 = vor.u32 %v6699_v51, %v4804_v27 }
 0x2bb   :  { %v7127_v9 = vld [vmem:[#allocation11 + $0xef4] sm:$0xf0]  ;;  %v6691_v11 = vld [vmem:[#allocation11 + $0x15c] sm:$0xf] }
 0x2bc   :  { %v5666_v12 = vld [vmem:[#allocation11 + $0x858] sm:$0xf]  ;;  %v6499_v16 = vor.u32 %v7127_v9, %v6498_v8  ;;  %4266 = vmatpush.bf16.msrb.mxu2 %v6243_v55  ;;  %v5063_v8 = vor.u32 %v6763_v52, %v5060_v59  ;;  %v5607_v55 = vor.u32 %v6899_v47, %v5604_v4  ;;  %v6811_v51 = vld [vmem:[#allocation11 + $0x51c] sm:$0xf] }
 0x2bd   :  { %v6919_v15 = vld [vmem:[#allocation11 + $0x874] sm:$0xf0]  ;;  %v5252_v27 = vld [vmem:[#allocation11 + $0x538] sm:$0xf0] }
 0x2be   :  { %v5922_v17 = vld [vmem:[#allocation11 + $0xa58] sm:$0xf]  ;;  %v5667_v28 = vor.u32 %v6919_v15, %v5666_v12  ;;  %4279 = vmatpush.bf16.msrb.mxu3 %v6499_v16  ;;  %v4772_v12 = vld [vmem:[#allocation11 + $0x178] sm:$0xf0]  ;;  %v5351_v15 = vor.u32 %v6835_v2, %v5348_v3  ;;  %v5255_v59 = vor.u32 %v6811_v51, %v5252_v27  ;;  %v7176_v2 = vld [vmem:[#allocation14] sm:$0xff] }
 0x2bf   :  { %v6983_v21 = vld [vmem:[#allocation11 + $0xa74] sm:$0xf0]  ;;  %v6755_v16 = vld [vmem:[#allocation11 + $0x35c] sm:$0xf]  ;;  %v7594_v3 = vunpack.c.h.bf16 %v7176_v2 }
 0x2c0   :  { %v6210_v1 = vld [vmem:[#allocation11 + $0xc98] sm:$0xf]  ;;  %v5923_v30 = vor.u32 %v6983_v21, %v5922_v17  ;;  %4242 = vmatpush.bf16.msrb.mxu0 %v5667_v28  ;;  %v5028_v17 = vld [vmem:[#allocation11 + $0x378] sm:$0xf0] }
 0x2c1   :  { %v7055_v25 = vld [vmem:[#allocation11 + $0xcb4] sm:$0xf0]  ;;  %v6827_v21 = vld [vmem:[#allocation11 + $0x59c] sm:$0xf] }
 0x2c2   :  { %v6466_v31 = vld [vmem:[#allocation11 + $0xe98] sm:$0xf]  ;;  %v6211_v19 = vor.u32 %v7055_v25, %v6210_v1  ;;  %4255 = vmatpush.bf16.msrb.mxu1 %v5923_v30  ;;  %v5316_v1 = vld [vmem:[#allocation11 + $0x5b8] sm:$0xf0]  ;;  %v4775_v25 = vor.u32 %v6691_v11, %v4772_v12  ;;  %v5575_v30 = vor.u32 %v6891_v24, %v5572_v18  ;;  %v4063_v18 = vpop.f32.mrf.mxu2 }
 0x2c3   :  { %v7119_v29 = vld [vmem:[#allocation11 + $0xeb4] sm:$0xf0]  ;;  %v5319_v28 = vor.u32 %v6827_v21, %v5316_v1  ;;  %v6875_v52 = vld [vmem:[#allocation11 + $0x71c] sm:$0xf]  ;;  %v4409_v21 = vperm.slane %v7594_v3, 0 }
 0x2c4   :  { %v5634_v13 = vld [vmem:[#allocation11 + $0x818] sm:$0xf]  ;;  %v6467_v35 = vor.u32 %v7119_v29, %v6466_v31  ;;  %4267 = vmatpush.bf16.msrb.mxu2 %v6211_v19  ;;  %v5031_v31 = vor.u32 %v6755_v16, %v5028_v17  ;;  %v6683_v29 = vld [vmem:[#allocation11 + $0x11c] sm:$0xf]  ;;  %v4037_v19 = vpop.f32.mrf.mxu0 }
 0x2c5   :  { %v6911_v32 = vld [vmem:[#allocation11 + $0x834] sm:$0xf0]  ;;  %v4038_v41 = vadd.f32 %v4037_v19, %v7587_v34  ;;  %v4743_v14 = vor.u32 %v6683_v29, %v4740_v26  ;;  %v6659_v12 = vld [vmem:[#allocation11 + $0x5c] sm:$0xf] }
 0x2c6   :  { %v5890_v33 = vld [vmem:[#allocation11 + $0xa18] sm:$0xf]  ;;  %v5635_v46 = vor.u32 %v6911_v32, %v5634_v13  ;;  %4280 = vmatpush.bf16.msrb.mxu3 %v6467_v35  ;;  %v6747_v13 = vld [vmem:[#allocation11 + $0x31c] sm:$0xf]  ;;  %v4050_v35 = vpop.f32.mrf.mxu1 }
 0x2c7   :  { %v6975_v36 = vld [vmem:[#allocation11 + $0xa34] sm:$0xf0]  ;;  %v4996_v32 = vld [vmem:[#allocation11 + $0x338] sm:$0xf0] }
 0x2c8   :  { %v6178_v20 = vld [vmem:[#allocation11 + $0xc58] sm:$0xf]  ;;  %v5891_v48 = vor.u32 %v6975_v36, %v5890_v33  ;;  %4243 = vmatpush.bf16.msrb.mxu0 %v5635_v46  ;;  %v6819_v33 = vld [vmem:[#allocation11 + $0x55c] sm:$0xf] }
 0x2c9   :  { %v7047_v42 = vld [vmem:[#allocation11 + $0xc74] sm:$0xf0]  ;;  %v5284_v36 = vld [vmem:[#allocation11 + $0x578] sm:$0xf0] }
 0x2ca   :  { %v6434_v43 = vld [vmem:[#allocation11 + $0xe58] sm:$0xf]  ;;  %v6179_v56 = vor.u32 %v7047_v42, %v6178_v20  ;;  %4256 = vmatpush.bf16.msrb.mxu1 %v5891_v48  ;;  %v4999_v20 = vor.u32 %v6747_v13, %v4996_v32  ;;  %v6675_v42 = vld [vmem:[#allocation11 + $0xdc] sm:$0xf]  ;;  %v5287_v46 = vor.u32 %v6819_v33, %v5284_v36  ;;  %v5543_v48 = vor.u32 %v6883_v37, %v5540_v38 }
 0x2cb   :  { %v7111_v45 = vld [vmem:[#allocation11 + $0xe74] sm:$0xf0]  ;;  %4244 = vmatmul.bf16.vlgmr.msrb.gmra.mxu0 %v7496_v6  ;;  %v4900_v1 = vld [vmem:[#allocation11 + $0x278] sm:$0xf0]  ;;  %v4425_v38 = vperm.slane %v4409_v21, 0 }
 0x2cc   :  { %v6435_v57 = vor.u32 %v7111_v45, %v6434_v43  ;;  %v6146_v60 = vld [vmem:[#allocation11 + $0xc18] sm:$0xf]  ;;  %4288 = vmatpush.bf16.msra.mxu0 %v4839_v49  ;;  %4268 = vmatpush.bf16.msrb.mxu2 %v6179_v56  ;;  %v4708_v43 = vld [vmem:[#allocation11 + $0xf8] sm:$0xf0]  ;;  %v4051_v45 = vadd.f32 %v4050_v35, %v4038_v41  ;;  %v4039_v47 = vpop.f32.mrf.mxu0 }
 0x2cd   :  { %v7039_v61 = vld [vmem:[#allocation11 + $0xc34] sm:$0xf0]  ;;  %4257 = vmatmul.bf16.vlgmr.msrb.gmra.mxu1 %v7498_v7  ;;  %v6739_v49 = vld [vmem:[#allocation11 + $0x2dc] sm:$0xf]  ;;  %v4711_v34 = vor.u32 %v6675_v42, %v4708_v43 }
 0x2ce   :  { %v6402_v62 = vld [vmem:[#allocation11 + $0xe18] sm:$0xf]  ;;  %4301 = vmatpush.bf16.msra.mxu1 %v5095_v50  ;;  %4281 = vmatpush.bf16.msrb.mxu3 %v6435_v57  ;;  %v6147_v9 = vor.u32 %v7039_v61, %v6146_v60  ;;  %v4964_v50 = vld [vmem:[#allocation11 + $0x2f8] sm:$0xf0]  ;;  %v4052_v4 = vpop.f32.mrf.mxu1 }
 0x2cf   :  { %v7103_v0 = vld [vmem:[#allocation11 + $0xe34] sm:$0xf0]  ;;  %v5508_v56 = vld [vmem:[#allocation11 + $0x738] sm:$0xf0]  ;;  %v4967_v57 = vor.u32 %v6739_v49, %v4964_v50 }
 0x2d0   :  { %v6403_v10 = vor.u32 %v7103_v0, %v6402_v62  ;;  %4289 = vmatpush.bf16.msra.mxu0 %v4807_v5  ;;  %4269 = vmatpush.bf16.msrb.mxu2 %v6147_v9  ;;  %v5511_v60 = vor.u32 %v6875_v52, %v5508_v56  ;;  %v6731_v61 = vld [vmem:[#allocation11 + $0x29c] sm:$0xf] }
 0x2d1   :  { %v4932_v62 = vld [vmem:[#allocation11 + $0x2b8] sm:$0xf0] }
 0x2d2   :  { %4302 = vmatpush.bf16.msra.mxu1 %v5063_v8  ;;  %4282 = vmatpush.bf16.msrb.mxu3 %v6403_v10  ;;  %v6803_v0 = vld [vmem:[#allocation11 + $0x4dc] sm:$0xf]  ;;  %v4679_v10 = vor.u32 %v6667_v58, %v4676_v44  ;;  %v4935_v11 = vor.u32 %v6731_v61, %v4932_v62  ;;  %v4065_v61 = vpop.f32.mrf.mxu2 }
 0x2d3   :  { %4270 = vmatmul.bf16.vlgmr.msrb.gmra.mxu2 %v7502_v39  ;;  %v5220_v5 = vld [vmem:[#allocation11 + $0x4f8] sm:$0xf0] }
 0x2d4   :  { %4314 = vmatpush.bf16.msra.mxu2 %v5351_v15  ;;  %4290 = vmatpush.bf16.msra.mxu0 %v4775_v25  ;;  %v6867_v8 = vld [vmem:[#allocation11 + $0x6dc] sm:$0xf]  ;;  %v5223_v16 = vor.u32 %v6803_v0, %v5220_v5  ;;  %v4076_v25 = vpop.f32.mrf.mxu3 }
 0x2d5   :  { %4283 = vmatmul.bf16.vlgmr.msrb.gmra.mxu3 %v7504_v40  ;;  %v5476_v9 = vld [vmem:[#allocation11 + $0x6f8] sm:$0xf0] }
 0x2d6   :  { %4327 = vmatpush.bf16.msra.mxu3 %v5607_v55  ;;  %4303 = vmatpush.bf16.msra.mxu1 %v5031_v31  ;;  %v4644_v15 = vld [vmem:[#allocation11 + $0x78] sm:$0xf0]  ;;  %v5479_v17 = vor.u32 %v6867_v8, %v5476_v9 }
 0x2d7   :  { %v6723_v55 = vld [vmem:[#allocation11 + $0x25c] sm:$0xf]  ;;  %v4647_v32 = vor.u32 %v6659_v12, %v4644_v15 }
 0x2d8   :  { %4315 = vmatpush.bf16.msra.mxu2 %v5319_v28  ;;  %4291 = vmatpush.bf16.msra.mxu0 %v4743_v14  ;;  %v6795_v24 = vld [vmem:[#allocation11 + $0x49c] sm:$0xf]  ;;  %v4064_v28 = vadd.f32 %v4063_v18, %v4051_v45  ;;  %v4903_v33 = vor.u32 %v6723_v55, %v4900_v1 }
 0x2d9   :  { %v5188_v31 = vld [vmem:[#allocation11 + $0x4b8] sm:$0xf0] }
 0x2da   :  { %4328 = vmatpush.bf16.msra.mxu3 %v5575_v30  ;;  %4304 = vmatpush.bf16.msra.mxu1 %v4999_v20  ;;  %v6859_v29 = vld [vmem:[#allocation11 + $0x69c] sm:$0xf]  ;;  %v4077_v37 = vadd.f32 %v4076_v25, %v4064_v28  ;;  %v5191_v41 = vor.u32 %v6795_v24, %v5188_v31 }
 0x2db   :  { %v5444_v26 = vld [vmem:[#allocation11 + $0x6b8] sm:$0xf0] }
 0x2dc   :  { %4316 = vmatpush.bf16.msra.mxu2 %v5287_v46  ;;  %4292 = vmatpush.bf16.msra.mxu0 %v4711_v34  ;;  %v6651_v30 = vld [vmem:[#allocation11 + $0x1c] sm:$0xf]  ;;  %v5447_v14 = vor.u32 %v6859_v29, %v5444_v26  ;;  %v4078_v62 = vpop.f32.mrf.mxu3 }
 0x2dd   :  { %v4612_v13 = vld [vmem:[#allocation11 + $0x38] sm:$0xf0] }
 0x2de   :  { %4329 = vmatpush.bf16.msra.mxu3 %v5543_v48  ;;  %4305 = vmatpush.bf16.msra.mxu1 %v4967_v57  ;;  %v6715_v19 = vld [vmem:[#allocation11 + $0x21c] sm:$0xf]  ;;  %v4396_v48 = vmax.f32 %v4077_v37, 0.0  ;;  %v4615_v51 = vor.u32 %v6651_v30, %v4612_v13  ;;  %v7602_v30 = vld [vmem:[#allocation12] sm:$0xff] }
 0x2df   :  { %v4868_v35 = vld [vmem:[#allocation11 + $0x238] sm:$0xf0]  ;;  %v989_v13 = vperm.slane %v7602_v30, 5 }
 0x2e0   :  { %4317 = vmatpush.bf16.msra.mxu2 %v5255_v59  ;;  %4293 = vmatpush.bf16.msra.mxu0 %v4679_v10  ;;  %v6963_v36 = vld [vmem:[#allocation11 + $0x9dc] sm:$0xf]  ;;  %v4871_v27 = vor.u32 %v6715_v19, %v4868_v35  ;;  %v4433_v52 = vmul.f32 %v4425_v38, %v4396_v48 }
 0x2e1   :  { %v5860_v20 = vld [vmem:[#allocation11 + $0x9f8] sm:$0xf0] }
 0x2e2   :  { %4330 = vmatpush.bf16.msra.mxu3 %v5511_v60  ;;  %4306 = vmatpush.bf16.msra.mxu1 %v4935_v11  ;;  %v7027_v42 = vld [vmem:[#allocation11 + $0xbdc] sm:$0xf]  ;;  %v5863_v56 = vor.u32 %v6963_v36, %v5860_v20  ;;  %v7598_v4 = vadd.f32 %v7580_v63, %v4433_v52 }
 0x2e3   :  { %v6116_v43 = vld [vmem:[#allocation11 + $0xbf8] sm:$0xf0] }
 0x2e4   :  { %4318 = vmatpush.bf16.msra.mxu2 %v5223_v16  ;;  %v6787_v46 = vld [vmem:[#allocation11 + $0x45c] sm:$0xf]  ;;  %4294 = vmatpush.bf16.msra.mxu0 %v4647_v32  ;;  %v6119_v34 = vor.u32 %v7027_v42, %v6116_v43 }
 0x2e5   :  { %v5156_v45 = vld [vmem:[#allocation11 + $0x478] sm:$0xf0] }
 0x2e6   :  { %4331 = vmatpush.bf16.msra.mxu3 %v5479_v17  ;;  %v6851_v49 = vld [vmem:[#allocation11 + $0x65c] sm:$0xf]  ;;  %4307 = vmatpush.bf16.msra.mxu1 %v4903_v33  ;;  %v5159_v59 = vor.u32 %v6787_v46, %v5156_v45 }
 0x2e7   :  { %v5412_v50 = vld [vmem:[#allocation11 + $0x678] sm:$0xf0] }
 0x2e8   :  { %4319 = vmatpush.bf16.msra.mxu2 %v5191_v41  ;;  %v6955_v57 = vld [vmem:[#allocation11 + $0x99c] sm:$0xf]  ;;  %v5415_v60 = vor.u32 %v6851_v49, %v5412_v50  ;;  %4295 = vmatpush.bf16.msra.mxu0 %v4615_v51  ;;  %v4089_v41 = vpop.f32.mrf.mxu0 }
 0x2e9   :  { %v5828_v58 = vld [vmem:[#allocation11 + $0x9b8] sm:$0xf0]  ;;  %v4090_v46 = vadd.f32 %v4089_v41, %v989_v13 }
 0x2ea   :  { %4332 = vmatpush.bf16.msra.mxu3 %v5447_v14  ;;  %v7019_v44 = vld [vmem:[#allocation11 + $0xb9c] sm:$0xf]  ;;  %4308 = vmatpush.bf16.msra.mxu1 %v4871_v27  ;;  %v5831_v15 = vor.u32 %v6955_v57, %v5828_v58  ;;  %v4102_v14 = vpop.f32.mrf.mxu1 }
 0x2eb   :  { %v6084_v0 = vld [vmem:[#allocation11 + $0xbb8] sm:$0xf0]  ;;  %4296 = vmatmul.bf16.vlgmr.msra.gmra.mxu0 %v7484_v53  ;;  %v4103_v51 = vadd.f32 %v4102_v14, %v4090_v46 }
 0x2ec   :  { %v6779_v2 = vld [vmem:[#allocation11 + $0x41c] sm:$0xf]  ;;  %4340 = vmatpush.bf16.msrb.mxu0 %v5863_v56  ;;  %v6087_v55 = vor.u32 %v7019_v44, %v6084_v0  ;;  %4320 = vmatpush.bf16.msra.mxu2 %v5159_v59 }
 0x2ed   :  { %v5124_v47 = vld [vmem:[#allocation11 + $0x438] sm:$0xf0]  ;;  %4309 = vmatmul.bf16.vlgmr.msra.gmra.mxu1 %v7486_v54 }
 0x2ee   :  { %v6843_v5 = vld [vmem:[#allocation11 + $0x61c] sm:$0xf]  ;;  %4353 = vmatpush.bf16.msrb.mxu1 %v6119_v34  ;;  %4333 = vmatpush.bf16.msra.mxu3 %v5415_v60  ;;  %v5127_v16 = vor.u32 %v6779_v2, %v5124_v47 }
 0x2ef   :  { %v5380_v8 = vld [vmem:[#allocation11 + $0x638] sm:$0xf0] }
 0x2f0   :  { %v7091_v9 = vld [vmem:[#allocation11 + $0xddc] sm:$0xf]  ;;  %v5383_v17 = vor.u32 %v6843_v5, %v5380_v8  ;;  %4341 = vmatpush.bf16.msrb.mxu0 %v5831_v15  ;;  %4321 = vmatpush.bf16.msra.mxu2 %v5127_v16  ;;  %v4091_v8 = vpop.f32.mrf.mxu0 }
 0x2f1   :  { %v6372_v10 = vld [vmem:[#allocation11 + $0xdf8] sm:$0xf0] }
 0x2f2   :  { %v7155_v11 = vld [vmem:[#allocation11 + $0xfdc] sm:$0xf]  ;;  %v6375_v63 = vor.u32 %v7091_v9, %v6372_v10  ;;  %4354 = vmatpush.bf16.msrb.mxu1 %v6087_v55  ;;  %4334 = vmatpush.bf16.msra.mxu3 %v5383_v17  ;;  %v4104_v9 = vpop.f32.mrf.mxu1 }
 0x2f3   :  { %v6628_v12 = vld [vmem:[#allocation11 + $0xff8] sm:$0xf0]  ;;  %4322 = vmatmul.bf16.vlgmr.msra.gmra.mxu2 %v7490_v22 }
 0x2f4   :  { %v6947_v21 = vld [vmem:[#allocation11 + $0x95c] sm:$0xf]  ;;  %v6631_v24 = vor.u32 %v7155_v11, %v6628_v12  ;;  %4366 = vmatpush.bf16.msrb.mxu2 %v6375_v63 }
 0x2f5   :  { %v5796_v1 = vld [vmem:[#allocation11 + $0x978] sm:$0xf0]  ;;  %4335 = vmatmul.bf16.vlgmr.msra.gmra.mxu3 %v7492_v23 }
 0x2f6   :  { %v7011_v18 = vld [vmem:[#allocation11 + $0xb5c] sm:$0xf]  ;;  %v5799_v32 = vor.u32 %v6947_v21, %v5796_v1  ;;  %4379 = vmatpush.bf16.msrb.mxu3 %v6631_v24 }
 0x2f7   :  { %v6052_v25 = vld [vmem:[#allocation11 + $0xb78] sm:$0xf0] }
 0x2f8   :  { %v7083_v31 = vld [vmem:[#allocation11 + $0xd9c] sm:$0xf]  ;;  %v6055_v53 = vor.u32 %v7011_v18, %v6052_v25  ;;  %4342 = vmatpush.bf16.msrb.mxu0 %v5799_v32  ;;  %v4115_v25 = vpop.f32.mrf.mxu2 }
 0x2f9   :  { %v6340_v29 = vld [vmem:[#allocation11 + $0xdb8] sm:$0xf0]  ;;  %v4116_v13 = vadd.f32 %v4115_v25, %v4103_v51 }
 0x2fa   :  { %v7147_v26 = vld [vmem:[#allocation11 + $0xf9c] sm:$0xf]  ;;  %v6343_v19 = vor.u32 %v7083_v31, %v6340_v29  ;;  %4355 = vmatpush.bf16.msrb.mxu1 %v6055_v53  ;;  %v4128_v31 = vpop.f32.mrf.mxu3 }
 0x2fb   :  { %v6596_v28 = vld [vmem:[#allocation11 + $0xfb8] sm:$0xf0] }
 0x2fc   :  { %v6939_v33 = vld [vmem:[#allocation11 + $0x91c] sm:$0xf]  ;;  %v6599_v35 = vor.u32 %v7147_v26, %v6596_v28  ;;  %4367 = vmatpush.bf16.msrb.mxu2 %v6343_v19  ;;  %v4129_v19 = vadd.f32 %v4128_v31, %v4116_v13  ;;  %v4411_v13 = vperm.slane %v7594_v3, 4 }
 0x2fd   :  { %v5764_v54 = vld [vmem:[#allocation11 + $0x938] sm:$0xf0] }
 0x2fe   :  { %v7003_v36 = vld [vmem:[#allocation11 + $0xb1c] sm:$0xf]  ;;  %v5767_v45 = vor.u32 %v6939_v33, %v5764_v54  ;;  %4380 = vmatpush.bf16.msrb.mxu3 %v6599_v35 }
 0x2ff   :  { %v6020_v37 = vld [vmem:[#allocation11 + $0xb38] sm:$0xf0] }
 0x300   :  { %v7075_v38 = vld [vmem:[#allocation11 + $0xd5c] sm:$0xf]  ;;  %v6023_v48 = vor.u32 %v7003_v36, %v6020_v37  ;;  %4343 = vmatpush.bf16.msrb.mxu0 %v5767_v45 }
 0x301   :  { %v6308_v20 = vld [vmem:[#allocation11 + $0xd78] sm:$0xf0] }
 0x302   :  { %v7139_v42 = vld [vmem:[#allocation11 + $0xf5c] sm:$0xf]  ;;  %v6311_v27 = vor.u32 %v7075_v38, %v6308_v20  ;;  %4356 = vmatpush.bf16.msrb.mxu1 %v6023_v48  ;;  %v4130_v51 = vpop.f32.mrf.mxu3 }
 0x303   :  { %v6564_v43 = vld [vmem:[#allocation11 + $0xf78] sm:$0xf0] }
 0x304   :  { %v6931_v49 = vld [vmem:[#allocation11 + $0x8dc] sm:$0xf]  ;;  %v6567_v52 = vor.u32 %v7139_v42, %v6564_v43  ;;  %4368 = vmatpush.bf16.msrb.mxu2 %v6311_v27 }
 0x305   :  { %v5732_v50 = vld [vmem:[#allocation11 + $0x8f8] sm:$0xf0] }
 0x306   :  { %v6995_v56 = vld [vmem:[#allocation11 + $0xadc] sm:$0xf]  ;;  %v5735_v23 = vor.u32 %v6931_v49, %v5732_v50  ;;  %4381 = vmatpush.bf16.msrb.mxu3 %v6567_v52  ;;  %v4117_v50 = vpop.f32.mrf.mxu2 }
 0x307   :  { %v5988_v34 = vld [vmem:[#allocation11 + $0xaf8] sm:$0xf0] }
 0x308   :  { %v7067_v57 = vld [vmem:[#allocation11 + $0xd1c] sm:$0xf]  ;;  %v5991_v59 = vor.u32 %v6995_v56, %v5988_v34  ;;  %4344 = vmatpush.bf16.msrb.mxu0 %v5735_v23 }
 0x309   :  { %v6276_v58 = vld [vmem:[#allocation11 + $0xd38] sm:$0xf0] }
 0x30a   :  { %v7131_v44 = vld [vmem:[#allocation11 + $0xf1c] sm:$0xf]  ;;  %v6279_v62 = vor.u32 %v7067_v57, %v6276_v58  ;;  %4357 = vmatpush.bf16.msrb.mxu1 %v5991_v59  ;;  %v4141_v58 = vpop.f32.mrf.mxu0 }
 0x30b   :  { %v6532_v22 = vld [vmem:[#allocation11 + $0xf38] sm:$0xf0] }
 0x30c   :  { %v6923_v60 = vld [vmem:[#allocation11 + $0x89c] sm:$0xf]  ;;  %v6535_v0 = vor.u32 %v7131_v44, %v6532_v22  ;;  %4369 = vmatpush.bf16.msrb.mxu2 %v6279_v62  ;;  %v4154_v44 = vpop.f32.mrf.mxu1  ;;  %v4142_v22 = vadd.f32 %v4141_v58, %v4129_v19  ;;  %v4427_v19 = vperm.slane %v4411_v13, 0 }
 0x30d   :  { %v5700_v61 = vld [vmem:[#allocation11 + $0x8b8] sm:$0xf0] }
 0x30e   :  { %v6987_v2 = vld [vmem:[#allocation11 + $0xa9c] sm:$0xf]  ;;  %v5703_v15 = vor.u32 %v6923_v60, %v5700_v61  ;;  %4382 = vmatpush.bf16.msrb.mxu3 %v6535_v0  ;;  %v4155_v23 = vadd.f32 %v4154_v44, %v4142_v22  ;;  %v4410_v61 = vperm.slane %v7594_v3, 2  ;;  %v4167_v62 = vpop.f32.mrf.mxu2  ;;  %v4180_v0 = vpop.f32.mrf.mxu3 }
 0x30f   :  { %v5956_v47 = vld [vmem:[#allocation11 + $0xab8] sm:$0xf0] }
 0x310   :  { %v7059_v5 = vld [vmem:[#allocation11 + $0xcdc] sm:$0xf]  ;;  %v5959_v55 = vor.u32 %v6987_v2, %v5956_v47  ;;  %4345 = vmatpush.bf16.msrb.mxu0 %v5703_v15  ;;  %v4168_v2 = vadd.f32 %v4167_v62, %v4155_v23  ;;  %v4426_v47 = vperm.slane %v4410_v61, 0 }
 0x311   :  { %v6244_v10 = vld [vmem:[#allocation11 + $0xcf8] sm:$0xf0] }
 0x312   :  { %v7123_v11 = vld [vmem:[#allocation11 + $0xedc] sm:$0xf]  ;;  %v6247_v21 = vor.u32 %v7059_v5, %v6244_v10  ;;  %4358 = vmatpush.bf16.msrb.mxu1 %v5959_v55  ;;  %v4143_v59 = vpop.f32.mrf.mxu0 }
 0x313   :  { %v6500_v12 = vld [vmem:[#allocation11 + $0xef8] sm:$0xf0]  ;;  %v4412_v59 = vperm.slane %v7594_v3, 6 }
 0x314   :  { %v6915_v16 = vld [vmem:[#allocation11 + $0x85c] sm:$0xf]  ;;  %v6503_v1 = vor.u32 %v7123_v11, %v6500_v12  ;;  %4370 = vmatpush.bf16.msrb.mxu2 %v6247_v21  ;;  %v4156_v60 = vpop.f32.mrf.mxu1 }
 0x315   :  { %v5668_v17 = vld [vmem:[#allocation11 + $0x878] sm:$0xf0] }
 0x316   :  { %v6979_v63 = vld [vmem:[#allocation11 + $0xa5c] sm:$0xf]  ;;  %v5671_v32 = vor.u32 %v6915_v16, %v5668_v17  ;;  %4383 = vmatpush.bf16.msrb.mxu3 %v6503_v1  ;;  %v4169_v8 = vpop.f32.mrf.mxu2  ;;  %v4182_v9 = vpop.f32.mrf.mxu3 }
 0x317   :  { %v5924_v24 = vld [vmem:[#allocation11 + $0xa78] sm:$0xf0]  ;;  %v4479_v9 = vstv %s7630_s7 }
 0x318   :  { %v7051_v18 = vld [vmem:[#allocation11 + $0xc9c] sm:$0xf]  ;;  %v5927_v53 = vor.u32 %v6979_v63, %v5924_v24  ;;  %4346 = vmatpush.bf16.msrb.mxu0 %v5671_v32 }
 0x319   :  { %v6212_v29 = vld [vmem:[#allocation11 + $0xcb8] sm:$0xf0] }
 0x31a   :  { %v7115_v26 = vld [vmem:[#allocation11 + $0xe9c] sm:$0xf]  ;;  %v6215_v35 = vor.u32 %v7051_v18, %v6212_v29  ;;  %4359 = vmatpush.bf16.msrb.mxu1 %v5927_v53  ;;  %v4193_v10 = vpop.f32.mrf.mxu0 }
 0x31b   :  { %v6468_v28 = vld [vmem:[#allocation11 + $0xeb8] sm:$0xf0] }
 0x31c   :  { %v6907_v33 = vld [vmem:[#allocation11 + $0x81c] sm:$0xf]  ;;  %v6471_v36 = vor.u32 %v7115_v26, %v6468_v28  ;;  %4371 = vmatpush.bf16.msrb.mxu2 %v6215_v35  ;;  %v4206_v11 = vpop.f32.mrf.mxu1 }
 0x31d   :  { %v5636_v54 = vld [vmem:[#allocation11 + $0x838] sm:$0xf0] }
 0x31e   :  { %v6971_v37 = vld [vmem:[#allocation11 + $0xa1c] sm:$0xf]  ;;  %v5639_v43 = vor.u32 %v6907_v33, %v5636_v54  ;;  %4384 = vmatpush.bf16.msrb.mxu3 %v6471_v36  ;;  %v4219_v17 = vpop.f32.mrf.mxu2 }
 0x31f   :  { %v5892_v38 = vld [vmem:[#allocation11 + $0xa38] sm:$0xf0] }
 0x320   :  { %v7043_v41 = vld [vmem:[#allocation11 + $0xc5c] sm:$0xf]  ;;  %v5895_v46 = vor.u32 %v6971_v37, %v5892_v38  ;;  %4347 = vmatpush.bf16.msrb.mxu0 %v5639_v43  ;;  %v4232_v21 = vpop.f32.mrf.mxu3 }
 0x321   :  { %v6180_v14 = vld [vmem:[#allocation11 + $0xc78] sm:$0xf0] }
 0x322   :  { %v7107_v20 = vld [vmem:[#allocation11 + $0xe5c] sm:$0xf]  ;;  %v6183_v45 = vor.u32 %v7043_v41, %v6180_v14  ;;  %4360 = vmatpush.bf16.msrb.mxu1 %v5895_v46  ;;  %v4195_v55 = vpop.f32.mrf.mxu0 }
 0x323   :  { %v6436_v42 = vld [vmem:[#allocation11 + $0xe78] sm:$0xf0]  ;;  %4348 = vmatmul.bf16.vlgmr.msrb.gmra.mxu0 %v7496_v6  ;;  %v4181_v6 = vadd.f32 %v4180_v0, %v4168_v2  ;;  %v4428_v2 = vperm.slane %v4412_v59, 0 }
 0x324   :  { %v6439_v48 = vor.u32 %v7107_v20, %v6436_v42  ;;  %v7035_v49 = vld [vmem:[#allocation11 + $0xc1c] sm:$0xf]  ;;  %4372 = vmatpush.bf16.msrb.mxu2 %v6183_v45  ;;  %v4208_v16 = vpop.f32.mrf.mxu1 }
 0x325   :  { %v6148_v27 = vld [vmem:[#allocation11 + $0xc38] sm:$0xf0]  ;;  %4361 = vmatmul.bf16.vlgmr.msrb.gmra.mxu1 %v7498_v7  ;;  %v4397_v7 = vmax.f32 %v4181_v6, 0.0 }
 0x326   :  { %v7099_v52 = vld [vmem:[#allocation11 + $0xe1c] sm:$0xf]  ;;  %4385 = vmatpush.bf16.msrb.mxu3 %v6439_v48  ;;  %v6151_v34 = vor.u32 %v7035_v49, %v6148_v27  ;;  %v4221_v24 = vpop.f32.mrf.mxu2  ;;  %v991_v48 = vperm.slane %v7602_v30, 7 }
 0x327   :  { %v6404_v56 = vld [vmem:[#allocation11 + $0xe38] sm:$0xf0]  ;;  %v4434_v5 = vmul.f32 %v4426_v47, %v4397_v7 }
 0x328   :  { %v6407_v57 = vor.u32 %v7099_v52, %v6404_v56  ;;  %4373 = vmatpush.bf16.msrb.mxu2 %v6151_v34  ;;  %v4234_v18 = vpop.f32.mrf.mxu3 }
 0x32a   :  { %4386 = vmatpush.bf16.msrb.mxu3 %v6407_v57 }
 0x32b   :  { %4374 = vmatmul.bf16.vlgmr.msrb.gmra.mxu2 %v7502_v39  ;;  %v4441_v39 = vadd.f32 %v7598_v4, %v4434_v5 }
 0x32d   :  { %4387 = vmatmul.bf16.vlgmr.msrb.gmra.mxu3 %v7504_v40  ;;  %v990_v40 = vperm.slane %v7602_v30, 6 }
 0x32f   :  { %v4194_v12 = vadd.f32 %v4193_v10, %v990_v40 }
 0x331   :  { %v4207_v15 = vadd.f32 %v4206_v11, %v4194_v12 }
 0x333   :  { %v4220_v1 = vadd.f32 %v4219_v17, %v4207_v15 }
 0x335   :  { %v4233_v63 = vadd.f32 %v4232_v21, %v4220_v1 }
 0x348   :  { %v4245_v25 = vpop.f32.mrf.mxu0 }
 0x349   :  { %v4246_v29 = vadd.f32 %v4245_v25, %v4233_v63 }
 0x34a   :  { %v4258_v31 = vpop.f32.mrf.mxu1 }
 0x34b   :  { %v4259_v26 = vadd.f32 %v4258_v31, %v4246_v29 }
 0x350   :  { %v4247_v28 = vpop.f32.mrf.mxu0 }
 0x352   :  { %v4260_v4 = vpop.f32.mrf.mxu1 }
 0x356   :  { %v4271_v32 = vpop.f32.mrf.mxu2 }
 0x357   :  { %v4272_v33 = vadd.f32 %v4271_v32, %v4259_v26 }
 0x358   :  { %v4284_v53 = vpop.f32.mrf.mxu3 }
 0x359   :  { %v4285_v54 = vadd.f32 %v4284_v53, %v4272_v33 }
 0x35b   :  { %v4398_v35 = vmax.f32 %v4285_v54, 0.0 }
 0x35d   :  { %v4435_v36 = vmul.f32 %v4427_v19, %v4398_v35 }
 0x35e   :  { %v4273_v37 = vpop.f32.mrf.mxu2 }
 0x35f   :  { %v4442_v41 = vadd.f32 %v4441_v39, %v4435_v36 }
 0x360   :  { %v4286_v38 = vpop.f32.mrf.mxu3 }
 0x368   :  { %v4297_v14 = vpop.f32.mrf.mxu0 }
 0x369   :  { %v4298_v51 = vadd.f32 %v4297_v14, %v991_v48 }
 0x36a   :  { %v4310_v20 = vpop.f32.mrf.mxu1 }
 0x36b   :  { %v4311_v27 = vadd.f32 %v4310_v20, %v4298_v51 }
 0x370   :  { %v4299_v42 = vpop.f32.mrf.mxu0 }
 0x372   :  { %v4312_v43 = vpop.f32.mrf.mxu1 }
 0x376   :  { %v4323_v46 = vpop.f32.mrf.mxu2 }
 0x377   :  { %v4324_v52 = vadd.f32 %v4323_v46, %v4311_v27 }
 0x378   :  { %v4336_v45 = vpop.f32.mrf.mxu3 }
 0x379   :  { %v4337_v57 = vadd.f32 %v4336_v45, %v4324_v52 }
 0x37e   :  { %v4325_v49 = vpop.f32.mrf.mxu2 }
 0x380   :  { %v4338_v50 = vpop.f32.mrf.mxu3 }
 0x3a0   :  { %v4349_v56 = vpop.f32.mrf.mxu0 }
 0x3a1   :  { %v4350_v58 = vadd.f32 %v4349_v56, %v4337_v57 }
 0x3a2   :  { %v4362_v34 = vpop.f32.mrf.mxu1 }
 0x3a3   :  { %v4363_v23 = vadd.f32 %v4362_v34, %v4350_v58 }
 0x3a8   :  { %v4351_v44 = vpop.f32.mrf.mxu0 }
 0x3aa   :  { %v4364_v22 = vpop.f32.mrf.mxu1 }
 0x3ae   :  { %v4375_v60 = vpop.f32.mrf.mxu2 }
 0x3af   :  { %v4376_v62 = vadd.f32 %v4375_v60, %v4363_v23 }
 0x3b0   :  { %v4388_v61 = vpop.f32.mrf.mxu3 }
 0x3b1   :  { %v4389_v0 = vadd.f32 %v4388_v61, %v4376_v62 }
 0x3b3   :  { %v4399_v30 = vmax.f32 %v4389_v0, 0.0 }
 0x3b5   :  { %v4436_v6 = vmul.f32 %v4428_v2, %v4399_v30 }
 0x3b6   :  { %v4377_v47 = vpop.f32.mrf.mxu2 }
 0x3b7   :  { %v4443_v5 = vadd.f32 %v4442_v41, %v4436_v6 }
 0x3b8   :  { %v4390_v7 = vpop.f32.mrf.mxu3 }
 0x3b9   :  { %4444 = vadd.xlane.f32.xlu0 %v4443_v5 }
 0x42c   :  { %v4445_v8 = vpop.xlane.xlu0 %4444 }
 0x42d   :  { %4446 = vxpose.xlu0.b32.start.end [1/1] (short) (narrow) %v4445_v8, 8 }
 0x4d1   :  { %v4462_v39 = vpop.trf.xlu0 }
 0x4d2   :  { %v4480_v40 = vadd.f32 %v4479_v9, %v4462_v39 }
 0x4d4   :  { %v4481_v3 = vand.u32 2147483647, %v4480_v40  ;;  %vm4487_vm2 = vcmp.ge.f32.partialorder %v4480_v40, 0.0 }
 0x4d6   :  { %v4482_v10 = vsub.f32 0.0, %v4481_v3 }
 0x4d8   :  { %v4483_v11 = vmul.f32 1.442695, %v4482_v10 }
 0x4da   :  { %7171 = vpow2.f32 %v4483_v11 }
 0x4e0   :  { %v7172_v12 = vpop.eup %7171 }
 0x4e1   :  { %v4485_v15 = vadd.f32 1.0, %v7172_v12 }
 0x4e3   :  { %7173 = vrcp.f32 %v4485_v15 }
 0x4e9   :  { %v7174_v55 = vpop.eup %7173 }
 0x4ea   :  { %v4488_v16 = vmul.f32 %v7174_v55, %v7172_v12 }
 0x4ec   :  { %v4489_v17 = vsel %vm4487_vm2, %v7174_v55, %v4488_v16 }
 0x4ed   :  { %4491 = vst.msk [vmem:[#allocation15] sm:$0x1] %vm4490_vm1, %v4489_v17 }
 0x4ee   :  { %4502 = dma.vmem_to_hbm [thread:$0]  %s4498_s16, 16, %s4500_s18, [#allocation5]  }
 0x4ef   :  { %7378 = dma.done.wait [#allocation5], 16  }
 0x4f0   :  { %7379 = vsyncadd [#allocation5], 4294967280 }
 0x4f1   :  { %4507 = vsyncpa [#allocation4], 1 }
 0x4f2   :  { %4508 = vsyncpa [#allocation7], 1 }
 0x4f3   :  { %4509 = vsyncpa [#allocation10], 1 }
 0x4f4   :  { %4510 = vsyncpa [#allocation13], 1 }
 0x4f5   :  { %4511 = vsyncpa [#allocation5], 1 }

</bundles_post_ra>
